<compile_context>
chip_gen: v6e
topology: v6e:2x2x1
jax: 0.10.0
libtpu: 0.0.40
codegen_flags: <defaults>
</compile_context>

<pallas_src>
import jax
import jax.numpy as jnp
from jax import lax
from jax.experimental import pallas as pl
from jax.experimental.pallas import tpu as pltpu


TM = 256      # row tile (multiple of 8/16, amortizes per-step overhead)
LANE = 128    # lane width / channel-padding target


def _round_up(x, m):
    return (x + m - 1) // m * m


# ----------------------------- Pallas kernels ------------------------------ #

def _conv_bias_kernel(p_ref, w_ref, b_ref, o_ref):
    # p_ref: [TM, Kp] bf16, w_ref: [Kp, Cp] bf16, b_ref: [1, Cp] f32 -> o_ref [TM, Cp] f32
    o_ref[...] = (
        jnp.dot(p_ref[...], w_ref[...], preferred_element_type=jnp.float32)
        + b_ref[...]
    )


def _conv_gdn_kernel(p_ref, w_ref, b_ref, g_ref, beta_ref, o_ref):
    # Fused conv (im2col matmul + bias) + GDN epilogue.
    # g_ref is gamma^T zero-padded to [Cp, Cp]; beta_ref padded lanes hold 1.0
    # so the padded output lanes stay finite (they are sliced off outside).
    y = (
        jnp.dot(p_ref[...], w_ref[...], preferred_element_type=jnp.float32)
        + b_ref[...]
    )
    norm = (
        jnp.dot(y * y, g_ref[...], preferred_element_type=jnp.float32)
        + beta_ref[...]
    )
    o_ref[...] = y * lax.rsqrt(norm)


# ------------------------------ JAX wrappers -------------------------------- #

def _im2col(x_nhwc, k, stride, pad):
    """Extract k x k patches with given stride/padding.

    Returns [N, Ho, Wo, k*k*C] with flattened-patch ordering (kh, kw, c)."""
    n, h, w, c = x_nhwc.shape
    xp = jnp.pad(x_nhwc, ((0, 0), (pad, pad), (pad, pad), (0, 0)))
    ho = (h + 2 * pad - k) // stride + 1
    wo = (w + 2 * pad - k) // stride + 1
    cols = []
    for di in range(k):
        for dj in range(k):
            cols.append(xp[:, di:di + stride * ho:stride,
                           dj:dj + stride * wo:stride, :])
    return jnp.concatenate(cols, axis=-1), ho, wo


def conv2d_gdn_pallas(x_nhwc, w_oihw, bias, gamma=None, beta=None, *,
                      stride=2, pad=2):
    """Conv2d (stride/padding as torch.nn.Conv2d) optionally fused with GDN."""
    cout, cin, kh, kw = w_oihw.shape
    patches, ho, wo = _im2col(x_nhwc, kh, stride, pad)
    n = x_nhwc.shape[0]
    m = n * ho * wo
    k_dim = kh * kw * cin

    # TPU-friendly padded shapes: lane-dense K / Cout, M a multiple of the row tile.
    kp = _round_up(k_dim, LANE)
    cp = _round_up(cout, LANE)
    tm = min(TM, _round_up(m, 8))
    mp = _round_up(m, tm)

    p2d = patches.reshape(m, k_dim)
    p2d = jnp.pad(p2d, ((0, mp - m), (0, kp - k_dim))).astype(jnp.bfloat16)

    # reorder weights to match (kh, kw, cin) patch ordering -> [Kp, Cp]
    wmat = jnp.transpose(w_oihw, (2, 3, 1, 0)).reshape(k_dim, cout)
    wmat = jnp.pad(wmat, ((0, kp - k_dim), (0, cp - cout))).astype(jnp.bfloat16)
    b2d = jnp.pad(bias.reshape(1, cout).astype(jnp.float32),
                  ((0, 0), (0, cp - cout)))

    bcast = lambda i: (0, 0)
    in_specs = [
        pl.BlockSpec((tm, kp), lambda i: (i, 0)),
        pl.BlockSpec((kp, cp), bcast),
        pl.BlockSpec((1, cp), bcast),
    ]
    operands = [p2d, wmat, b2d]

    if gamma is not None:
        gmat = jnp.pad(gamma.T.astype(jnp.float32),
                       ((0, cp - cout), (0, cp - cout)))
        beta_p = jnp.concatenate(
            [beta.astype(jnp.float32),
             jnp.ones((cp - cout,), jnp.float32)]).reshape(1, cp)
        in_specs += [pl.BlockSpec((cp, cp), bcast), pl.BlockSpec((1, cp), bcast)]
        operands += [gmat, beta_p]
        kernel = _conv_gdn_kernel
        flops = 2 * mp * kp * cp + 2 * mp * cp * cp
        transcendentals = mp * cp
    else:
        kernel = _conv_bias_kernel
        flops = 2 * mp * kp * cp
        transcendentals = 0

    bytes_accessed = (p2d.size * 2 + wmat.size * 2 + mp * cp * 4
                      + sum(int(o.size) * 4 for o in operands[2:]))

    out2d = pl.pallas_call(
        kernel,
        out_shape=jax.ShapeDtypeStruct((mp, cp), jnp.float32),
        grid=(mp // tm,),
        in_specs=in_specs,
        out_specs=pl.BlockSpec((tm, cp), lambda i: (i, 0)),
        compiler_params=pltpu.CompilerParams(
            dimension_semantics=("parallel",),
            vmem_limit_bytes=32 * 1024 * 1024),
        cost_estimate=pl.CostEstimate(
            flops=int(flops),
            transcendentals=int(transcendentals),
            bytes_accessed=int(bytes_accessed)),
    )(*operands)

    # drop row / lane padding
    return out2d[:m, :cout].reshape(n, ho, wo, cout)


# --------------------------- parameter construction ------------------------- #

def init_params(key):
    """Deterministic synthetic parameters matching AnalysisNet shapes."""
    def conv_init(k, cout, cin, ksz):
        kw_, kb_ = jax.random.split(k)
        fan_in = cin * ksz * ksz
        scale = 1.0 / jnp.sqrt(fan_in)
        w = jax.random.uniform(kw_, (cout, cin, ksz, ksz), jnp.float32, -scale, scale)
        b = jax.random.uniform(kb_, (cout,), jnp.float32, -scale, scale)
        return w, b

    keys = jax.random.split(key, 4)
    params = {}
    params["conv1"] = conv_init(keys[0], 64, 3, 5)
    params["conv2"] = conv_init(keys[1], 64, 64, 5)
    params["conv3"] = conv_init(keys[2], 64, 64, 5)
    params["conv4"] = conv_init(keys[3], 96, 64, 5)
    # GDN: standard init -> beta = 1, gamma = 0.1 * I
    for i in (1, 2, 3):
        params[f"gdn{i}"] = (0.1 * jnp.eye(64, dtype=jnp.float32),
                             jnp.ones((64,), dtype=jnp.float32))
    return params


# ------------------------------- full network ------------------------------- #

def analysis_net(x_nchw, params):
    # NCHW -> NHWC for the kernels
    x = jnp.transpose(x_nchw, (0, 2, 3, 1)).astype(jnp.float32)

    for i in (1, 2, 3):
        w, b = params[f"conv{i}"]
        g, bt = params[f"gdn{i}"]
        x = conv2d_gdn_pallas(x, w, b, g, bt)       # fused conv + GDN

    w, b = params["conv4"]
    x = conv2d_gdn_pallas(x, w, b)                  # final conv, no GDN

    # NHWC -> NCHW to match the PyTorch module's output layout
    return jnp.transpose(x, (0, 3, 1, 2))


if __name__ == "__main__":
    key = jax.random.PRNGKey(0)
    k_params, k_x = jax.random.split(key)
    params = init_params(k_params)

    # small input consistent with the module: N=2, C=3, H=W=32
    x = jax.random.normal(k_x, (2, 3, 32, 32), dtype=jnp.float32)

    out = jax.jit(lambda xx: analysis_net(xx, params))(x)
    out = jax.block_until_ready(out)

    assert out.shape == (2, 96, 2, 2), out.shape
    assert jnp.all(jnp.isfinite(out))
    print("KERNEL_OK")
</pallas_src>

<mosaic_0001>
module attributes {stable_mosaic.version = 11 : i64} {
  func.func @_conv_gdn_kernel(%arg0: i32, %arg1: memref<256x128xbf16, #tpu.memory_space<vmem>>, %arg2: memref<128x128xbf16, #tpu.memory_space<vmem>>, %arg3: memref<1x128xf32, #tpu.memory_space<vmem>>, %arg4: memref<128x128xf32, #tpu.memory_space<vmem>>, %arg5: memref<1x128xf32, #tpu.memory_space<vmem>>, %arg6: memref<256x128xf32, #tpu.memory_space<vmem>>) attributes {dimension_semantics = [#tpu.dimension_semantics<parallel>], iteration_bounds = array<i64: 2>, scalar_prefetch = 0 : i64, scratch_operands = 0 : i64, tpu.core_type = #tpu.core_type<tc>, window_params = [{transform_indices = @transform_0, window_bounds = array<i64: 256, 128>}, {pipeline_mode = #tpu.pipeline_mode<synchronous>, transform_indices = @transform_1, window_bounds = array<i64: 128, 128>}, {pipeline_mode = #tpu.pipeline_mode<synchronous>, transform_indices = @transform_2, window_bounds = array<i64: 1, 128>}, {pipeline_mode = #tpu.pipeline_mode<synchronous>, transform_indices = @transform_3, window_bounds = array<i64: 128, 128>}, {pipeline_mode = #tpu.pipeline_mode<synchronous>, transform_indices = @transform_4, window_bounds = array<i64: 1, 128>}, {transform_indices = @transform_5, window_bounds = array<i64: 256, 128>}]} {
    %c0 = arith.constant 0 : index
    %c0_0 = arith.constant 0 : index
    %0 = vector.load %arg1[%c0, %c0_0] : memref<256x128xbf16, #tpu.memory_space<vmem>>, vector<256x128xbf16>
    %c0_1 = arith.constant 0 : index
    %c0_2 = arith.constant 0 : index
    %1 = vector.load %arg2[%c0_1, %c0_2] : memref<128x128xbf16, #tpu.memory_space<vmem>>, vector<128x128xbf16>
    %cst = arith.constant dense<0.000000e+00> : vector<256x128xf32>
    %2 = tpu.matmul %0, %1, %cst {dimension_numbers = #tpu.dot_dimension_numbers<[1], [0], [0], [1], [0, 0, 1, 1], [], []>} : vector<256x128xbf16>, vector<128x128xbf16>, vector<256x128xf32> -> vector<256x128xf32>
    %c0_3 = arith.constant 0 : index
    %c0_4 = arith.constant 0 : index
    %3 = vector.load %arg3[%c0_3, %c0_4] : memref<1x128xf32, #tpu.memory_space<vmem>>, vector<1x128xf32>
    %4 = vector.broadcast %3 : vector<1x128xf32> to vector<256x128xf32>
    %5 = arith.addf %2, %4 : vector<256x128xf32>
    %6 = arith.mulf %5, %5 : vector<256x128xf32>
    %c0_5 = arith.constant 0 : index
    %c0_6 = arith.constant 0 : index
    %7 = vector.load %arg4[%c0_5, %c0_6] : memref<128x128xf32, #tpu.memory_space<vmem>>, vector<128x128xf32>
    %cst_7 = arith.constant dense<0.000000e+00> : vector<256x128xf32>
    %8 = tpu.matmul %6, %7, %cst_7 {dimension_numbers = #tpu.dot_dimension_numbers<[1], [0], [0], [1], [0, 0, 1, 1], [], []>} : vector<256x128xf32>, vector<128x128xf32>, vector<256x128xf32> -> vector<256x128xf32>
    %c0_8 = arith.constant 0 : index
    %c0_9 = arith.constant 0 : index
    %9 = vector.load %arg5[%c0_8, %c0_9] : memref<1x128xf32, #tpu.memory_space<vmem>>, vector<1x128xf32>
    %10 = vector.broadcast %9 : vector<1x128xf32> to vector<256x128xf32>
    %11 = arith.addf %8, %10 : vector<256x128xf32>
    %12 = math.rsqrt %11 : vector<256x128xf32>
    %13 = arith.mulf %5, %12 : vector<256x128xf32>
    %c0_10 = arith.constant 0 : index
    %c0_11 = arith.constant 0 : index
    %14 = vector.load %arg6[%c0_10, %c0_11] : memref<256x128xf32, #tpu.memory_space<vmem>>, vector<256x128xf32>
    tpu.vector_store %arg6[%c0_10, %c0_11], %13 {strides = array<i32>} : memref<256x128xf32, #tpu.memory_space<vmem>>, vector<256x128xf32>,
    return
  }
  func.func @transform_0(%arg0: i32) -> (i32, i32) {
    %c0_i32 = arith.constant 0 : i32
    %c0_i32_0 = arith.constant 0 : i32
    return %arg0, %c0_i32 : i32, i32
  }
  func.func @transform_1(%arg0: i32) -> (i32, i32) {
    %c0_i32 = arith.constant 0 : i32
    %c0_i32_0 = arith.constant 0 : i32
    %c0_i32_1 = arith.constant 0 : i32
    return %c0_i32, %c0_i32_0 : i32, i32
  }
  func.func @transform_2(%arg0: i32) -> (i32, i32) {
    %c0_i32 = arith.constant 0 : i32
    %c0_i32_0 = arith.constant 0 : i32
    %c0_i32_1 = arith.constant 0 : i32
    return %c0_i32, %c0_i32_0 : i32, i32
  }
  func.func @transform_3(%arg0: i32) -> (i32, i32) {
    %c0_i32 = arith.constant 0 : i32
    %c0_i32_0 = arith.constant 0 : i32
    %c0_i32_1 = arith.constant 0 : i32
    return %c0_i32, %c0_i32_0 : i32, i32
  }
  func.func @transform_4(%arg0: i32) -> (i32, i32) {
    %c0_i32 = arith.constant 0 : i32
    %c0_i32_0 = arith.constant 0 : i32
    %c0_i32_1 = arith.constant 0 : i32
    return %c0_i32, %c0_i32_0 : i32, i32
  }
  func.func @transform_5(%arg0: i32) -> (i32, i32) {
    %c0_i32 = arith.constant 0 : i32
    %c0_i32_0 = arith.constant 0 : i32
    return %arg0, %c0_i32 : i32, i32
  }
}

module attributes {stable_mosaic.version = 11 : i64} {
  func.func @_conv_gdn_kernel(%arg0: i32, %arg1: memref<128x1664xbf16, #tpu.memory_space<vmem>>, %arg2: memref<1664x128xbf16, #tpu.memory_space<vmem>>, %arg3: memref<1x128xf32, #tpu.memory_space<vmem>>, %arg4: memref<128x128xf32, #tpu.memory_space<vmem>>, %arg5: memref<1x128xf32, #tpu.memory_space<vmem>>, %arg6: memref<128x128xf32, #tpu.memory_space<vmem>>) attributes {dimension_semantics = [#tpu.dimension_semantics<parallel>], iteration_bounds = array<i64: 1>, scalar_prefetch = 0 : i64, scratch_operands = 0 : i64, tpu.core_type = #tpu.core_type<tc>, window_params = [{transform_indices = @transform_0, window_bounds = array<i64: 128, 1664>}, {pipeline_mode = #tpu.pipeline_mode<synchronous>, transform_indices = @transform_1, window_bounds = array<i64: 1664, 128>}, {pipeline_mode = #tpu.pipeline_mode<synchronous>, transform_indices = @transform_2, window_bounds = array<i64: 1, 128>}, {pipeline_mode = #tpu.pipeline_mode<synchronous>, transform_indices = @transform_3, window_bounds = array<i64: 128, 128>}, {pipeline_mode = #tpu.pipeline_mode<synchronous>, transform_indices = @transform_4, window_bounds = array<i64: 1, 128>}, {transform_indices = @transform_5, window_bounds = array<i64: 128, 128>}]} {
    %c0 = arith.constant 0 : index
    %c0_0 = arith.constant 0 : index
    %0 = vector.load %arg1[%c0, %c0_0] : memref<128x1664xbf16, #tpu.memory_space<vmem>>, vector<128x1664xbf16>
    %c0_1 = arith.constant 0 : index
    %c0_2 = arith.constant 0 : index
    %1 = vector.load %arg2[%c0_1, %c0_2] : memref<1664x128xbf16, #tpu.memory_space<vmem>>, vector<1664x128xbf16>
    %cst = arith.constant dense<0.000000e+00> : vector<128x128xf32>
    %2 = tpu.matmul %0, %1, %cst {dimension_numbers = #tpu.dot_dimension_numbers<[1], [0], [0], [1], [0, 0, 1, 1], [], []>} : vector<128x1664xbf16>, vector<1664x128xbf16>, vector<128x128xf32> -> vector<128x128xf32>
    %c0_3 = arith.constant 0 : index
    %c0_4 = arith.constant 0 : index
    %3 = vector.load %arg3[%c0_3, %c0_4] : memref<1x128xf32, #tpu.memory_space<vmem>>, vector<1x128xf32>
    %4 = vector.broadcast %3 : vector<1x128xf32> to vector<128x128xf32>
    %5 = arith.addf %2, %4 : vector<128x128xf32>
    %6 = arith.mulf %5, %5 : vector<128x128xf32>
    %c0_5 = arith.constant 0 : index
    %c0_6 = arith.constant 0 : index
    %7 = vector.load %arg4[%c0_5, %c0_6] : memref<128x128xf32, #tpu.memory_space<vmem>>, vector<128x128xf32>
    %cst_7 = arith.constant dense<0.000000e+00> : vector<128x128xf32>
    %8 = tpu.matmul %6, %7, %cst_7 {dimension_numbers = #tpu.dot_dimension_numbers<[1], [0], [0], [1], [0, 0, 1, 1], [], []>} : vector<128x128xf32>, vector<128x128xf32>, vector<128x128xf32> -> vector<128x128xf32>
    %c0_8 = arith.constant 0 : index
    %c0_9 = arith.constant 0 : index
    %9 = vector.load %arg5[%c0_8, %c0_9] : memref<1x128xf32, #tpu.memory_space<vmem>>, vector<1x128xf32>
    %10 = vector.broadcast %9 : vector<1x128xf32> to vector<128x128xf32>
    %11 = arith.addf %8, %10 : vector<128x128xf32>
    %12 = math.rsqrt %11 : vector<128x128xf32>
    %13 = arith.mulf %5, %12 : vector<128x128xf32>
    %c0_10 = arith.constant 0 : index
    %c0_11 = arith.constant 0 : index
    %14 = vector.load %arg6[%c0_10, %c0_11] : memref<128x128xf32, #tpu.memory_space<vmem>>, vector<128x128xf32>
    tpu.vector_store %arg6[%c0_10, %c0_11], %13 {strides = array<i32>} : memref<128x128xf32, #tpu.memory_space<vmem>>, vector<128x128xf32>,
    return
  }
  func.func @transform_0(%arg0: i32) -> (i32, i32) {
    %c0_i32 = arith.constant 0 : i32
    %c0_i32_0 = arith.constant 0 : i32
    return %arg0, %c0_i32 : i32, i32
  }
  func.func @transform_1(%arg0: i32) -> (i32, i32) {
    %c0_i32 = arith.constant 0 : i32
    %c0_i32_0 = arith.constant 0 : i32
    %c0_i32_1 = arith.constant 0 : i32
    return %c0_i32, %c0_i32_0 : i32, i32
  }
  func.func @transform_2(%arg0: i32) -> (i32, i32) {
    %c0_i32 = arith.constant 0 : i32
    %c0_i32_0 = arith.constant 0 : i32
    %c0_i32_1 = arith.constant 0 : i32
    return %c0_i32, %c0_i32_0 : i32, i32
  }
  func.func @transform_3(%arg0: i32) -> (i32, i32) {
    %c0_i32 = arith.constant 0 : i32
    %c0_i32_0 = arith.constant 0 : i32
    %c0_i32_1 = arith.constant 0 : i32
    return %c0_i32, %c0_i32_0 : i32, i32
  }
  func.func @transform_4(%arg0: i32) -> (i32, i32) {
    %c0_i32 = arith.constant 0 : i32
    %c0_i32_0 = arith.constant 0 : i32
    %c0_i32_1 = arith.constant 0 : i32
    return %c0_i32, %c0_i32_0 : i32, i32
  }
  func.func @transform_5(%arg0: i32) -> (i32, i32) {
    %c0_i32 = arith.constant 0 : i32
    %c0_i32_0 = arith.constant 0 : i32
    return %arg0, %c0_i32 : i32, i32
  }
}

module attributes {stable_mosaic.version = 11 : i64} {
  func.func @_conv_gdn_kernel(%arg0: i32, %arg1: memref<32x1664xbf16, #tpu.memory_space<vmem>>, %arg2: memref<1664x128xbf16, #tpu.memory_space<vmem>>, %arg3: memref<1x128xf32, #tpu.memory_space<vmem>>, %arg4: memref<128x128xf32, #tpu.memory_space<vmem>>, %arg5: memref<1x128xf32, #tpu.memory_space<vmem>>, %arg6: memref<32x128xf32, #tpu.memory_space<vmem>>) attributes {dimension_semantics = [#tpu.dimension_semantics<parallel>], iteration_bounds = array<i64: 1>, scalar_prefetch = 0 : i64, scratch_operands = 0 : i64, tpu.core_type = #tpu.core_type<tc>, window_params = [{transform_indices = @transform_0, window_bounds = array<i64: 32, 1664>}, {pipeline_mode = #tpu.pipeline_mode<synchronous>, transform_indices = @transform_1, window_bounds = array<i64: 1664, 128>}, {pipeline_mode = #tpu.pipeline_mode<synchronous>, transform_indices = @transform_2, window_bounds = array<i64: 1, 128>}, {pipeline_mode = #tpu.pipeline_mode<synchronous>, transform_indices = @transform_3, window_bounds = array<i64: 128, 128>}, {pipeline_mode = #tpu.pipeline_mode<synchronous>, transform_indices = @transform_4, window_bounds = array<i64: 1, 128>}, {transform_indices = @transform_5, window_bounds = array<i64: 32, 128>}]} {
    %c0 = arith.constant 0 : index
    %c0_0 = arith.constant 0 : index
    %0 = vector.load %arg1[%c0, %c0_0] : memref<32x1664xbf16, #tpu.memory_space<vmem>>, vector<32x1664xbf16>
    %c0_1 = arith.constant 0 : index
    %c0_2 = arith.constant 0 : index
    %1 = vector.load %arg2[%c0_1, %c0_2] : memref<1664x128xbf16, #tpu.memory_space<vmem>>, vector<1664x128xbf16>
    %cst = arith.constant dense<0.000000e+00> : vector<32x128xf32>
    %2 = tpu.matmul %0, %1, %cst {dimension_numbers = #tpu.dot_dimension_numbers<[1], [0], [0], [1], [0, 0, 1, 1], [], []>} : vector<32x1664xbf16>, vector<1664x128xbf16>, vector<32x128xf32> -> vector<32x128xf32>
    %c0_3 = arith.constant 0 : index
    %c0_4 = arith.constant 0 : index
    %3 = vector.load %arg3[%c0_3, %c0_4] : memref<1x128xf32, #tpu.memory_space<vmem>>, vector<1x128xf32>
    %4 = vector.broadcast %3 : vector<1x128xf32> to vector<32x128xf32>
    %5 = arith.addf %2, %4 : vector<32x128xf32>
    %6 = arith.mulf %5, %5 : vector<32x128xf32>
    %c0_5 = arith.constant 0 : index
    %c0_6 = arith.constant 0 : index
    %7 = vector.load %arg4[%c0_5, %c0_6] : memref<128x128xf32, #tpu.memory_space<vmem>>, vector<128x128xf32>
    %cst_7 = arith.constant dense<0.000000e+00> : vector<32x128xf32>
    %8 = tpu.matmul %6, %7, %cst_7 {dimension_numbers = #tpu.dot_dimension_numbers<[1], [0], [0], [1], [0, 0, 1, 1], [], []>} : vector<32x128xf32>, vector<128x128xf32>, vector<32x128xf32> -> vector<32x128xf32>
    %c0_8 = arith.constant 0 : index
    %c0_9 = arith.constant 0 : index
    %9 = vector.load %arg5[%c0_8, %c0_9] : memref<1x128xf32, #tpu.memory_space<vmem>>, vector<1x128xf32>
    %10 = vector.broadcast %9 : vector<1x128xf32> to vector<32x128xf32>
    %11 = arith.addf %8, %10 : vector<32x128xf32>
    %12 = math.rsqrt %11 : vector<32x128xf32>
    %13 = arith.mulf %5, %12 : vector<32x128xf32>
    %c0_10 = arith.constant 0 : index
    %c0_11 = arith.constant 0 : index
    %14 = vector.load %arg6[%c0_10, %c0_11] : memref<32x128xf32, #tpu.memory_space<vmem>>, vector<32x128xf32>
    tpu.vector_store %arg6[%c0_10, %c0_11], %13 {strides = array<i32>} : memref<32x128xf32, #tpu.memory_space<vmem>>, vector<32x128xf32>,
    return
  }
  func.func @transform_0(%arg0: i32) -> (i32, i32) {
    %c0_i32 = arith.constant 0 : i32
    %c0_i32_0 = arith.constant 0 : i32
    return %arg0, %c0_i32 : i32, i32
  }
  func.func @transform_1(%arg0: i32) -> (i32, i32) {
    %c0_i32 = arith.constant 0 : i32
    %c0_i32_0 = arith.constant 0 : i32
    %c0_i32_1 = arith.constant 0 : i32
    return %c0_i32, %c0_i32_0 : i32, i32
  }
  func.func @transform_2(%arg0: i32) -> (i32, i32) {
    %c0_i32 = arith.constant 0 : i32
    %c0_i32_0 = arith.constant 0 : i32
    %c0_i32_1 = arith.constant 0 : i32
    return %c0_i32, %c0_i32_0 : i32, i32
  }
  func.func @transform_3(%arg0: i32) -> (i32, i32) {
    %c0_i32 = arith.constant 0 : i32
    %c0_i32_0 = arith.constant 0 : i32
    %c0_i32_1 = arith.constant 0 : i32
    return %c0_i32, %c0_i32_0 : i32, i32
  }
  func.func @transform_4(%arg0: i32) -> (i32, i32) {
    %c0_i32 = arith.constant 0 : i32
    %c0_i32_0 = arith.constant 0 : i32
    %c0_i32_1 = arith.constant 0 : i32
    return %c0_i32, %c0_i32_0 : i32, i32
  }
  func.func @transform_5(%arg0: i32) -> (i32, i32) {
    %c0_i32 = arith.constant 0 : i32
    %c0_i32_0 = arith.constant 0 : i32
    return %arg0, %c0_i32 : i32, i32
  }
}

module attributes {stable_mosaic.version = 11 : i64} {
  func.func @_conv_bias_kernel(%arg0: i32, %arg1: memref<8x1664xbf16, #tpu.memory_space<vmem>>, %arg2: memref<1664x128xbf16, #tpu.memory_space<vmem>>, %arg3: memref<1x128xf32, #tpu.memory_space<vmem>>, %arg4: memref<8x128xf32, #tpu.memory_space<vmem>>) attributes {dimension_semantics = [#tpu.dimension_semantics<parallel>], iteration_bounds = array<i64: 1>, scalar_prefetch = 0 : i64, scratch_operands = 0 : i64, tpu.core_type = #tpu.core_type<tc>, window_params = [{transform_indices = @transform_0, window_bounds = array<i64: 8, 1664>}, {pipeline_mode = #tpu.pipeline_mode<synchronous>, transform_indices = @transform_1, window_bounds = array<i64: 1664, 128>}, {pipeline_mode = #tpu.pipeline_mode<synchronous>, transform_indices = @transform_2, window_bounds = array<i64: 1, 128>}, {transform_indices = @transform_3, window_bounds = array<i64: 8, 128>}]} {
    %c0 = arith.constant 0 : index
    %c0_0 = arith.constant 0 : index
    %0 = vector.load %arg1[%c0, %c0_0] : memref<8x1664xbf16, #tpu.memory_space<vmem>>, vector<8x1664xbf16>
    %c0_1 = arith.constant 0 : index
    %c0_2 = arith.constant 0 : index
    %1 = vector.load %arg2[%c0_1, %c0_2] : memref<1664x128xbf16, #tpu.memory_space<vmem>>, vector<1664x128xbf16>
    %cst = arith.constant dense<0.000000e+00> : vector<8x128xf32>
    %2 = tpu.matmul %0, %1, %cst {dimension_numbers = #tpu.dot_dimension_numbers<[1], [0], [0], [1], [0, 0, 1, 1], [], []>} : vector<8x1664xbf16>, vector<1664x128xbf16>, vector<8x128xf32> -> vector<8x128xf32>
    %c0_3 = arith.constant 0 : index
    %c0_4 = arith.constant 0 : index
    %3 = vector.load %arg3[%c0_3, %c0_4] : memref<1x128xf32, #tpu.memory_space<vmem>>, vector<1x128xf32>
    %4 = vector.broadcast %3 : vector<1x128xf32> to vector<8x128xf32>
    %5 = arith.addf %2, %4 : vector<8x128xf32>
    %c0_5 = arith.constant 0 : index
    %c0_6 = arith.constant 0 : index
    %6 = vector.load %arg4[%c0_5, %c0_6] : memref<8x128xf32, #tpu.memory_space<vmem>>, vector<8x128xf32>
    tpu.vector_store %arg4[%c0_5, %c0_6], %5 {strides = array<i32>} : memref<8x128xf32, #tpu.memory_space<vmem>>, vector<8x128xf32>,
    return
  }
  func.func @transform_0(%arg0: i32) -> (i32, i32) {
    %c0_i32 = arith.constant 0 : i32
    %c0_i32_0 = arith.constant 0 : i32
    return %arg0, %c0_i32 : i32, i32
  }
  func.func @transform_1(%arg0: i32) -> (i32, i32) {
    %c0_i32 = arith.constant 0 : i32
    %c0_i32_0 = arith.constant 0 : i32
    %c0_i32_1 = arith.constant 0 : i32
    return %c0_i32, %c0_i32_0 : i32, i32
  }
  func.func @transform_2(%arg0: i32) -> (i32, i32) {
    %c0_i32 = arith.constant 0 : i32
    %c0_i32_0 = arith.constant 0 : i32
    %c0_i32_1 = arith.constant 0 : i32
    return %c0_i32, %c0_i32_0 : i32, i32
  }
  func.func @transform_3(%arg0: i32) -> (i32, i32) {
    %c0_i32 = arith.constant 0 : i32
    %c0_i32_0 = arith.constant 0 : i32
    return %arg0, %c0_i32 : i32, i32
  }
}

</mosaic_0001>

<bundles_post_ra>
// kernel: _lambda_.4
= control target key start
LH: loop header
LB: loop body
LE: loop exit
PB: predicated region body
PF: predicated region fallthrough
CT: control target
= control target key end

     0   :  { %s1392_s18 = smov 0   ;;  %s1771_s0 = inlined_call_operand.vmem [shape: bf16[512,128], index: 0, kind: input, shape index: {}]   ;;  %s1772_s1 = inlined_call_operand.vmem [shape: bf16[128,128], index: 1, kind: input, shape index: {}]   ;;  %s1773_s2 = inlined_call_operand.vmem [shape: f32[1,128], index: 2, kind: input, shape index: {}]   ;;  %s1774_s3 = inlined_call_operand.vmem [shape: f32[128,128], index: 3, kind: input, shape index: {}]   ;;  %s1775_s4 = inlined_call_operand.vmem [shape: f32[1,128], index: 4, kind: input, shape index: {}]   ;;  %s1776_s5 = inlined_call_operand.vmem [shape: f32[512,128], index: 5, kind: output, shape index: {}]  }
   0x1 LB: > { %s1021_s19 = sadd.s32 4294967295, %s1360_s18   ;;  %p1025_p0 = scmp.ge.s32.totalorder %s1360_s18, 1  ;;  %s1360_s18 = sphi %s1392_s18, %s15_s18  }
   0x2   : > { %p188_p1 = scmp.lt.s32.totalorder %s1360_s18, 3 }
   0x4   : > { %p189_p2 = pnand %p1025_p0, %p188_p1 }
   0x5   : > { %s1026_s22 = sshll.u32 (!%p189_p2), %s1021_s19, 5 }
   0x6   : > { %192 = sbr.rel (%p189_p2) target bundleno = 521 (0x209), region = 40  ;;  %p217_p3 = scmp.lt.s32.totalorder (!%p189_p2), %s1026_s22, 63 }
   0xb   : > { %v1266_v0 = vld [vmem:[%s1772_s1 + $0x38] sm:$0xff]   ;;  %v1267_v1 = vld [vmem:[%s1772_s1 + $0x30] sm:$0xff]   ;;  %s1778_s22 = smov (!%p217_p3, %s1026_s22), 63  ;;  %v1268_v2 = vld [vmem:[%s1772_s1 + $0x28] sm:$0xff]  }
   0xc   : > { %1130 = vmatprep.subr.bf16.mxu0 %v1266_v0  ;;  %s1027_s27 = sshll.u32 %s1778_s22, 2  ;;  %v1269_v3 = vld [vmem:[%s1772_s1 + $0x20] sm:$0xff]   ;;  %v1270_v5 = vld [vmem:[%s1772_s1 + $0x18] sm:$0xff]   ;;  %v1271_v6 = vld [vmem:[%s1772_s1 + $0x10] sm:$0xff]   ;;  %s1029_s7 = sshll.u32 %s1778_s22, 3 }
   0xd   : > { %1131 = vmatpush3.bf16.msra.mxu0 %v1266_v0  ;;  %s1415_s30 = scalar_lea.vmem %s1771_s0, %s1027_s27  ;;  %v1272_v7 = vld [vmem:[%s1772_s1 + $0x8] sm:$0xff]   ;;  %v1273_v8 = vld [vmem:[%s1772_s1] sm:$0xff]   ;;  %v636_v9 = vld [vmem:[%s1774_s3 + $0x78] sm:$0xff]  ;;  %s1678_s10 = scalar_lea.vmem %s1776_s5, %s1029_s7 }
   0xe   : > { %1132 = vmatprep.subr.bf16.mxu0 %v1267_v1  ;;  %v1274_v4 = vld [vmem:[%s1415_s30] sm:$0xff]   ;;  %v635_v10 = vld [vmem:[%s1774_s3 + $0x70] sm:$0xff]  ;;  %1178 = vmatprep.subr.mxu1 %v636_v9  ;;  %v634_v11 = vld [vmem:[%s1774_s3 + $0x68] sm:$0xff] }
   0xf   : > { %1146 = vmatprep.mubr.bf16.mxu0 %v1274_v4  ;;  %1179 = vmatpush3.msra.mxu1 %v636_v9  ;;  %v633_v12 = vld [vmem:[%s1774_s3 + $0x60] sm:$0xff]  ;;  %v1275_v13 = vld [vmem:[%s1415_s30 + $0x8] sm:$0xff]   ;;  %v632_v14 = vld [vmem:[%s1774_s3 + $0x58] sm:$0xff] }
  0x10   : > { %1180 = vmatprep.subr.mxu1 %v635_v10  ;;  %v1276_v15 = vld [vmem:[%s1415_s30 + $0x10] sm:$0xff]   ;;  %v630_v17 = vld [vmem:[%s1774_s3 + $0x48] sm:$0xff]  ;;  %v629_v18 = vld [vmem:[%s1774_s3 + $0x40] sm:$0xff] }
  0x11   : > { %1133 = vmatpush3.bf16.msra.mxu0 %v1267_v1  ;;  %1181 = vmatpush3.msra.mxu1 %v635_v10  ;;  %v631_v16 = vld [vmem:[%s1774_s3 + $0x50] sm:$0xff]  ;;  %v1277_v19 = vld [vmem:[%s1415_s30 + $0x18] sm:$0xff]   ;;  %v1278_v21 = vld [vmem:[%s1415_s30 + $0x20] sm:$0xff]  }
  0x12   : > { %1134 = vmatprep.subr.bf16.mxu0 %v1268_v2  ;;  %1182 = vmatprep.subr.mxu1 %v634_v11  ;;  %v628_v20 = vld [vmem:[%s1774_s3 + $0x38] sm:$0xff]  ;;  %v627_v22 = vld [vmem:[%s1774_s3 + $0x30] sm:$0xff]  ;;  %v626_v23 = vld [vmem:[%s1774_s3 + $0x28] sm:$0xff] }
  0x13   : > { %1183 = vmatpush3.msra.mxu1 %v634_v11  ;;  %v1279_v24 = vld [vmem:[%s1415_s30 + $0x28] sm:$0xff]   ;;  %v1280_v25 = vld [vmem:[%s1415_s30 + $0x30] sm:$0xff]   ;;  %v1281_v26 = vld [vmem:[%s1415_s30 + $0x38] sm:$0xff]  }
  0x14   : > { %1184 = vmatprep.subr.mxu1 %v633_v12  ;;  %v1282_v27 = vld [vmem:[%s1415_s30 + $0x40] sm:$0xff]   ;;  %v1283_v28 = vld [vmem:[%s1415_s30 + $0x48] sm:$0xff]   ;;  %v1284_v29 = vld [vmem:[%s1415_s30 + $0x50] sm:$0xff]  }
  0x15   : > { %1135 = vmatpush3.bf16.msra.mxu0 %v1268_v2  ;;  %1185 = vmatpush3.msra.mxu1 %v633_v12  ;;  %v1285_v30 = vld [vmem:[%s1415_s30 + $0x58] sm:$0xff]   ;;  %v1286_v31 = vld [vmem:[%s1415_s30 + $0x60] sm:$0xff]   ;;  %v1287_v32 = vld [vmem:[%s1415_s30 + $0x68] sm:$0xff]  }
  0x16   : > { %1136 = vmatprep.subr.bf16.mxu0 %v1269_v3  ;;  %1186 = vmatprep.subr.mxu1 %v632_v14  ;;  %v1288_v33 = vld [vmem:[%s1415_s30 + $0x70] sm:$0xff]   ;;  %v1289_v34 = vld [vmem:[%s1415_s30 + $0x78] sm:$0xff]   ;;  %v625_v35 = vld [vmem:[%s1774_s3 + $0x20] sm:$0xff] }
  0x17   : > { %1187 = vmatpush3.msra.mxu1 %v632_v14  ;;  %v624_v36 = vld [vmem:[%s1774_s3 + $0x18] sm:$0xff]  ;;  %v623_v37 = vld [vmem:[%s1774_s3 + $0x10] sm:$0xff]  ;;  %v622_v38 = vld [vmem:[%s1774_s3 + $0x8] sm:$0xff] }
  0x18   : > { %1188 = vmatprep.subr.mxu1 %v631_v16  ;;  %v621_v39 = vld [vmem:[%s1774_s3] sm:$0xff] }
  0x19   : > { %1137 = vmatpush3.bf16.msra.mxu0 %v1269_v3  ;;  %1189 = vmatpush3.msra.mxu1 %v631_v16  ;;  %v1499_v41 = vld [vmem:[%s1773_s2] ss:$0 sm:$0xff] }
  0x1a   : > { %1138 = vmatprep.subr.bf16.mxu0 %v1270_v5  ;;  %1190 = vmatprep.subr.mxu1 %v630_v17 }
  0x1b   : > { %1191 = vmatpush3.msra.mxu1 %v630_v17 }
  0x1c   : > { %1192 = vmatprep.subr.mxu1 %v629_v18 }
  0x1d   : > { %1139 = vmatpush3.bf16.msra.mxu0 %v1270_v5  ;;  %1193 = vmatpush3.msra.mxu1 %v629_v18 }
  0x1e   : > { %1140 = vmatprep.subr.bf16.mxu0 %v1271_v6  ;;  %1194 = vmatprep.subr.mxu1 %v628_v20 }
  0x1f   : > { %1195 = vmatpush3.msra.mxu1 %v628_v20 }
  0x20   : > { %1196 = vmatprep.subr.mxu1 %v627_v22 }
  0x21   : > { %1141 = vmatpush3.bf16.msra.mxu0 %v1271_v6  ;;  %1197 = vmatpush3.msra.mxu1 %v627_v22 }
  0x22   : > { %1142 = vmatprep.subr.bf16.mxu0 %v1272_v7  ;;  %1198 = vmatprep.subr.mxu1 %v626_v23 }
  0x23   : > { %1199 = vmatpush3.msra.mxu1 %v626_v23 }
  0x24   : > { %1200 = vmatprep.subr.mxu1 %v625_v35 }
  0x25   : > { %1143 = vmatpush3.bf16.msra.mxu0 %v1272_v7  ;;  %1201 = vmatpush3.msra.mxu1 %v625_v35 }
  0x26   : > { %1144 = vmatprep.subr.bf16.mxu0 %v1273_v8  ;;  %1202 = vmatprep.subr.mxu1 %v624_v36 }
  0x27   : > { %1203 = vmatpush3.msra.mxu1 %v624_v36 }
  0x28   : > { %1204 = vmatprep.subr.mxu1 %v623_v37 }
  0x29   : > { %1145 = vmatpush3.bf16.msra.mxu0 %v1273_v8  ;;  %1205 = vmatpush3.msra.mxu1 %v623_v37 }
  0x2a   : > { %1206 = vmatprep.subr.mxu1 %v622_v38 }
  0x2b   : > { %1207 = vmatpush3.msra.mxu1 %v622_v38 }
  0x2c   : > { %1147 = vmatmul.mubr.bf16.vlgmr.msra.gmra.mxu0 %v1275_v13  ;;  %1208 = vmatprep.subr.mxu1 %v621_v39 }
  0x2d   : > { %1150 = vmatprep.mubr.bf16.mxu0 %v1276_v15  ;;  %1209 = vmatpush3.msra.mxu1 %v621_v39 }
  0x34   : > { %1151 = vmatmul.mubr.bf16.gmra.mxu0 %v1277_v19 }
  0x35   : > { %1154 = vmatprep.mubr.bf16.mxu0 %v1278_v21 }
  0x3c   : > { %1155 = vmatmul.mubr.bf16.gmra.mxu0 %v1279_v24 }
  0x3d   : > { %1158 = vmatprep.mubr.bf16.mxu0 %v1280_v25 }
  0x44   : > { %1159 = vmatmul.mubr.bf16.gmra.mxu0 %v1281_v26 }
  0x45   : > { %1162 = vmatprep.mubr.bf16.mxu0 %v1282_v27 }
  0x4c   : > { %1163 = vmatmul.mubr.bf16.gmra.mxu0 %v1283_v28 }
  0x4d   : > { %1166 = vmatprep.mubr.bf16.mxu0 %v1284_v29 }
  0x54   : > { %1167 = vmatmul.mubr.bf16.gmra.mxu0 %v1285_v30 }
  0x55   : > { %1170 = vmatprep.mubr.bf16.mxu0 %v1286_v31 }
  0x5c   : > { %1171 = vmatmul.mubr.bf16.gmra.mxu0 %v1287_v32 }
  0x5d   : > { %1174 = vmatprep.mubr.bf16.mxu0 %v1288_v33 }
  0x64   : > { %1175 = vmatmul.mubr.bf16.gmra.mxu0 %v1289_v34 }
  0xec   : > { %v1148_v40 = vpop.f32.mrf.mxu0 }
  0xed   : > { %v1507_v46 = vadd.f32 %v1148_v40, %v1499_v41 }
  0xee   : > { %v462_v42 = vpop.f32.mrf.mxu0 }
  0xef   : > { %v1502_v43 = vadd.f32 %v1499_v41, %v462_v42  ;;  %v591_v52 = vmul.f32 %v1507_v46, %v1507_v46 }
  0xf0   : > { %v1149_v44 = vpop.f32.mrf.mxu0 }
  0xf1   : > { %v589_v45 = vmul.f32 %v1502_v43, %v1502_v43  ;;  %v1513_v50 = vadd.f32 %v1149_v44, %v1499_v41 }
  0xf2   : > { %v465_v47 = vpop.f32.mrf.mxu0 }
  0xf3   : > { %v1510_v48 = vadd.f32 %v1499_v41, %v465_v47  ;;  %1210 = vmatprep.mubr.f32.mxu1 %v589_v45  ;;  %v592_v56 = vmul.f32 %v1513_v50, %v1513_v50 }
  0xf4   : > { %v1152_v49 = vpop.f32.mrf.mxu0 }
  0xf5   : > { %v590_v51 = vmul.f32 %v1510_v48, %v1510_v48  ;;  %v1527_v58 = vadd.f32 %v1152_v49, %v1499_v41 }
  0xf6   : > { %v478_v53 = vpop.f32.mrf.mxu0 }
  0xf7   : > { %v1520_v54 = vadd.f32 %v1499_v41, %v478_v53  ;;  %1211 = vmatmul.mubr.f32.vlgmr.msra.gmra.mxu1 %v590_v51  ;;  %v595_v0 = vmul.f32 %v1527_v58, %v1527_v58 }
  0xf8   : > { %v1153_v55 = vpop.f32.mrf.mxu0  ;;  %1213 = vmatprep.mubr.f32.mxu1 %v591_v52 }
  0xf9   : > { %v593_v57 = vmul.f32 %v1520_v54, %v1520_v54  ;;  %v1533_v62 = vadd.f32 %v1153_v55, %v1499_v41 }
  0xfa   : > { %v481_v59 = vpop.f32.mrf.mxu0 }
  0xfb   : > { %v1530_v60 = vadd.f32 %v1499_v41, %v481_v59  ;;  %1214 = vmatmul.mubr.f32.gmra.mxu1 %v592_v56  ;;  %v596_v4 = vmul.f32 %v1533_v62, %v1533_v62 }
  0xfc   : > { %v1156_v61 = vpop.f32.mrf.mxu0  ;;  %1216 = vmatprep.mubr.f32.mxu1 %v593_v57 }
  0xfd   : > { %v594_v63 = vmul.f32 %v1530_v60, %v1530_v60  ;;  %v1547_v6 = vadd.f32 %v1156_v61, %v1499_v41 }
  0xfe   : > { %v494_v1 = vpop.f32.mrf.mxu0 }
  0xff   : > { %v1540_v2 = vadd.f32 %v1499_v41, %v494_v1  ;;  %1217 = vmatmul.mubr.f32.gmra.mxu1 %v594_v63  ;;  %v599_v12 = vmul.f32 %v1547_v6, %v1547_v6 }
 0x100   : > { %v1157_v3 = vpop.f32.mrf.mxu0  ;;  %1219 = vmatprep.mubr.f32.mxu1 %v595_v0 }
 0x101   : > { %v597_v5 = vmul.f32 %v1540_v2, %v1540_v2  ;;  %v1553_v10 = vadd.f32 %v1157_v3, %v1499_v41 }
 0x102   : > { %v497_v7 = vpop.f32.mrf.mxu0 }
 0x103   : > { %v1550_v8 = vadd.f32 %v1499_v41, %v497_v7  ;;  %1220 = vmatmul.mubr.f32.gmra.mxu1 %v596_v4  ;;  %v600_v16 = vmul.f32 %v1553_v10, %v1553_v10 }
 0x104   : > { %v1160_v9 = vpop.f32.mrf.mxu0  ;;  %1222 = vmatprep.mubr.f32.mxu1 %v597_v5 }
 0x105   : > { %v598_v11 = vmul.f32 %v1550_v8, %v1550_v8  ;;  %v1567_v18 = vadd.f32 %v1160_v9, %v1499_v41 }
 0x106   : > { %v510_v13 = vpop.f32.mrf.mxu0 }
 0x107   : > { %v1560_v14 = vadd.f32 %v1499_v41, %v510_v13  ;;  %1223 = vmatmul.mubr.f32.gmra.mxu1 %v598_v11  ;;  %v603_v24 = vmul.f32 %v1567_v18, %v1567_v18 }
 0x108   : > { %v1161_v15 = vpop.f32.mrf.mxu0  ;;  %1225 = vmatprep.mubr.f32.mxu1 %v599_v12 }
 0x109   : > { %v601_v17 = vmul.f32 %v1560_v14, %v1560_v14  ;;  %v1573_v22 = vadd.f32 %v1161_v15, %v1499_v41 }
 0x10a   : > { %v513_v19 = vpop.f32.mrf.mxu0 }
 0x10b   : > { %v1570_v20 = vadd.f32 %v1499_v41, %v513_v19  ;;  %1226 = vmatmul.mubr.f32.gmra.mxu1 %v600_v16  ;;  %v604_v28 = vmul.f32 %v1573_v22, %v1573_v22 }
 0x10c   : > { %v1164_v21 = vpop.f32.mrf.mxu0  ;;  %1228 = vmatprep.mubr.f32.mxu1 %v601_v17 }
 0x10d   : > { %v602_v23 = vmul.f32 %v1570_v20, %v1570_v20  ;;  %v1587_v30 = vadd.f32 %v1164_v21, %v1499_v41 }
 0x10e   : > { %v526_v25 = vpop.f32.mrf.mxu0 }
 0x10f   : > { %v1580_v26 = vadd.f32 %v1499_v41, %v526_v25  ;;  %1229 = vmatmul.mubr.f32.gmra.mxu1 %v602_v23  ;;  %v607_v36 = vmul.f32 %v1587_v30, %v1587_v30 }
 0x110   : > { %v1165_v27 = vpop.f32.mrf.mxu0  ;;  %1231 = vmatprep.mubr.f32.mxu1 %v603_v24 }
 0x111   : > { %v605_v29 = vmul.f32 %v1580_v26, %v1580_v26  ;;  %v1593_v34 = vadd.f32 %v1165_v27, %v1499_v41  ;;  %v1664_v27 = vld [vmem:[%s1775_s4] ss:$0 sm:$0xff] }
 0x112   : > { %v529_v31 = vpop.f32.mrf.mxu0 }
 0x113   : > { %v1590_v32 = vadd.f32 %v1499_v41, %v529_v31  ;;  %1232 = vmatmul.mubr.f32.gmra.mxu1 %v604_v28  ;;  %v608_v40 = vmul.f32 %v1593_v34, %v1593_v34 }
 0x114   : > { %v1168_v33 = vpop.f32.mrf.mxu0  ;;  %1234 = vmatprep.mubr.f32.mxu1 %v605_v29 }
 0x115   : > { %v606_v35 = vmul.f32 %v1590_v32, %v1590_v32  ;;  %v1607_v44 = vadd.f32 %v1168_v33, %v1499_v41 }
 0x116   : > { %v542_v37 = vpop.f32.mrf.mxu0 }
 0x117   : > { %v1600_v38 = vadd.f32 %v1499_v41, %v542_v37  ;;  %1235 = vmatmul.mubr.f32.gmra.mxu1 %v606_v35  ;;  %v611_v53 = vmul.f32 %v1607_v44, %v1607_v44 }
 0x118   : > { %v1169_v39 = vpop.f32.mrf.mxu0  ;;  %1237 = vmatprep.mubr.f32.mxu1 %v607_v36 }
 0x119   : > { %v609_v42 = vmul.f32 %v1600_v38, %v1600_v38  ;;  %v1613_v51 = vadd.f32 %v1169_v39, %v1499_v41 }
 0x11a   : > { %v545_v45 = vpop.f32.mrf.mxu0 }
 0x11b   : > { %v1610_v47 = vadd.f32 %v1499_v41, %v545_v45  ;;  %1238 = vmatmul.mubr.f32.gmra.mxu1 %v608_v40  ;;  %v612_v59 = vmul.f32 %v1613_v51, %v1613_v51 }
 0x11c   : > { %v1172_v49 = vpop.f32.mrf.mxu0  ;;  %1240 = vmatprep.mubr.f32.mxu1 %v609_v42 }
 0x11d   : > { %v610_v52 = vmul.f32 %v1610_v47, %v1610_v47  ;;  %v1627_v63 = vadd.f32 %v1172_v49, %v1499_v41 }
 0x11e   : > { %v558_v55 = vpop.f32.mrf.mxu0 }
 0x11f   : > { %v1620_v56 = vadd.f32 %v1499_v41, %v558_v55  ;;  %1241 = vmatmul.mubr.f32.gmra.mxu1 %v610_v52  ;;  %v615_v7 = vmul.f32 %v1627_v63, %v1627_v63 }
 0x120   : > { %v1173_v57 = vpop.f32.mrf.mxu0  ;;  %1243 = vmatprep.mubr.f32.mxu1 %v611_v53 }
 0x121   : > { %v613_v61 = vmul.f32 %v1620_v56, %v1620_v56  ;;  %v1633_v4 = vadd.f32 %v1173_v57, %v1499_v41 }
 0x122   : > { %v561_v0 = vpop.f32.mrf.mxu0 }
 0x123   : > { %v1630_v1 = vadd.f32 %v1499_v41, %v561_v0  ;;  %1244 = vmatmul.mubr.f32.gmra.mxu1 %v612_v59  ;;  %v616_v13 = vmul.f32 %v1633_v4, %v1633_v4 }
 0x124   : > { %v1176_v3 = vpop.f32.mrf.mxu0  ;;  %1246 = vmatprep.mubr.f32.mxu1 %v613_v61 }
 0x125   : > { %v614_v5 = vmul.f32 %v1630_v1, %v1630_v1  ;;  %v1647_v16 = vadd.f32 %v1176_v3, %v1499_v41 }
 0x126   : > { %v574_v9 = vpop.f32.mrf.mxu0 }
 0x127   : > { %v1640_v11 = vadd.f32 %v1499_v41, %v574_v9  ;;  %1247 = vmatmul.mubr.f32.gmra.mxu1 %v614_v5  ;;  %v619_v24 = vmul.f32 %v1647_v16, %v1647_v16 }
 0x128   : > { %v1177_v12 = vpop.f32.mrf.mxu0  ;;  %1249 = vmatprep.mubr.f32.mxu1 %v615_v7 }
 0x129   : > { %v617_v15 = vmul.f32 %v1640_v11, %v1640_v11  ;;  %v1653_v21 = vadd.f32 %v1177_v12, %v1499_v41 }
 0x12a   : > { %v577_v17 = vpop.f32.mrf.mxu0 }
 0x12b   : > { %v1650_v19 = vadd.f32 %v1499_v41, %v577_v17  ;;  %1250 = vmatmul.mubr.f32.gmra.mxu1 %v616_v13  ;;  %v620_v25 = vmul.f32 %v1653_v21, %v1653_v21 }
 0x12c   : > { %1252 = vmatprep.mubr.f32.mxu1 %v617_v15 }
 0x12d   : > { %v618_v23 = vmul.f32 %v1650_v19, %v1650_v19 }
 0x12f   : > { %1253 = vmatmul.mubr.f32.gmra.mxu1 %v618_v23 }
 0x130   : > { %1255 = vmatprep.mubr.f32.mxu1 %v619_v24 }
 0x133   : > { %1256 = vmatmul.mubr.f32.gmra.mxu1 %v620_v25 }
 0x1b7   : > { %v1212_v28 = vpop.f32.mrf.mxu1 }
 0x1b8   : > { %v716_v41 = vadd.f32 %v1212_v28, %v1664_v27 }
 0x1b9   : > { %v710_v29 = vpop.f32.mrf.mxu1 }
 0x1ba   : > { %1290 = vrsqrt.f32 %v716_v41  ;;  %v711_v31 = vadd.f32 %v1664_v27, %v710_v29 }
 0x1bb   : > { %v1215_v33 = vpop.f32.mrf.mxu1 }
 0x1bc   : > { %1292 = vrsqrt.f32 %v711_v31  ;;  %v726_v35 = vadd.f32 %v1215_v33, %v1664_v27 }
 0x1bd   : > { %v720_v36 = vpop.f32.mrf.mxu1 }
 0x1be   : > { %1294 = vrsqrt.f32 %v726_v35  ;;  %v721_v37 = vadd.f32 %v1664_v27, %v720_v36 }
 0x1bf   : > { %v1218_v39 = vpop.f32.mrf.mxu1 }
 0x1c0   : > { %1296 = vrsqrt.f32 %v721_v37  ;;  %v736_v40 = vadd.f32 %v1218_v39, %v1664_v27 }
 0x1c1   : > { %v730_v42 = vpop.f32.mrf.mxu1 }
 0x1c2   : > { %1298 = vrsqrt.f32 %v736_v40  ;;  %v731_v45 = vadd.f32 %v1664_v27, %v730_v42 }
 0x1c3   : > { %v1221_v49 = vpop.f32.mrf.mxu1 }
 0x1c4   : > { %1300 = vrsqrt.f32 %v731_v45  ;;  %v746_v52 = vadd.f32 %v1221_v49, %v1664_v27 }
 0x1c5   : > { %v740_v53 = vpop.f32.mrf.mxu1 }
 0x1c6   : > { %1302 = vrsqrt.f32 %v746_v52  ;;  %v741_v55 = vadd.f32 %v1664_v27, %v740_v53 }
 0x1c7   : > { %v1291_v57 = vpop.eup %1290  ;;  %v1224_v59 = vpop.f32.mrf.mxu1 }
 0x1c8   : > { %v902_v61 = vmul.f32 %v1291_v57, %v1510_v48  ;;  %1304 = vrsqrt.f32 %v741_v55  ;;  %v756_v0 = vadd.f32 %v1224_v59, %v1664_v27 }
 0x1c9   : > { %v1293_v3 = vpop.eup %1292  ;;  %v750_v5 = vpop.f32.mrf.mxu1 }
 0x1ca   : > { %934 = vst [vmem:[%s1678_s10 + $0x8] sm:$0xff] %v902_v61  ;;  %v901_v7 = vmul.f32 %v1293_v3, %v1502_v43  ;;  %1306 = vrsqrt.f32 %v756_v0  ;;  %v751_v9 = vadd.f32 %v1664_v27, %v750_v5 }
 0x1cb   : > { %v1295_v12 = vpop.eup %1294  ;;  %v1227_v13 = vpop.f32.mrf.mxu1 }
 0x1cc   : > { %933 = vst [vmem:[%s1678_s10] sm:$0xff] %v901_v7  ;;  %v904_v15 = vmul.f32 %v1295_v12, %v1513_v50  ;;  %1308 = vrsqrt.f32 %v751_v9  ;;  %v766_v48 = vadd.f32 %v1227_v13, %v1664_v27 }
 0x1cd   : > { %v1297_v17 = vpop.eup %1296  ;;  %v760_v23 = vpop.f32.mrf.mxu1 }
 0x1ce   : > { %936 = vst [vmem:[%s1678_s10 + $0x18] sm:$0xff] %v904_v15  ;;  %v903_v24 = vmul.f32 %v1297_v17, %v1507_v46  ;;  %1310 = vrsqrt.f32 %v766_v48  ;;  %v761_v43 = vadd.f32 %v1664_v27, %v760_v23 }
 0x1cf   : > { %v1299_v25 = vpop.eup %1298  ;;  %v1230_v28 = vpop.f32.mrf.mxu1 }
 0x1d0   : > { %935 = vst [vmem:[%s1678_s10 + $0x10] sm:$0xff] %v903_v24  ;;  %v906_v41 = vmul.f32 %v1299_v25, %v1530_v60  ;;  %1312 = vrsqrt.f32 %v761_v43  ;;  %v776_v50 = vadd.f32 %v1230_v28, %v1664_v27 }
 0x1d1   : > { %v1301_v29 = vpop.eup %1300  ;;  %v770_v31 = vpop.f32.mrf.mxu1 }
 0x1d2   : > { %938 = vst [vmem:[%s1678_s10 + $0x28] sm:$0xff] %v906_v41  ;;  %v905_v33 = vmul.f32 %v1301_v29, %v1520_v54  ;;  %1314 = vrsqrt.f32 %v776_v50  ;;  %v771_v46 = vadd.f32 %v1664_v27, %v770_v31 }
 0x1d3   : > { %v1303_v35 = vpop.eup %1302  ;;  %v1233_v36 = vpop.f32.mrf.mxu1 }
 0x1d4   : > { %937 = vst [vmem:[%s1678_s10 + $0x20] sm:$0xff] %v905_v33  ;;  %v908_v37 = vmul.f32 %v1303_v35, %v1533_v62  ;;  %1316 = vrsqrt.f32 %v771_v46  ;;  %v786_v60 = vadd.f32 %v1233_v36, %v1664_v27 }
 0x1d5   : > { %v1305_v39 = vpop.eup %1304  ;;  %v780_v40 = vpop.f32.mrf.mxu1 }
 0x1d6   : > { %940 = vst [vmem:[%s1678_s10 + $0x38] sm:$0xff] %v908_v37  ;;  %v907_v42 = vmul.f32 %v1305_v39, %v1527_v58  ;;  %1318 = vrsqrt.f32 %v786_v60  ;;  %v781_v54 = vadd.f32 %v1664_v27, %v780_v40 }
 0x1d7   : > { %v1307_v45 = vpop.eup %1306  ;;  %v1236_v49 = vpop.f32.mrf.mxu1 }
 0x1d8   : > { %939 = vst [vmem:[%s1678_s10 + $0x30] sm:$0xff] %v907_v42  ;;  %v910_v52 = vmul.f32 %v1307_v45, %v1550_v8  ;;  %1320 = vrsqrt.f32 %v781_v54  ;;  %v796_v62 = vadd.f32 %v1236_v49, %v1664_v27 }
 0x1d9   : > { %v1309_v53 = vpop.eup %1308  ;;  %v790_v55 = vpop.f32.mrf.mxu1 }
 0x1da   : > { %942 = vst [vmem:[%s1678_s10 + $0x48] sm:$0xff] %v910_v52  ;;  %v909_v57 = vmul.f32 %v1309_v53, %v1540_v2  ;;  %1322 = vrsqrt.f32 %v796_v62  ;;  %v791_v58 = vadd.f32 %v1664_v27, %v790_v55 }
 0x1db   : > { %v1311_v59 = vpop.eup %1310  ;;  %v1239_v61 = vpop.f32.mrf.mxu1 }
 0x1dc   : > { %941 = vst [vmem:[%s1678_s10 + $0x40] sm:$0xff] %v909_v57  ;;  %v912_v0 = vmul.f32 %v1311_v59, %v1553_v10  ;;  %1324 = vrsqrt.f32 %v791_v58  ;;  %v806_v8 = vadd.f32 %v1239_v61, %v1664_v27 }
 0x1dd   : > { %v1313_v3 = vpop.eup %1312  ;;  %v800_v5 = vpop.f32.mrf.mxu1 }
 0x1de   : > { %944 = vst [vmem:[%s1678_s10 + $0x58] sm:$0xff] %v912_v0  ;;  %v911_v7 = vmul.f32 %v1313_v3, %v1547_v6  ;;  %1326 = vrsqrt.f32 %v806_v8  ;;  %v801_v2 = vadd.f32 %v1664_v27, %v800_v5 }
 0x1df   : > { %v1315_v9 = vpop.eup %1314  ;;  %v1242_v12 = vpop.f32.mrf.mxu1 }
 0x1e0   : > { %943 = vst [vmem:[%s1678_s10 + $0x50] sm:$0xff] %v911_v7  ;;  %v914_v13 = vmul.f32 %v1315_v9, %v1570_v20  ;;  %1328 = vrsqrt.f32 %v801_v2  ;;  %v816_v10 = vadd.f32 %v1242_v12, %v1664_v27 }
 0x1e1   : > { %v1317_v15 = vpop.eup %1316  ;;  %v810_v48 = vpop.f32.mrf.mxu1 }
 0x1e2   : > { %946 = vst [vmem:[%s1678_s10 + $0x68] sm:$0xff] %v914_v13  ;;  %v913_v17 = vmul.f32 %v1317_v15, %v1560_v14  ;;  %1330 = vrsqrt.f32 %v816_v10  ;;  %v811_v6 = vadd.f32 %v1664_v27, %v810_v48 }
 0x1e3   : > { %v1319_v23 = vpop.eup %1318  ;;  %v1245_v24 = vpop.f32.mrf.mxu1 }
 0x1e4   : > { %945 = vst [vmem:[%s1678_s10 + $0x60] sm:$0xff] %v913_v17  ;;  %v916_v43 = vmul.f32 %v1319_v23, %v1573_v22  ;;  %1332 = vrsqrt.f32 %v811_v6  ;;  %v826_v20 = vadd.f32 %v1245_v24, %v1664_v27 }
 0x1e5   : > { %v1321_v25 = vpop.eup %1320  ;;  %v820_v28 = vpop.f32.mrf.mxu1 }
 0x1e6   : > { %948 = vst [vmem:[%s1678_s10 + $0x78] sm:$0xff] %v916_v43  ;;  %v915_v41 = vmul.f32 %v1321_v25, %v1567_v18  ;;  %1334 = vrsqrt.f32 %v826_v20  ;;  %v821_v14 = vadd.f32 %v1664_v27, %v820_v28 }
 0x1e7   : > { %v1323_v50 = vpop.eup %1322  ;;  %v1248_v29 = vpop.f32.mrf.mxu1 }
 0x1e8   : > { %947 = vst [vmem:[%s1678_s10 + $0x70] sm:$0xff] %v915_v41  ;;  %v918_v31 = vmul.f32 %v1323_v50, %v1590_v32  ;;  %1336 = vrsqrt.f32 %v821_v14  ;;  %v836_v22 = vadd.f32 %v1248_v29, %v1664_v27 }
 0x1e9   : > { %v1325_v33 = vpop.eup %1324  ;;  %v830_v46 = vpop.f32.mrf.mxu1 }
 0x1ea   : > { %950 = vst [vmem:[%s1678_s10 + $0x88] sm:$0xff] %v918_v31  ;;  %v917_v35 = vmul.f32 %v1325_v33, %v1580_v26  ;;  %1338 = vrsqrt.f32 %v836_v22  ;;  %v831_v18 = vadd.f32 %v1664_v27, %v830_v46 }
 0x1eb   : > { %v1327_v36 = vpop.eup %1326  ;;  %v1251_v37 = vpop.f32.mrf.mxu1 }
 0x1ec   : > { %949 = vst [vmem:[%s1678_s10 + $0x80] sm:$0xff] %v917_v35  ;;  %v920_v60 = vmul.f32 %v1327_v36, %v1593_v34  ;;  %1340 = vrsqrt.f32 %v831_v18  ;;  %v846_v32 = vadd.f32 %v1251_v37, %v1664_v27 }
 0x1ed   : > { %v1329_v39 = vpop.eup %1328  ;;  %v840_v40 = vpop.f32.mrf.mxu1 }
 0x1ee   : > { %952 = vst [vmem:[%s1678_s10 + $0x98] sm:$0xff] %v920_v60  ;;  %v919_v42 = vmul.f32 %v1329_v39, %v1587_v30  ;;  %1342 = vrsqrt.f32 %v846_v32  ;;  %v841_v26 = vadd.f32 %v1664_v27, %v840_v40 }
 0x1ef   : > { %v1331_v54 = vpop.eup %1330  ;;  %v1254_v45 = vpop.f32.mrf.mxu1 }
 0x1f0   : > { %951 = vst [vmem:[%s1678_s10 + $0x90] sm:$0xff] %v919_v42  ;;  %v922_v49 = vmul.f32 %v1331_v54, %v1610_v47  ;;  %1344 = vrsqrt.f32 %v841_v26  ;;  %v856_v34 = vadd.f32 %v1254_v45, %v1664_v27 }
 0x1f1   : > { %v1333_v52 = vpop.eup %1332  ;;  %v850_v62 = vpop.f32.mrf.mxu1 }
 0x1f2   : > { %954 = vst [vmem:[%s1678_s10 + $0xa8] sm:$0xff] %v922_v49  ;;  %v921_v53 = vmul.f32 %v1333_v52, %v1600_v38  ;;  %1346 = vrsqrt.f32 %v856_v34  ;;  %v851_v30 = vadd.f32 %v1664_v27, %v850_v62 }
 0x1f3   : > { %v1335_v55 = vpop.eup %1334  ;;  %v1257_v57 = vpop.f32.mrf.mxu1 }
 0x1f4   : > { %953 = vst [vmem:[%s1678_s10 + $0xa0] sm:$0xff] %v921_v53  ;;  %v924_v58 = vmul.f32 %v1335_v55, %v1613_v51  ;;  %1348 = vrsqrt.f32 %v851_v30  ;;  %v866_v47 = vadd.f32 %v1257_v57, %v1664_v27 }
 0x1f5   : > { %v1337_v59 = vpop.eup %1336  ;;  %v860_v61 = vpop.f32.mrf.mxu1 }
 0x1f6   : > { %956 = vst [vmem:[%s1678_s10 + $0xb8] sm:$0xff] %v924_v58  ;;  %v923_v38 = vmul.f32 %v1337_v59, %v1607_v44  ;;  %1350 = vrsqrt.f32 %v866_v47  ;;  %v861_v0 = vadd.f32 %v1664_v27, %v860_v61 }
 0x1f7   : > { %v1339_v8 = vpop.eup %1338 }
 0x1f8   : > { %955 = vst [vmem:[%s1678_s10 + $0xb0] sm:$0xff] %v923_v38  ;;  %v926_v3 = vmul.f32 %v1339_v8, %v1630_v1  ;;  %1352 = vrsqrt.f32 %v861_v0 }
 0x1f9   : > { %v1341_v51 = vpop.eup %1340 }
 0x1fa   : > { %958 = vst [vmem:[%s1678_s10 + $0xc8] sm:$0xff] %v926_v3  ;;  %v925_v5 = vmul.f32 %v1341_v51, %v1620_v56 }
 0x1fb   : > { %v1343_v7 = vpop.eup %1342 }
 0x1fc   : > { %957 = vst [vmem:[%s1678_s10 + $0xc0] sm:$0xff] %v925_v5  ;;  %v928_v44 = vmul.f32 %v1343_v7, %v1633_v4 }
 0x1fd   : > { %v1345_v2 = vpop.eup %1344 }
 0x1fe   : > { %960 = vst [vmem:[%s1678_s10 + $0xd8] sm:$0xff] %v928_v44  ;;  %v927_v27 = vmul.f32 %v1345_v2, %v1627_v63 }
 0x1ff   : > { %v1347_v9 = vpop.eup %1346 }
 0x200   : > { %959 = vst [vmem:[%s1678_s10 + $0xd0] sm:$0xff] %v927_v27  ;;  %v930_v1 = vmul.f32 %v1347_v9, %v1650_v19 }
 0x201   : > { %v1349_v12 = vpop.eup %1348 }
 0x202   : > { %962 = vst [vmem:[%s1678_s10 + $0xe8] sm:$0xff] %v930_v1  ;;  %v929_v13 = vmul.f32 %v1349_v12, %v1640_v11 }
 0x203   : > { %v1351_v10 = vpop.eup %1350 }
 0x204   : > { %961 = vst [vmem:[%s1678_s10 + $0xe0] sm:$0xff] %v929_v13  ;;  %v932_v56 = vmul.f32 %v1351_v10, %v1653_v21 }
 0x205   : > { %v1353_v15 = vpop.eup %1352 }
 0x206   : > { %964 = vst [vmem:[%s1678_s10 + $0xf8] sm:$0xff] %v932_v56  ;;  %v931_v4 = vmul.f32 %v1353_v15, %v1647_v16 }
 0x208   : > { %963 = vst [vmem:[%s1678_s10 + $0xf0] sm:$0xff] %v931_v4 }
 0x209 PF: > { %s15_s18 = sadd.s32 1, %s1360_s18  }
 0x20a   : > { %p12_p4 = scmp.ge.s32.totalorder %s15_s18, 4  }
 0x20c   :  { %14 = sbr.rel (!%p12_p4) target bundleno = 1 (0x1), region = 70 }

// kernel: _lambda_.5
= control target key start
LH: loop header
LB: loop body
LE: loop exit
PB: predicated region body
PF: predicated region fallthrough
CT: control target
= control target key end

     0   :  { %s4512_s1 = inlined_call_operand.vmem [shape: bf16[1664,128], index: 1, kind: input, shape index: {}]   ;;  %s4513_s0 = inlined_call_operand.vmem [shape: bf16[128,1664], index: 0, kind: input, shape index: {}]   ;;  %s4514_s2 = inlined_call_operand.vmem [shape: f32[1,128], index: 2, kind: input, shape index: {}]   ;;  %s4515_s3 = inlined_call_operand.vmem [shape: f32[128,128], index: 3, kind: input, shape index: {}]   ;;  %s4516_s4 = inlined_call_operand.vmem [shape: f32[1,128], index: 4, kind: input, shape index: {}]   ;;  %s4517_s5 = inlined_call_operand.vmem [shape: f32[128,128], index: 5, kind: output, shape index: {}]  }
   0x1   :  { %v3145_v0 = vld [vmem:[%s4512_s1 + $0x78] sm:$0xff]   ;;  %v3149_v4 = vld [vmem:[%s4512_s1 + $0x70] sm:$0xff]   ;;  %v3153_v8 = vld [vmem:[%s4512_s1 + $0x68] sm:$0xff]  }
   0x2   :  { %v3146_v1 = vld [vmem:[%s4512_s1 + $0x38] sm:$0xff]   ;;  %2625 = vmatprep.subr.bf16.mxu0 %v3145_v0  ;;  %v3150_v5 = vld [vmem:[%s4512_s1 + $0x30] sm:$0xff]   ;;  %v3154_v9 = vld [vmem:[%s4512_s1 + $0x28] sm:$0xff]  }
   0x3   :  { %v3147_v2 = vld [vmem:[%s4512_s1 + $0xf8] sm:$0xff]   ;;  %2626 = vmatpush3.bf16.msra.mxu0 %v3146_v1  ;;  %v3151_v6 = vld [vmem:[%s4512_s1 + $0xf0] sm:$0xff]   ;;  %v3155_v10 = vld [vmem:[%s4512_s1 + $0xe8] sm:$0xff]  }
   0x4   :  { %v3148_v3 = vld [vmem:[%s4512_s1 + $0xb8] sm:$0xff]   ;;  %2689 = vmatprep.subr.bf16.mxu1 %v3147_v2  ;;  %2627 = vmatprep.subr.bf16.mxu0 %v3149_v4  ;;  %v3152_v7 = vld [vmem:[%s4512_s1 + $0xb0] sm:$0xff]   ;;  %v3156_v11 = vld [vmem:[%s4512_s1 + $0xa8] sm:$0xff]  }
   0x5   :  { %2690 = vmatpush3.bf16.msra.mxu1 %v3148_v3  ;;  %v3157_v12 = vld [vmem:[%s4512_s1 + $0x60] sm:$0xff]   ;;  %v3161_v16 = vld [vmem:[%s4512_s1 + $0x58] sm:$0xff]   ;;  %v3165_v20 = vld [vmem:[%s4512_s1 + $0x50] sm:$0xff]  }
   0x6   :  { %2691 = vmatprep.subr.bf16.mxu1 %v3151_v6  ;;  %v3158_v13 = vld [vmem:[%s4512_s1 + $0x20] sm:$0xff]   ;;  %v3162_v17 = vld [vmem:[%s4512_s1 + $0x18] sm:$0xff]   ;;  %v3166_v21 = vld [vmem:[%s4512_s1 + $0x10] sm:$0xff]  }
   0x7   :  { %2628 = vmatpush3.bf16.msra.mxu0 %v3150_v5  ;;  %v3159_v14 = vld [vmem:[%s4512_s1 + $0xe0] sm:$0xff]   ;;  %v3163_v18 = vld [vmem:[%s4512_s1 + $0xd8] sm:$0xff]   ;;  %v3167_v22 = vld [vmem:[%s4512_s1 + $0xd0] sm:$0xff]  }
   0x8   :  { %2629 = vmatprep.subr.bf16.mxu0 %v3153_v8  ;;  %v3160_v15 = vld [vmem:[%s4512_s1 + $0xa0] sm:$0xff]   ;;  %v3164_v19 = vld [vmem:[%s4512_s1 + $0x98] sm:$0xff]   ;;  %v3168_v23 = vld [vmem:[%s4512_s1 + $0x90] sm:$0xff]  }
   0x9   :  { %2692 = vmatpush3.bf16.msra.mxu1 %v3152_v7  ;;  %v3169_v24 = vld [vmem:[%s4512_s1 + $0x48] sm:$0xff]   ;;  %v3173_v28 = vld [vmem:[%s4512_s1 + $0x40] sm:$0xff]   ;;  %v3180_v34 = vld [vmem:[%s4512_s1 + $0x178] sm:$0xff]  }
   0xa   :  { %2693 = vmatprep.subr.bf16.mxu1 %v3155_v10  ;;  %v3170_v25 = vld [vmem:[%s4512_s1 + $0x8] sm:$0xff]   ;;  %v3174_v29 = vld [vmem:[%s4512_s1] sm:$0xff]   ;;  %v3184_v37 = vld [vmem:[%s4512_s1 + $0x138] sm:$0xff]  }
   0xb   :  { %2630 = vmatpush3.bf16.msra.mxu0 %v3154_v9  ;;  %v3171_v26 = vld [vmem:[%s4512_s1 + $0xc8] sm:$0xff]   ;;  %v3175_v30 = vld [vmem:[%s4512_s1 + $0xc0] sm:$0xff]   ;;  %v3188_v40 = vld [vmem:[%s4512_s1 + $0x170] sm:$0xff]  }
   0xc   :  { %2631 = vmatprep.subr.bf16.mxu0 %v3157_v12  ;;  %v3172_v27 = vld [vmem:[%s4512_s1 + $0x88] sm:$0xff]   ;;  %v3176_v31 = vld [vmem:[%s4513_s0] ss:$52 sps:$4 sm:$0xff]   ;;  %v3178_v32 = vld [vmem:[%s4513_s0 + $0x4] ss:$52 sps:$4 sm:$0xff]  }
   0xd   :  { %2694 = vmatpush3.bf16.msra.mxu1 %v3156_v11  ;;  %v3179_v33 = vld [vmem:[%s4512_s1 + $0x80] sm:$0xff]   ;;  %1532 = vmatprep.mubr.bf16.mxu0 %v3178_v32  ;;  %v3181_v35 = vld [vmem:[%s4513_s0 + $0x8] ss:$52 sps:$4 sm:$0xff]   ;;  %v3191_v42 = vld [vmem:[%s4512_s1 + $0x130] sm:$0xff]  }
   0xe   :  { %2695 = vmatprep.subr.bf16.mxu1 %v3159_v14  ;;  %v3183_v36 = vld [vmem:[%s4513_s0 + $0xc] ss:$52 sps:$4 sm:$0xff]   ;;  %v3187_v39 = vld [vmem:[%s4513_s0 + $0x68] ss:$52 sps:$4 sm:$0xff]   ;;  %v3192_v43 = vld [vmem:[%s4513_s0 + $0x70] ss:$52 sps:$4 sm:$0xff]  }
   0xf   :  { %2632 = vmatpush3.bf16.msra.mxu0 %v3158_v13  ;;  %1629 = vmatprep.mubr.bf16.mxu1 %v3183_v36  ;;  %v3185_v38 = vld [vmem:[%s4513_s0 + $0x6c] ss:$52 sps:$4 sm:$0xff]   ;;  %v3189_v41 = vld [vmem:[%s4513_s0 + $0x74] ss:$52 sps:$4 sm:$0xff]   ;;  %v3197_v46 = vld [vmem:[%s4513_s0 + $0xdc] ss:$52 sps:$4 sm:$0xff]  }
  0x10   :  { %2633 = vmatprep.subr.bf16.mxu0 %v3161_v16  ;;  %v3193_v44 = vld [vmem:[%s4513_s0 + $0xd4] ss:$52 sps:$4 sm:$0xff]   ;;  %v3195_v48 = vld [vmem:[%s4513_s0 + $0xd0] ss:$52 sps:$4 sm:$0xff]   ;;  %v3200_v51 = vld [vmem:[%s4513_s0 + $0xd8] ss:$52 sps:$4 sm:$0xff]  }
  0x11   :  { %2696 = vmatpush3.bf16.msra.mxu1 %v3160_v15  ;;  %v3196_v45 = vld [vmem:[%s4512_s1 + $0x168] sm:$0xff]   ;;  %v3201_v49 = vld [vmem:[%s4513_s0 + $0x13c] ss:$52 sps:$4 sm:$0xff]   ;;  %v3204_v50 = vld [vmem:[%s4512_s1 + $0x160] sm:$0xff]  }
  0x12   :  { %2697 = vmatprep.subr.bf16.mxu1 %v3163_v18  ;;  %v3199_v47 = vld [vmem:[%s4512_s1 + $0x128] sm:$0xff]   ;;  %v3207_v52 = vld [vmem:[%s4512_s1 + $0x120] sm:$0xff]   ;;  %v3212_v54 = vld [vmem:[%s4512_s1 + $0x158] sm:$0xff]  }
  0x13   :  { %2634 = vmatpush3.bf16.msra.mxu0 %v3162_v17  ;;  %v3205_v53 = vld [vmem:[%s4513_s0 + $0x144] ss:$52 sps:$4 sm:$0xff]   ;;  %v3208_v60 = vld [vmem:[%s4513_s0 + $0x140] ss:$52 sps:$4 sm:$0xff]   ;;  %v3218_v4 = vld [vmem:[%s4513_s0 + $0x1a8] ss:$52 sps:$4 sm:$0xff]  }
  0x14   :  { %2635 = vmatprep.subr.bf16.mxu0 %v3165_v20  ;;  %v3203_v55 = vld [vmem:[%s4513_s0 + $0x138] ss:$52 sps:$4 sm:$0xff]   ;;  %v3219_v61 = vld [vmem:[%s4512_s1 + $0x1f0] sm:$0xff]   ;;  %v3231_v7 = vld [vmem:[%s4512_s1 + $0x1e0] sm:$0xff]  }
  0x15   :  { %2698 = vmatpush3.bf16.msra.mxu1 %v3164_v19  ;;  %v3213_v56 = vld [vmem:[%s4512_s1 + $0x1f8] sm:$0xff]   ;;  %v3214_v62 = vld [vmem:[%s4513_s0 + $0x1ac] ss:$52 sps:$4 sm:$0xff]   ;;  %v3222_v63 = vld [vmem:[%s4512_s1 + $0x1b0] sm:$0xff]  }
  0x16   :  { %2699 = vmatprep.subr.bf16.mxu1 %v3167_v22  ;;  %v3209_v57 = vld [vmem:[%s4513_s0 + $0x1a4] ss:$52 sps:$4 sm:$0xff]   ;;  %v3224_v0 = vld [vmem:[%s4512_s1 + $0x150] sm:$0xff]   ;;  %v3220_v2 = vld [vmem:[%s4513_s0 + $0x20c] ss:$52 sps:$4 sm:$0xff]  }
  0x17   :  { %2636 = vmatpush3.bf16.msra.mxu0 %v3166_v21  ;;  %v3216_v58 = vld [vmem:[%s4512_s1 + $0x118] sm:$0xff]   ;;  %v3211_v1 = vld [vmem:[%s4513_s0 + $0x1a0] ss:$52 sps:$4 sm:$0xff]   ;;  %v3229_v5 = vld [vmem:[%s4512_s1 + $0x1e8] sm:$0xff]  }
  0x18   :  { %2637 = vmatprep.subr.bf16.mxu0 %v3169_v24  ;;  %v3217_v59 = vld [vmem:[%s4512_s1 + $0x1b8] sm:$0xff]   ;;  %v3227_v3 = vld [vmem:[%s4512_s1 + $0x110] sm:$0xff]   ;;  %v3230_v6 = vld [vmem:[%s4512_s1 + $0x1a8] sm:$0xff]  }
  0x19   :  { %2700 = vmatpush3.bf16.msra.mxu1 %v3168_v23  ;;  %v3225_v8 = vld [vmem:[%s4513_s0 + $0x214] ss:$52 sps:$4 sm:$0xff]   ;;  %v3234_v9 = vld [vmem:[%s4512_s1 + $0x1a0] sm:$0xff]   ;;  %v3237_v15 = vld [vmem:[%s4513_s0 + $0x27c] ss:$52 sps:$4 sm:$0xff]  }
  0x1a   :  { %2701 = vmatprep.subr.bf16.mxu1 %v3171_v26  ;;  %v3236_v10 = vld [vmem:[%s4512_s1 + $0x148] sm:$0xff]   ;;  %v3228_v12 = vld [vmem:[%s4513_s0 + $0x210] ss:$52 sps:$4 sm:$0xff]   ;;  %v3241_v16 = vld [vmem:[%s4512_s1 + $0x1d8] sm:$0xff]  }
  0x1b   :  { %2638 = vmatpush3.bf16.msra.mxu0 %v3170_v25  ;;  %v3223_v11 = vld [vmem:[%s4513_s0 + $0x208] ss:$52 sps:$4 sm:$0xff]   ;;  %v3243_v18 = vld [vmem:[%s4512_s1 + $0x1d0] sm:$0xff]   ;;  %v3248_v21 = vld [vmem:[%s4512_s1 + $0x140] sm:$0xff]  }
  0x1c   :  { %2639 = vmatprep.subr.bf16.mxu0 %v3173_v28  ;;  %v3232_v13 = vld [vmem:[%s4513_s0 + $0x274] ss:$52 sps:$4 sm:$0xff]   ;;  %v3242_v17 = vld [vmem:[%s4512_s1 + $0x198] sm:$0xff]   ;;  %v3235_v19 = vld [vmem:[%s4513_s0 + $0x270] ss:$52 sps:$4 sm:$0xff]  }
  0x1d   :  { %2702 = vmatpush3.bf16.msra.mxu1 %v3172_v27  ;;  %v3239_v14 = vld [vmem:[%s4512_s1 + $0x108] sm:$0xff]   ;;  %v3246_v20 = vld [vmem:[%s4512_s1 + $0x190] sm:$0xff]   ;;  %v3251_v24 = vld [vmem:[%s4512_s1 + $0x100] sm:$0xff]  }
  0x1e   :  { %2703 = vmatprep.subr.bf16.mxu1 %v3175_v30  ;;  %v3244_v22 = vld [vmem:[%s4513_s0 + $0x2dc] ss:$52 sps:$4 sm:$0xff]   ;;  %v3240_v23 = vld [vmem:[%s4513_s0 + $0x278] ss:$52 sps:$4 sm:$0xff]   ;;  %v3255_v28 = vld [vmem:[%s4512_s1 + $0x1c0] sm:$0xff]  }
  0x1f   :  { %2640 = vmatpush3.bf16.msra.mxu0 %v3174_v29  ;;  %v3249_v25 = vld [vmem:[%s4513_s0 + $0x2e4] ss:$52 sps:$4 sm:$0xff]   ;;  %v3253_v26 = vld [vmem:[%s4512_s1 + $0x1c8] sm:$0xff]  }
  0x20   :  { %2753 = vmatprep.subr.bf16.mxu0 %v3180_v34  ;;  %v3254_v27 = vld [vmem:[%s4512_s1 + $0x188] sm:$0xff]   ;;  %v3259_v30 = vld [vmem:[%s4512_s1 + $0x180] sm:$0xff]   ;;  %v3263_v34 = vld [vmem:[%s4513_s0 + $0x1c] ss:$52 sps:$4 sm:$0xff]  }
  0x21   :  { %2704 = vmatpush3.bf16.msra.mxu1 %v3179_v33  ;;  %v3247_v29 = vld [vmem:[%s4513_s0 + $0x2d8] ss:$52 sps:$4 sm:$0xff]   ;;  %v3258_v32 = vld [vmem:[%s4513_s0 + $0x14] ss:$52 sps:$4 sm:$0xff]  }
  0x22   :  { %1533 = vmatmul.mubr.bf16.vlgmr.msra.gmra.mxu0 %v3176_v31  ;;  %2817 = vmatprep.subr.bf16.mxu1 %v3213_v56  ;;  %v3260_v31 = vld [vmem:[%s4512_s1 + $0x278] sm:$0xff]   ;;  %v3252_v33 = vld [vmem:[%s4513_s0 + $0x2e0] ss:$52 sps:$4 sm:$0xff]  }
  0x23   :  { %2754 = vmatpush3.bf16.msra.mxu0 %v3184_v37  ;;  %1540 = vmatprep.mubr.bf16.mxu0 %v3185_v38  ;;  %v3264_v36 = vld [vmem:[%s4512_s1 + $0x238] sm:$0xff]   ;;  %v3268_v38 = vld [vmem:[%s4512_s1 + $0x270] sm:$0xff]  }
  0x24   :  { %1630 = vmatmul.mubr.bf16.vlgmr.msra.gmra.mxu1 %v3181_v35  ;;  %2755 = vmatprep.subr.bf16.mxu0 %v3188_v40  ;;  %v3256_v35 = vld [vmem:[%s4513_s0 + $0x10] ss:$52 sps:$4 sm:$0xff]   ;;  %v3296_v56 = vld [vmem:[%s4512_s1 + $0x218] sm:$0xff]  }
  0x25   :  { %1637 = vmatprep.mubr.bf16.mxu1 %v3189_v41  ;;  %2818 = vmatpush3.bf16.msra.mxu1 %v3217_v59  ;;  %v3265_v37 = vld [vmem:[%s4513_s0 + $0x7c] ss:$52 sps:$4 sm:$0xff]   ;;  %v3269_v40 = vld [vmem:[%s4513_s0 + $0x84] ss:$52 sps:$4 sm:$0xff]  }
  0x26   :  { %2819 = vmatprep.subr.bf16.mxu1 %v3219_v61  ;;  %v3271_v41 = vld [vmem:[%s4512_s1 + $0x230] sm:$0xff]  }
  0x27   :  { %2756 = vmatpush3.bf16.msra.mxu0 %v3191_v42  ;;  %v3276_v42 = vld [vmem:[%s4512_s1 + $0x268] sm:$0xff]   ;;  %v3304_v59 = vld [vmem:[%s4512_s1 + $0x250] sm:$0xff]  }
  0x28   :  { %2757 = vmatprep.subr.bf16.mxu0 %v3196_v45  ;;  %v3272_v45 = vld [vmem:[%s4513_s0 + $0x80] ss:$52 sps:$4 sm:$0xff]  }
  0x29   :  { %2820 = vmatpush3.bf16.msra.mxu1 %v3222_v63  ;;  %v3307_v61 = vld [vmem:[%s4512_s1 + $0x210] sm:$0xff]  }
  0x2a   :  { %1541 = vmatmul.mubr.bf16.gmra.mxu0 %v3187_v39  ;;  %2821 = vmatprep.subr.bf16.mxu1 %v3229_v5  ;;  %v3261_v39 = vld [vmem:[%s4513_s0 + $0x18] ss:$52 sps:$4 sm:$0xff]   ;;  %v3289_v63 = vld [vmem:[%s4513_s0 + $0x1b4] ss:$52 sps:$4 sm:$0xff]   ;;  %v3314_v5 = vld [vmem:[%s4512_s1 + $0x2a0] sm:$0xff]  }
  0x2b   :  { %1548 = vmatprep.mubr.bf16.mxu0 %v3193_v44  ;;  %2758 = vmatpush3.bf16.msra.mxu0 %v3199_v47  ;;  %v3273_v44 = vld [vmem:[%s4513_s0 + $0xe4] ss:$52 sps:$4 sm:$0xff]  }
  0x2c   :  { %1638 = vmatmul.mubr.bf16.gmra.mxu1 %v3192_v43  ;;  %2759 = vmatprep.subr.bf16.mxu0 %v3204_v50  ;;  %v3267_v43 = vld [vmem:[%s4513_s0 + $0x78] ss:$52 sps:$4 sm:$0xff]   ;;  %v3284_v47 = vld [vmem:[%s4512_s1 + $0x260] sm:$0xff]  }
  0x2d   :  { %1645 = vmatprep.mubr.bf16.mxu1 %v3197_v46  ;;  %2822 = vmatpush3.bf16.msra.mxu1 %v3230_v6  ;;  %v3279_v46 = vld [vmem:[%s4512_s1 + $0x228] sm:$0xff]   ;;  %v3287_v50 = vld [vmem:[%s4512_s1 + $0x220] sm:$0xff]  }
  0x2e   :  { %2823 = vmatprep.subr.bf16.mxu1 %v3231_v7  ;;  %v3316_v6 = vld [vmem:[%s4512_s1 + $0x248] sm:$0xff]   ;;  %v3291_v7 = vld [vmem:[%s4513_s0 + $0x1b0] ss:$52 sps:$4 sm:$0xff]  }
  0x2f   :  { %2760 = vmatpush3.bf16.msra.mxu0 %v3207_v52  ;;  %v3292_v52 = vld [vmem:[%s4512_s1 + $0x258] sm:$0xff]  }
  0x30   :  { %2761 = vmatprep.subr.bf16.mxu0 %v3212_v54  ;;  %v3297_v54 = vld [vmem:[%s4512_s1 + $0x2b8] sm:$0xff]  }
  0x31   :  { %2824 = vmatpush3.bf16.msra.mxu1 %v3234_v9  ;;  %v3300_v9 = vld [vmem:[%s4513_s0 + $0x21c] ss:$52 sps:$4 sm:$0xff]  }
  0x32   :  { %1549 = vmatmul.mubr.bf16.gmra.mxu0 %v3195_v48  ;;  %2825 = vmatprep.subr.bf16.mxu1 %v3241_v16  ;;  %v3277_v48 = vld [vmem:[%s4513_s0 + $0xec] ss:$52 sps:$4 sm:$0xff]  }
  0x33   :  { %1556 = vmatprep.mubr.bf16.mxu0 %v3201_v49  ;;  %2762 = vmatpush3.bf16.msra.mxu0 %v3216_v58  ;;  %v3293_v49 = vld [vmem:[%s4512_s1 + $0x2f8] sm:$0xff]   ;;  %v3302_v58 = vld [vmem:[%s4512_s1 + $0x2b0] sm:$0xff]   ;;  %v3328_v16 = vld [vmem:[%s4512_s1 + $0x240] sm:$0xff]  }
  0x34   :  { %1646 = vmatmul.mubr.bf16.gmra.mxu1 %v3200_v51  ;;  %2763 = vmatprep.subr.bf16.mxu0 %v3224_v0  ;;  %v3275_v51 = vld [vmem:[%s4513_s0 + $0xe0] ss:$52 sps:$4 sm:$0xff]   ;;  %v3309_v0 = vld [vmem:[%s4512_s1 + $0x2e8] sm:$0xff]  }
  0x35   :  { %1653 = vmatprep.mubr.bf16.mxu1 %v3205_v53  ;;  %2826 = vmatpush3.bf16.msra.mxu1 %v3242_v17  ;;  %v3281_v53 = vld [vmem:[%s4513_s0 + $0x14c] ss:$52 sps:$4 sm:$0xff]  }
  0x36   :  { %2827 = vmatprep.subr.bf16.mxu1 %v3243_v18  ;;  %v3303_v17 = vld [vmem:[%s4513_s0 + $0x218] ss:$52 sps:$4 sm:$0xff]  }
  0x37   :  { %2764 = vmatpush3.bf16.msra.mxu0 %v3227_v3  ;;  %v3288_v3 = vld [vmem:[%s4513_s0 + $0x150] ss:$52 sps:$4 sm:$0xff]  }
  0x38   :  { %2765 = vmatprep.subr.bf16.mxu0 %v3236_v10  ;;  %v3321_v10 = vld [vmem:[%s4512_s1 + $0x2d8] sm:$0xff]  }
  0x39   :  { %2828 = vmatpush3.bf16.msra.mxu1 %v3246_v20  ;;  %v3312_v18 = vld [vmem:[%s4513_s0 + $0x284] ss:$52 sps:$4 sm:$0xff]   ;;  %v3333_v20 = vld [vmem:[%s4512_s1 + $0x2c8] sm:$0xff]  }
  0x3a   :  { %1557 = vmatmul.mubr.bf16.gmra.mxu0 %v3203_v55  ;;  %2829 = vmatprep.subr.bf16.mxu1 %v3253_v26  ;;  %v3299_v55 = vld [vmem:[%s4512_s1 + $0x2f0] sm:$0xff]   ;;  %v3340_v26 = vld [vmem:[%s4512_s1 + $0x338] sm:$0xff]  }
  0x3b   :  { %1564 = vmatprep.mubr.bf16.mxu0 %v3209_v57  ;;  %2766 = vmatpush3.bf16.msra.mxu0 %v3239_v14  ;;  %v3280_v57 = vld [vmem:[%s4513_s0 + $0xe8] ss:$52 sps:$4 sm:$0xff]   ;;  %v3326_v14 = vld [vmem:[%s4512_s1 + $0x290] sm:$0xff]  }
  0x3c   :  { %1654 = vmatmul.mubr.bf16.gmra.mxu1 %v3208_v60  ;;  %2767 = vmatprep.subr.bf16.mxu0 %v3248_v21  ;;  %v3285_v60 = vld [vmem:[%s4513_s0 + $0x154] ss:$52 sps:$4 sm:$0xff]  }
  0x3d   :  { %1661 = vmatprep.mubr.bf16.mxu1 %v3214_v62  ;;  %2830 = vmatpush3.bf16.msra.mxu1 %v3254_v27  ;;  %v3283_v62 = vld [vmem:[%s4513_s0 + $0x148] ss:$52 sps:$4 sm:$0xff]   ;;  %v3315_v27 = vld [vmem:[%s4513_s0 + $0x280] ss:$52 sps:$4 sm:$0xff]  }
  0x3e   :  { %2831 = vmatprep.subr.bf16.mxu1 %v3255_v28  ;;  %v3334_v21 = vld [vmem:[%s4512_s1 + $0x288] sm:$0xff]  }
  0x3f   :  { %2768 = vmatpush3.bf16.msra.mxu0 %v3251_v24  ;;  %v3317_v24 = vld [vmem:[%s4513_s0 + $0x28c] ss:$52 sps:$4 sm:$0xff]  }
  0x40   :  { %2881 = vmatprep.subr.bf16.mxu0 %v3260_v31  ;;  %v3324_v28 = vld [vmem:[%s4513_s0 + $0x2ec] ss:$52 sps:$4 sm:$0xff]   ;;  %v3327_v31 = vld [vmem:[%s4513_s0 + $0x2e8] ss:$52 sps:$4 sm:$0xff]  }
  0x41   :  { %2832 = vmatpush3.bf16.msra.mxu1 %v3259_v30  ;;  %v3329_v30 = vld [vmem:[%s4513_s0 + $0x2f4] ss:$52 sps:$4 sm:$0xff]  }
  0x42   :  { %1565 = vmatmul.mubr.bf16.gmra.mxu0 %v3211_v1  ;;  %2945 = vmatprep.subr.bf16.mxu1 %v3293_v49  ;;  %v3310_v1 = vld [vmem:[%s4512_s1 + $0x2a8] sm:$0xff]   ;;  %v3375_v49 = vld [vmem:[%s4512_s1 + $0x310] sm:$0xff]  }
  0x43   :  { %1572 = vmatprep.mubr.bf16.mxu0 %v3220_v2  ;;  %v3311_v2 = vld [vmem:[%s4512_s1 + $0x2e0] sm:$0xff]  }
  0x44   :  { %1662 = vmatmul.mubr.bf16.gmra.mxu1 %v3218_v4  ;;  %v3294_v4 = vld [vmem:[%s4513_s0 + $0x1bc] ss:$52 sps:$4 sm:$0xff]  }
  0x45   :  { %1669 = vmatprep.mubr.bf16.mxu1 %v3225_v8  ;;  %v3319_v8 = vld [vmem:[%s4512_s1 + $0x208] sm:$0xff]  }
  0x4a   :  { %1573 = vmatmul.mubr.bf16.gmra.mxu0 %v3223_v11  ;;  %v3322_v11 = vld [vmem:[%s4512_s1 + $0x298] sm:$0xff]  }
  0x4b   :  { %1580 = vmatprep.mubr.bf16.mxu0 %v3232_v13  ;;  %v3298_v13 = vld [vmem:[%s4513_s0 + $0x1b8] ss:$52 sps:$4 sm:$0xff]  }
  0x4c   :  { %1670 = vmatmul.mubr.bf16.gmra.mxu1 %v3228_v12  ;;  %v3323_v12 = vld [vmem:[%s4512_s1 + $0x2d0] sm:$0xff]  }
  0x4d   :  { %1677 = vmatprep.mubr.bf16.mxu1 %v3237_v15  ;;  %v3305_v15 = vld [vmem:[%s4513_s0 + $0x224] ss:$52 sps:$4 sm:$0xff]  }
  0x52   :  { %1581 = vmatmul.mubr.bf16.gmra.mxu0 %v3235_v19  ;;  %v3331_v19 = vld [vmem:[%s4512_s1 + $0x200] sm:$0xff]  }
  0x53   :  { %1588 = vmatprep.mubr.bf16.mxu0 %v3244_v22  ;;  %v3335_v22 = vld [vmem:[%s4512_s1 + $0x2c0] sm:$0xff]  }
  0x54   :  { %1678 = vmatmul.mubr.bf16.gmra.mxu1 %v3240_v23  ;;  %v3308_v23 = vld [vmem:[%s4513_s0 + $0x220] ss:$52 sps:$4 sm:$0xff]  }
  0x55   :  { %1685 = vmatprep.mubr.bf16.mxu1 %v3249_v25  ;;  %v3339_v25 = vld [vmem:[%s4512_s1 + $0x280] sm:$0xff]  }
  0x5a   :  { %1589 = vmatmul.mubr.bf16.gmra.mxu0 %v3247_v29  ;;  %v3320_v29 = vld [vmem:[%s4513_s0 + $0x288] ss:$52 sps:$4 sm:$0xff]  }
  0x5b   :  { %1726 = vmatprep.mubr.bf16.mxu0 %v3258_v32  ;;  %v3338_v32 = vld [vmem:[%s4513_s0 + $0x24] ss:$52 sps:$4 sm:$0xff]  }
  0x5c   :  { %1686 = vmatmul.mubr.bf16.gmra.mxu1 %v3252_v33  ;;  %v3332_v33 = vld [vmem:[%s4513_s0 + $0x2f0] ss:$52 sps:$4 sm:$0xff]  }
  0x5d   :  { %1823 = vmatprep.mubr.bf16.mxu1 %v3263_v34  ;;  %v3343_v34 = vld [vmem:[%s4513_s0 + $0x2c] ss:$52 sps:$4 sm:$0xff]  }
  0x62   :  { %1727 = vmatmul.mubr.bf16.vlgmr.msra.gmra.mxu0 %v3256_v35  ;;  %v3336_v35 = vld [vmem:[%s4513_s0 + $0x20] ss:$52 sps:$4 sm:$0xff]  }
  0x63   :  { %2882 = vmatpush3.bf16.msra.mxu0 %v3264_v36  ;;  %1734 = vmatprep.mubr.bf16.mxu0 %v3265_v37  ;;  %v3344_v36 = vld [vmem:[%s4513_s0 + $0x8c] ss:$52 sps:$4 sm:$0xff]   ;;  %v3347_v37 = vld [vmem:[%s4512_s1 + $0x330] sm:$0xff]  }
  0x64   :  { %2883 = vmatprep.subr.bf16.mxu0 %v3268_v38  ;;  %1824 = vmatmul.mubr.bf16.vlgmr.msra.gmra.mxu1 %v3261_v39  ;;  %v3341_v38 = vld [vmem:[%s4513_s0 + $0x28] ss:$52 sps:$4 sm:$0xff]  }
  0x65   :  { %1831 = vmatprep.mubr.bf16.mxu1 %v3269_v40  ;;  %2946 = vmatpush3.bf16.msra.mxu1 %v3297_v54  ;;  %v3348_v39 = vld [vmem:[%s4513_s0 + $0x94] ss:$52 sps:$4 sm:$0xff]   ;;  %v3365_v54 = vld [vmem:[%s4513_s0 + $0x1c4] ss:$52 sps:$4 sm:$0xff]  }
  0x66   :  { %2947 = vmatprep.subr.bf16.mxu1 %v3299_v55  ;;  %v3354_v40 = vld [vmem:[%s4512_s1 + $0x328] sm:$0xff]   ;;  %v3389_v55 = vld [vmem:[%s4512_s1 + $0x300] sm:$0xff]  }
  0x67   :  { %2884 = vmatpush3.bf16.msra.mxu0 %v3271_v41  ;;  %v3346_v41 = vld [vmem:[%s4513_s0 + $0x88] ss:$52 sps:$4 sm:$0xff]  }
  0x68   :  { %2885 = vmatprep.subr.bf16.mxu0 %v3276_v42  ;;  %v3351_v42 = vld [vmem:[%s4513_s0 + $0xf4] ss:$52 sps:$4 sm:$0xff]  }
  0x69   :  { %2948 = vmatpush3.bf16.msra.mxu1 %v3302_v58  ;;  %v3367_v58 = vld [vmem:[%s4513_s0 + $0x1c0] ss:$52 sps:$4 sm:$0xff]  }
  0x6a   :  { %1735 = vmatmul.mubr.bf16.gmra.mxu0 %v3267_v43  ;;  %2949 = vmatprep.subr.bf16.mxu1 %v3309_v0  ;;  %v3361_v43 = vld [vmem:[%s4512_s1 + $0x320] sm:$0xff]  }
  0x6b   :  { %1742 = vmatprep.mubr.bf16.mxu0 %v3273_v44  ;;  %2886 = vmatpush3.bf16.msra.mxu0 %v3279_v46  ;;  %v3350_v44 = vld [vmem:[%s4513_s0 + $0x90] ss:$52 sps:$4 sm:$0xff]   ;;  %v3368_v46 = vld [vmem:[%s4512_s1 + $0x318] sm:$0xff]  }
  0x6c   :  { %2887 = vmatprep.subr.bf16.mxu0 %v3284_v47  ;;  %1832 = vmatmul.mubr.bf16.gmra.mxu1 %v3272_v45  ;;  %v3355_v45 = vld [vmem:[%s4513_s0 + $0xfc] ss:$52 sps:$4 sm:$0xff]  }
  0x6d   :  { %1839 = vmatprep.mubr.bf16.mxu1 %v3277_v48  ;;  %2950 = vmatpush3.bf16.msra.mxu1 %v3310_v1  ;;  %v3353_v47 = vld [vmem:[%s4513_s0 + $0xf0] ss:$52 sps:$4 sm:$0xff]  }
  0x6e   :  { %2951 = vmatprep.subr.bf16.mxu1 %v3311_v2  ;;  %v3358_v48 = vld [vmem:[%s4513_s0 + $0x15c] ss:$52 sps:$4 sm:$0xff]  }
  0x6f   :  { %2888 = vmatpush3.bf16.msra.mxu0 %v3287_v50  ;;  %v3357_v50 = vld [vmem:[%s4513_s0 + $0xf8] ss:$52 sps:$4 sm:$0xff]   ;;  %v3378_v0 = vld [vmem:[%s4513_s0 + $0x230] ss:$52 sps:$4 sm:$0xff]  }
  0x70   :  { %2889 = vmatprep.subr.bf16.mxu0 %v3292_v52  ;;  %v3382_v52 = vld [vmem:[%s4512_s1 + $0x308] sm:$0xff]   ;;  %v3383_v1 = vld [vmem:[%s4513_s0 + $0x29c] ss:$52 sps:$4 sm:$0xff]  }
  0x71   :  { %2952 = vmatpush3.bf16.msra.mxu1 %v3314_v5  ;;  %v3381_v2 = vld [vmem:[%s4513_s0 + $0x290] ss:$52 sps:$4 sm:$0xff]  }
  0x72   :  { %1743 = vmatmul.mubr.bf16.gmra.mxu0 %v3275_v51  ;;  %2953 = vmatprep.subr.bf16.mxu1 %v3321_v10  ;;  %v3362_v51 = vld [vmem:[%s4513_s0 + $0x164] ss:$52 sps:$4 sm:$0xff]   ;;  %v3395_v10 = vld [vmem:[%s4513_s0 + $0x100] ss:$52 sps:$4 sm:$0xff]  }
  0x73   :  { %1750 = vmatprep.mubr.bf16.mxu0 %v3281_v53  ;;  %2890 = vmatpush3.bf16.msra.mxu0 %v3296_v56  ;;  %v3360_v53 = vld [vmem:[%s4513_s0 + $0x158] ss:$52 sps:$4 sm:$0xff]   ;;  %v3364_v56 = vld [vmem:[%s4513_s0 + $0x160] ss:$52 sps:$4 sm:$0xff]  }
  0x74   :  { %2891 = vmatprep.subr.bf16.mxu0 %v3304_v59  ;;  %1840 = vmatmul.mubr.bf16.gmra.mxu1 %v3280_v57  ;;  %v3369_v57 = vld [vmem:[%s4513_s0 + $0x1cc] ss:$52 sps:$4 sm:$0xff]   ;;  %v3390_v5 = vld [vmem:[%s4513_s0 + $0x304] ss:$52 sps:$4 sm:$0xff]  }
  0x75   :  { %1847 = vmatprep.mubr.bf16.mxu1 %v3285_v60  ;;  %2954 = vmatpush3.bf16.msra.mxu1 %v3322_v11  ;;  %v3372_v59 = vld [vmem:[%s4513_s0 + $0x22c] ss:$52 sps:$4 sm:$0xff]   ;;  %v3371_v60 = vld [vmem:[%s4513_s0 + $0x1c8] ss:$52 sps:$4 sm:$0xff]  }
  0x76   :  { %2955 = vmatprep.subr.bf16.mxu1 %v3323_v12  ;;  %v4075_v12 = vld [vmem:[%s4514_s2] ss:$0 sm:$0xff] }
  0x77   :  { %2892 = vmatpush3.bf16.msra.mxu0 %v3307_v61  ;;  %v3376_v61 = vld [vmem:[%s4513_s0 + $0x234] ss:$52 sps:$4 sm:$0xff]  }
  0x78   :  { %2893 = vmatprep.subr.bf16.mxu0 %v3316_v6  ;;  %v3388_v6 = vld [vmem:[%s4513_s0 + $0x2f8] ss:$52 sps:$4 sm:$0xff]  }
  0x79   :  { %2956 = vmatpush3.bf16.msra.mxu1 %v3326_v14 }
  0x7a   :  { %1751 = vmatmul.mubr.bf16.gmra.mxu0 %v3283_v62  ;;  %2957 = vmatprep.subr.bf16.mxu1 %v3333_v20  ;;  %v3374_v62 = vld [vmem:[%s4513_s0 + $0x228] ss:$52 sps:$4 sm:$0xff]   ;;  %v3397_v20 = vld [vmem:[%s4513_s0 + $0x1d0] ss:$52 sps:$4 sm:$0xff]  }
  0x7b   :  { %1758 = vmatprep.mubr.bf16.mxu0 %v3289_v63  ;;  %2894 = vmatpush3.bf16.msra.mxu0 %v3319_v8  ;;  %v3379_v63 = vld [vmem:[%s4513_s0 + $0x294] ss:$52 sps:$4 sm:$0xff]  }
  0x7c   :  { %1848 = vmatmul.mubr.bf16.gmra.mxu1 %v3288_v3  ;;  %2895 = vmatprep.subr.bf16.mxu0 %v3328_v16  ;;  %v3386_v3 = vld [vmem:[%s4513_s0 + $0x2fc] ss:$52 sps:$4 sm:$0xff]   ;;  %v3392_v8 = vld [vmem:[%s4513_s0 + $0x300] ss:$52 sps:$4 sm:$0xff]  }
  0x7d   :  { %1855 = vmatprep.mubr.bf16.mxu1 %v3294_v4  ;;  %2958 = vmatpush3.bf16.msra.mxu1 %v3334_v21  ;;  %v3385_v4 = vld [vmem:[%s4513_s0 + $0x298] ss:$52 sps:$4 sm:$0xff]  }
  0x7e   :  { %2959 = vmatprep.subr.bf16.mxu1 %v3335_v22 }
  0x7f   :  { %2896 = vmatpush3.bf16.msra.mxu0 %v3331_v19 }
  0x80   :  { %3057 = vmatprep.subr.bf16.mxu0 %v3340_v26 }
  0x81   :  { %2960 = vmatpush3.bf16.msra.mxu1 %v3339_v25 }
  0x82   :  { %1759 = vmatmul.mubr.bf16.gmra.mxu0 %v3291_v7  ;;  %v3393_v7 = vld [vmem:[%s4513_s0 + $0x30] ss:$52 sps:$4 sm:$0xff]  }
  0x83   :  { %1766 = vmatprep.mubr.bf16.mxu0 %v3300_v9  ;;  %v3394_v9 = vld [vmem:[%s4513_s0 + $0x98] ss:$52 sps:$4 sm:$0xff]  }
  0x84   :  { %1856 = vmatmul.mubr.bf16.gmra.mxu1 %v3298_v13 }
  0x85   :  { %1863 = vmatprep.mubr.bf16.mxu1 %v3305_v15 }
  0x8a   :  { %1767 = vmatmul.mubr.bf16.gmra.mxu0 %v3303_v17  ;;  %v3396_v17 = vld [vmem:[%s4513_s0 + $0x168] ss:$52 sps:$4 sm:$0xff]  }
  0x8b   :  { %1774 = vmatprep.mubr.bf16.mxu0 %v3312_v18 }
  0x8c   :  { %1864 = vmatmul.mubr.bf16.gmra.mxu1 %v3308_v23 }
  0x8d   :  { %1871 = vmatprep.mubr.bf16.mxu1 %v3317_v24 }
  0x92   :  { %1775 = vmatmul.mubr.bf16.gmra.mxu0 %v3315_v27 }
  0x93   :  { %1782 = vmatprep.mubr.bf16.mxu0 %v3324_v28 }
  0x94   :  { %1872 = vmatmul.mubr.bf16.gmra.mxu1 %v3320_v29 }
  0x95   :  { %1879 = vmatprep.mubr.bf16.mxu1 %v3329_v30 }
  0x9a   :  { %1783 = vmatmul.mubr.bf16.gmra.mxu0 %v3327_v31 }
  0x9b   :  { %1920 = vmatprep.mubr.bf16.mxu0 %v3338_v32 }
  0x9c   :  { %1880 = vmatmul.mubr.bf16.gmra.mxu1 %v3332_v33 }
  0x9d   :  { %2017 = vmatprep.mubr.bf16.mxu1 %v3343_v34 }
  0xa2   :  { %1921 = vmatmul.mubr.bf16.vlgmr.msra.gmra.mxu0 %v3336_v35  ;;  %v3398_v35 = vld [vmem:[%s4513_s0 + $0x238] ss:$52 sps:$4 sm:$0xff]  }
  0xa3   :  { %3058 = vmatpush3.bf16.msra.mxu0 %v3340_v26  ;;  %1928 = vmatprep.mubr.bf16.mxu0 %v3344_v36 }
  0xa4   :  { %3059 = vmatprep.subr.bf16.mxu0 %v3347_v37  ;;  %2018 = vmatmul.mubr.bf16.vlgmr.msra.gmra.mxu1 %v3341_v38  ;;  %v3399_v38 = vld [vmem:[%s4513_s0 + $0x2a0] ss:$52 sps:$4 sm:$0xff]  }
  0xa5   :  { %2025 = vmatprep.mubr.bf16.mxu1 %v3348_v39 }
  0xa7   :  { %3060 = vmatpush3.bf16.msra.mxu0 %v3347_v37 }
  0xa8   :  { %3061 = vmatprep.subr.bf16.mxu0 %v3354_v40 }
  0xaa   :  { %1929 = vmatmul.mubr.bf16.gmra.mxu0 %v3346_v41  ;;  %v2210_v41 = vld [vmem:[%s4515_s3 + $0x78] sm:$0xff] }
  0xab   :  { %1936 = vmatprep.mubr.bf16.mxu0 %v3351_v42  ;;  %3062 = vmatpush3.bf16.msra.mxu0 %v3354_v40 }
  0xac   :  { %3063 = vmatprep.subr.bf16.mxu0 %v3361_v43  ;;  %2026 = vmatmul.mubr.bf16.gmra.mxu1 %v3350_v44 }
  0xad   :  { %2033 = vmatprep.mubr.bf16.mxu1 %v3355_v45  ;;  %3089 = vmatprep.subr.mxu1 %v2210_v41 }
  0xae   :  { %3090 = vmatpush3.msra.mxu1 %v2210_v41 }
  0xaf   :  { %3064 = vmatpush3.bf16.msra.mxu0 %v3361_v43 }
  0xb0   :  { %3065 = vmatprep.subr.bf16.mxu0 %v3368_v46 }
  0xb2   :  { %1937 = vmatmul.mubr.bf16.gmra.mxu0 %v3353_v47 }
  0xb3   :  { %1944 = vmatprep.mubr.bf16.mxu0 %v3358_v48  ;;  %3066 = vmatpush3.bf16.msra.mxu0 %v3368_v46  ;;  %v2209_v48 = vld [vmem:[%s4515_s3 + $0x70] sm:$0xff] }
  0xb4   :  { %3067 = vmatprep.subr.bf16.mxu0 %v3375_v49  ;;  %2034 = vmatmul.mubr.bf16.gmra.mxu1 %v3357_v50 }
  0xb5   :  { %2041 = vmatprep.mubr.bf16.mxu1 %v3362_v51  ;;  %3091 = vmatprep.subr.mxu1 %v2209_v48 }
  0xb6   :  { %3092 = vmatpush3.msra.mxu1 %v2209_v48 }
  0xb7   :  { %3068 = vmatpush3.bf16.msra.mxu0 %v3375_v49 }
  0xb8   :  { %3069 = vmatprep.subr.bf16.mxu0 %v3382_v52 }
  0xba   :  { %1945 = vmatmul.mubr.bf16.gmra.mxu0 %v3360_v53 }
  0xbb   :  { %1952 = vmatprep.mubr.bf16.mxu0 %v3365_v54  ;;  %3070 = vmatpush3.bf16.msra.mxu0 %v3382_v52 }
  0xbc   :  { %3071 = vmatprep.subr.bf16.mxu0 %v3389_v55  ;;  %2042 = vmatmul.mubr.bf16.gmra.mxu1 %v3364_v56 }
  0xbd   :  { %2049 = vmatprep.mubr.bf16.mxu1 %v3369_v57 }
  0xbf   :  { %3072 = vmatpush3.bf16.msra.mxu0 %v3389_v55  ;;  %v3400_v55 = vld [vmem:[%s4513_s0 + $0x308] ss:$52 sps:$4 sm:$0xff]  }
  0xc2   :  { %1953 = vmatmul.mubr.bf16.gmra.mxu0 %v3367_v58  ;;  %v2208_v58 = vld [vmem:[%s4515_s3 + $0x68] sm:$0xff] }
  0xc3   :  { %1960 = vmatprep.mubr.bf16.mxu0 %v3372_v59  ;;  %3093 = vmatprep.subr.mxu1 %v2208_v58 }
  0xc4   :  { %2050 = vmatmul.mubr.bf16.gmra.mxu1 %v3371_v60 }
  0xc5   :  { %2057 = vmatprep.mubr.bf16.mxu1 %v3376_v61  ;;  %3094 = vmatpush3.msra.mxu1 %v2208_v58 }
  0xca   :  { %1961 = vmatmul.mubr.bf16.gmra.mxu0 %v3374_v62 }
  0xcb   :  { %1968 = vmatprep.mubr.bf16.mxu0 %v3379_v63 }
  0xcc   :  { %2058 = vmatmul.mubr.bf16.gmra.mxu1 %v3378_v0 }
  0xcd   :  { %2065 = vmatprep.mubr.bf16.mxu1 %v3383_v1 }
  0xd2   :  { %1969 = vmatmul.mubr.bf16.gmra.mxu0 %v3381_v2 }
  0xd3   :  { %1976 = vmatprep.mubr.bf16.mxu0 %v3386_v3  ;;  %v2207_v3 = vld [vmem:[%s4515_s3 + $0x60] sm:$0xff] }
  0xd4   :  { %2066 = vmatmul.mubr.bf16.gmra.mxu1 %v3385_v4  ;;  %3095 = vmatprep.subr.mxu1 %v2207_v3 }
  0xd5   :  { %2073 = vmatprep.mubr.bf16.mxu1 %v3390_v5  ;;  %3096 = vmatpush3.msra.mxu1 %v2207_v3 }
  0xda   :  { %1977 = vmatmul.mubr.bf16.gmra.mxu0 %v3388_v6 }
  0xdb   :  { %3073 = vmatprep.mubr.bf16.mxu0 %v3393_v7 }
  0xdc   :  { %2074 = vmatmul.mubr.bf16.gmra.mxu1 %v3392_v8 }
  0xe2   :  { %v2641_v11 = vpop.f32.mrf.mxu0  ;;  %3074 = vmatmul.mubr.bf16.vlgmr.msra.gmra.mxu0 %v3394_v9 }
  0xe3   :  { %3077 = vmatprep.mubr.bf16.mxu0 %v3395_v10 }
  0xe4   :  { %v2642_v13 = vpop.f32.mrf.mxu0  ;;  %v2705_v15 = vpop.f32.mrf.mxu1 }
  0xe5   :  { %v2643_v14 = vadd.f32 %v2642_v13, %v2641_v11  ;;  %v2206_v13 = vld [vmem:[%s4515_s3 + $0x58] sm:$0xff] }
  0xe6   :  { %v2644_v16 = vpop.f32.mrf.mxu0  ;;  %v2706_v19 = vpop.f32.mrf.mxu1  ;;  %3097 = vmatprep.subr.mxu1 %v2206_v13 }
  0xe7   :  { %v1535_v18 = vadd.f32 %v2643_v14, %v4075_v12  ;;  %v2707_v21 = vadd.f32 %v2706_v19, %v2705_v15  ;;  %3098 = vmatpush3.msra.mxu1 %v2206_v13 }
  0xe8   :  { %v2645_v22 = vpop.f32.mrf.mxu0  ;;  %v2708_v24 = vpop.f32.mrf.mxu1 }
  0xe9   :  { %v2646_v23 = vadd.f32 %v2645_v22, %v2644_v16  ;;  %v4084_v25 = vadd.f32 %v2707_v21, %v1535_v18  ;;  %v2205_v22 = vld [vmem:[%s4515_s3 + $0x50] sm:$0xff] }
  0xea   :  { %v2647_v26 = vpop.f32.mrf.mxu0  ;;  %3078 = vmatmul.mubr.bf16.gmra.mxu0 %v3396_v17  ;;  %v2709_v28 = vpop.f32.mrf.mxu1  ;;  %3099 = vmatprep.subr.mxu1 %v2205_v22 }
  0xeb   :  { %v1538_v27 = vadd.f32 %v2646_v23, %v4075_v12  ;;  %3081 = vmatprep.mubr.bf16.mxu0 %v3397_v20  ;;  %v2710_v29 = vadd.f32 %v2709_v28, %v2708_v24  ;;  %3100 = vmatpush3.msra.mxu1 %v2205_v22 }
  0xec   :  { %v2648_v30 = vpop.f32.mrf.mxu0  ;;  %v2711_v32 = vpop.f32.mrf.mxu1 }
  0xed   :  { %v2649_v31 = vadd.f32 %v2648_v30, %v2647_v26  ;;  %v4087_v33 = vadd.f32 %v2710_v29, %v1538_v27 }
  0xee   :  { %v2650_v34 = vpop.f32.mrf.mxu0  ;;  %v2712_v37 = vpop.f32.mrf.mxu1 }
  0xef   :  { %v1543_v36 = vadd.f32 %v2649_v31, %v4075_v12  ;;  %v2713_v39 = vadd.f32 %v2712_v37, %v2711_v32  ;;  %v2204_v32 = vld [vmem:[%s4515_s3 + $0x48] sm:$0xff] }
  0xf0   :  { %v2651_v40 = vpop.f32.mrf.mxu0  ;;  %v2714_v43 = vpop.f32.mrf.mxu1  ;;  %3101 = vmatprep.subr.mxu1 %v2204_v32 }
  0xf1   :  { %v2652_v42 = vadd.f32 %v2651_v40, %v2650_v34  ;;  %v4099_v44 = vadd.f32 %v2713_v39, %v1543_v36  ;;  %3102 = vmatpush3.msra.mxu1 %v2204_v32 }
  0xf2   :  { %v2653_v45 = vpop.f32.mrf.mxu0  ;;  %3082 = vmatmul.mubr.bf16.gmra.mxu0 %v3398_v35  ;;  %v2715_v47 = vpop.f32.mrf.mxu1 }
  0xf3   :  { %v1546_v46 = vadd.f32 %v2652_v42, %v4075_v12  ;;  %3085 = vmatprep.mubr.bf16.mxu0 %v3399_v38  ;;  %v2716_v49 = vadd.f32 %v2715_v47, %v2714_v43  ;;  %v2203_v42 = vld [vmem:[%s4515_s3 + $0x40] sm:$0xff] }
  0xf4   :  { %v2654_v50 = vpop.f32.mrf.mxu0  ;;  %v2717_v52 = vpop.f32.mrf.mxu1  ;;  %3103 = vmatprep.subr.mxu1 %v2203_v42 }
  0xf5   :  { %v2655_v51 = vadd.f32 %v2654_v50, %v2653_v45  ;;  %v4105_v53 = vadd.f32 %v2716_v49, %v1546_v46  ;;  %3104 = vmatpush3.msra.mxu1 %v2203_v42  ;;  %v2197_v42 = vld [vmem:[%s4515_s3 + $0x10] sm:$0xff] }
  0xf6   :  { %v2656_v54 = vpop.f32.mrf.mxu0  ;;  %v2718_v57 = vpop.f32.mrf.mxu1 }
  0xf7   :  { %v1551_v56 = vadd.f32 %v2655_v51, %v4075_v12  ;;  %v2719_v59 = vadd.f32 %v2718_v57, %v2717_v52  ;;  %v2202_v52 = vld [vmem:[%s4515_s3 + $0x38] sm:$0xff] }
  0xf8   :  { %v2657_v60 = vpop.f32.mrf.mxu0  ;;  %v2720_v62 = vpop.f32.mrf.mxu1  ;;  %3105 = vmatprep.subr.mxu1 %v2202_v52 }
  0xf9   :  { %v2658_v61 = vadd.f32 %v2657_v60, %v2656_v54  ;;  %v4114_v63 = vadd.f32 %v2719_v59, %v1551_v56  ;;  %3106 = vmatpush3.msra.mxu1 %v2202_v52 }
  0xfa   :  { %v2659_v0 = vpop.f32.mrf.mxu0  ;;  %3086 = vmatmul.mubr.bf16.gmra.mxu0 %v3400_v55  ;;  %v2721_v2 = vpop.f32.mrf.mxu1 }
  0xfb   :  { %v1554_v1 = vadd.f32 %v2658_v61, %v4075_v12  ;;  %v2722_v4 = vadd.f32 %v2721_v2, %v2720_v62  ;;  %v2201_v62 = vld [vmem:[%s4515_s3 + $0x30] sm:$0xff] }
  0xfc   :  { %v2660_v5 = vpop.f32.mrf.mxu0  ;;  %v2723_v7 = vpop.f32.mrf.mxu1  ;;  %3107 = vmatprep.subr.mxu1 %v2201_v62 }
  0xfd   :  { %v2661_v6 = vadd.f32 %v2660_v5, %v2659_v0  ;;  %v4120_v8 = vadd.f32 %v2722_v4, %v1554_v1  ;;  %3108 = vmatpush3.msra.mxu1 %v2201_v62 }
  0xfe   :  { %v2662_v9 = vpop.f32.mrf.mxu0  ;;  %v2724_v11 = vpop.f32.mrf.mxu1 }
  0xff   :  { %v1559_v10 = vadd.f32 %v2661_v6, %v4075_v12  ;;  %v2725_v14 = vadd.f32 %v2724_v11, %v2723_v7 }
 0x100   :  { %v2663_v15 = vpop.f32.mrf.mxu0  ;;  %v2726_v17 = vpop.f32.mrf.mxu1 }
 0x101   :  { %v2664_v16 = vadd.f32 %v2663_v15, %v2662_v9  ;;  %v4126_v18 = vadd.f32 %v2725_v14, %v1559_v10  ;;  %v2200_v9 = vld [vmem:[%s4515_s3 + $0x28] sm:$0xff] }
 0x102   :  { %v2665_v19 = vpop.f32.mrf.mxu0  ;;  %v2727_v21 = vpop.f32.mrf.mxu1  ;;  %3109 = vmatprep.subr.mxu1 %v2200_v9 }
 0x103   :  { %v1562_v20 = vadd.f32 %v2664_v16, %v4075_v12  ;;  %v2728_v23 = vadd.f32 %v2727_v21, %v2726_v17  ;;  %3110 = vmatpush3.msra.mxu1 %v2200_v9 }
 0x104   :  { %v2666_v24 = vpop.f32.mrf.mxu0  ;;  %v2729_v27 = vpop.f32.mrf.mxu1 }
 0x105   :  { %v2667_v26 = vadd.f32 %v2666_v24, %v2665_v19  ;;  %v4132_v28 = vadd.f32 %v2728_v23, %v1562_v20  ;;  %v2199_v20 = vld [vmem:[%s4515_s3 + $0x20] sm:$0xff] }
 0x106   :  { %v2668_v29 = vpop.f32.mrf.mxu0  ;;  %v2730_v31 = vpop.f32.mrf.mxu1  ;;  %3111 = vmatprep.subr.mxu1 %v2199_v20 }
 0x107   :  { %v1567_v30 = vadd.f32 %v2667_v26, %v4075_v12  ;;  %v2731_v34 = vadd.f32 %v2730_v31, %v2729_v27  ;;  %3112 = vmatpush3.msra.mxu1 %v2199_v20  ;;  %v2198_v31 = vld [vmem:[%s4515_s3 + $0x18] sm:$0xff] }
 0x108   :  { %v2669_v35 = vpop.f32.mrf.mxu0  ;;  %v2732_v37 = vpop.f32.mrf.mxu1  ;;  %3113 = vmatprep.subr.mxu1 %v2198_v31 }
 0x109   :  { %v2670_v36 = vadd.f32 %v2669_v35, %v2668_v29  ;;  %v4138_v38 = vadd.f32 %v2731_v34, %v1567_v30  ;;  %3114 = vmatpush3.msra.mxu1 %v2198_v31 }
 0x10a   :  { %v2671_v39 = vpop.f32.mrf.mxu0  ;;  %v2733_v41 = vpop.f32.mrf.mxu1  ;;  %3115 = vmatprep.subr.mxu1 %v2197_v42 }
 0x10b   :  { %v1570_v40 = vadd.f32 %v2670_v36, %v4075_v12  ;;  %v2734_v43 = vadd.f32 %v2733_v41, %v2732_v37  ;;  %3116 = vmatpush3.msra.mxu1 %v2197_v42 }
 0x10c   :  { %v2672_v45 = vpop.f32.mrf.mxu0  ;;  %v2735_v47 = vpop.f32.mrf.mxu1 }
 0x10d   :  { %v2673_v46 = vadd.f32 %v2672_v45, %v2671_v39  ;;  %v4144_v48 = vadd.f32 %v2734_v43, %v1570_v40 }
 0x10e   :  { %v2674_v49 = vpop.f32.mrf.mxu0  ;;  %v2736_v51 = vpop.f32.mrf.mxu1 }
 0x10f   :  { %v1575_v50 = vadd.f32 %v2673_v46, %v4075_v12  ;;  %v2737_v54 = vadd.f32 %v2736_v51, %v2735_v47 }
 0x110   :  { %v2675_v55 = vpop.f32.mrf.mxu0  ;;  %v2738_v57 = vpop.f32.mrf.mxu1 }
 0x111   :  { %v2676_v56 = vadd.f32 %v2675_v55, %v2674_v49  ;;  %v4150_v58 = vadd.f32 %v2737_v54, %v1575_v50 }
 0x112   :  { %v2677_v59 = vpop.f32.mrf.mxu0  ;;  %v2739_v61 = vpop.f32.mrf.mxu1 }
 0x113   :  { %v1578_v60 = vadd.f32 %v2676_v56, %v4075_v12  ;;  %v2740_v0 = vadd.f32 %v2739_v61, %v2738_v57 }
 0x114   :  { %v2678_v1 = vpop.f32.mrf.mxu0  ;;  %v2741_v3 = vpop.f32.mrf.mxu1 }
 0x115   :  { %v2679_v2 = vadd.f32 %v2678_v1, %v2677_v59  ;;  %v4156_v4 = vadd.f32 %v2740_v0, %v1578_v60 }
 0x116   :  { %v2680_v5 = vpop.f32.mrf.mxu0  ;;  %v2742_v7 = vpop.f32.mrf.mxu1 }
 0x117   :  { %v1583_v6 = vadd.f32 %v2679_v2, %v4075_v12  ;;  %v2743_v10 = vadd.f32 %v2742_v7, %v2741_v3 }
 0x118   :  { %v2681_v11 = vpop.f32.mrf.mxu0  ;;  %v2744_v14 = vpop.f32.mrf.mxu1 }
 0x119   :  { %v2682_v13 = vadd.f32 %v2681_v11, %v2680_v5  ;;  %v4162_v15 = vadd.f32 %v2743_v10, %v1583_v6 }
 0x11a   :  { %v2683_v16 = vpop.f32.mrf.mxu0  ;;  %v2745_v19 = vpop.f32.mrf.mxu1 }
 0x11b   :  { %v1586_v17 = vadd.f32 %v2682_v13, %v4075_v12  ;;  %v2746_v21 = vadd.f32 %v2745_v19, %v2744_v14 }
 0x11c   :  { %v2684_v22 = vpop.f32.mrf.mxu0  ;;  %v2747_v24 = vpop.f32.mrf.mxu1 }
 0x11d   :  { %v2685_v23 = vadd.f32 %v2684_v22, %v2683_v16  ;;  %v4168_v26 = vadd.f32 %v2746_v21, %v1586_v17 }
 0x11e   :  { %v2686_v27 = vpop.f32.mrf.mxu0  ;;  %v2748_v30 = vpop.f32.mrf.mxu1 }
 0x11f   :  { %v1591_v29 = vadd.f32 %v2685_v23, %v4075_v12  ;;  %v2749_v32 = vadd.f32 %v2748_v30, %v2747_v24 }
 0x120   :  { %v2687_v34 = vpop.f32.mrf.mxu0  ;;  %v2750_v36 = vpop.f32.mrf.mxu1 }
 0x121   :  { %v2688_v35 = vadd.f32 %v2687_v34, %v2686_v27  ;;  %v4174_v37 = vadd.f32 %v2749_v32, %v1591_v29 }
 0x122   :  { %v2769_v39 = vpop.f32.mrf.mxu0  ;;  %v2751_v41 = vpop.f32.mrf.mxu1 }
 0x123   :  { %v1594_v40 = vadd.f32 %v2688_v35, %v4075_v12  ;;  %v2752_v43 = vadd.f32 %v2751_v41, %v2750_v36  ;;  %v2196_v12 = vld [vmem:[%s4515_s3 + $0x8] sm:$0xff] }
 0x124   :  { %v2770_v45 = vpop.f32.mrf.mxu0  ;;  %v2833_v47 = vpop.f32.mrf.mxu1  ;;  %3117 = vmatprep.subr.mxu1 %v2196_v12 }
 0x125   :  { %v2771_v46 = vadd.f32 %v2770_v45, %v2769_v39  ;;  %v4180_v49 = vadd.f32 %v2752_v43, %v1594_v40  ;;  %3118 = vmatpush3.msra.mxu1 %v2196_v12 }
 0x126   :  { %v2772_v50 = vpop.f32.mrf.mxu0  ;;  %v2834_v52 = vpop.f32.mrf.mxu1 }
 0x127   :  { %v1729_v51 = vadd.f32 %v2771_v46, %v4084_v25  ;;  %v2835_v54 = vadd.f32 %v2834_v52, %v2833_v47  ;;  %v2195_v25 = vld [vmem:[%s4515_s3] sm:$0xff] }
 0x128   :  { %v2773_v55 = vpop.f32.mrf.mxu0  ;;  %v2836_v57 = vpop.f32.mrf.mxu1  ;;  %3119 = vmatprep.subr.mxu1 %v2195_v25 }
 0x129   :  { %v2774_v56 = vadd.f32 %v2773_v55, %v2772_v50  ;;  %v4186_v59 = vadd.f32 %v2835_v54, %v1729_v51  ;;  %3120 = vmatpush3.msra.mxu1 %v2195_v25 }
 0x12a   :  { %v2775_v60 = vpop.f32.mrf.mxu0  ;;  %v2837_v62 = vpop.f32.mrf.mxu1 }
 0x12b   :  { %v1732_v61 = vadd.f32 %v2774_v56, %v4087_v33  ;;  %v2838_v0 = vadd.f32 %v2837_v62, %v2836_v57 }
 0x12c   :  { %v2776_v1 = vpop.f32.mrf.mxu0  ;;  %v2839_v3 = vpop.f32.mrf.mxu1 }
 0x12d   :  { %v2777_v2 = vadd.f32 %v2776_v1, %v2775_v60  ;;  %v4192_v5 = vadd.f32 %v2838_v0, %v1732_v61 }
 0x12e   :  { %v2778_v6 = vpop.f32.mrf.mxu0  ;;  %v2840_v9 = vpop.f32.mrf.mxu1 }
 0x12f   :  { %v1737_v7 = vadd.f32 %v2777_v2, %v4099_v44  ;;  %v2841_v10 = vadd.f32 %v2840_v9, %v2839_v3 }
 0x130   :  { %v2779_v11 = vpop.f32.mrf.mxu0  ;;  %v2842_v13 = vpop.f32.mrf.mxu1 }
 0x131   :  { %v2780_v33 = vadd.f32 %v2779_v11, %v2778_v6  ;;  %v4195_v14 = vadd.f32 %v2841_v10, %v1737_v7 }
 0x132   :  { %v2781_v16 = vpop.f32.mrf.mxu0  ;;  %v2843_v19 = vpop.f32.mrf.mxu1 }
 0x133   :  { %v1740_v17 = vadd.f32 %v2780_v33, %v4105_v53  ;;  %v2844_v20 = vadd.f32 %v2843_v19, %v2842_v13 }
 0x134   :  { %v2782_v21 = vpop.f32.mrf.mxu0  ;;  %v2845_v23 = vpop.f32.mrf.mxu1 }
 0x135   :  { %v2783_v22 = vadd.f32 %v2782_v21, %v2781_v16  ;;  %v4198_v24 = vadd.f32 %v2844_v20, %v1740_v17 }
 0x136   :  { %v2784_v27 = vpop.f32.mrf.mxu0  ;;  %v2846_v29 = vpop.f32.mrf.mxu1 }
 0x137   :  { %v1745_v44 = vadd.f32 %v2783_v22, %v4114_v63  ;;  %v2847_v30 = vadd.f32 %v2846_v29, %v2845_v23 }
 0x138   :  { %v2785_v31 = vpop.f32.mrf.mxu0  ;;  %v2848_v34 = vpop.f32.mrf.mxu1 }
 0x139   :  { %v2786_v32 = vadd.f32 %v2785_v31, %v2784_v27  ;;  %v4201_v35 = vadd.f32 %v2847_v30, %v1745_v44 }
 0x13a   :  { %v2787_v36 = vpop.f32.mrf.mxu0  ;;  %v2849_v39 = vpop.f32.mrf.mxu1 }
 0x13b   :  { %v1748_v53 = vadd.f32 %v2786_v32, %v4120_v8  ;;  %v2850_v40 = vadd.f32 %v2849_v39, %v2848_v34 }
 0x13c   :  { %v2788_v41 = vpop.f32.mrf.mxu0  ;;  %v2851_v43 = vpop.f32.mrf.mxu1 }
 0x13d   :  { %v2789_v42 = vadd.f32 %v2788_v41, %v2787_v36  ;;  %v4204_v45 = vadd.f32 %v2850_v40, %v1748_v53 }
 0x13e   :  { %v2790_v46 = vpop.f32.mrf.mxu0  ;;  %v2852_v47 = vpop.f32.mrf.mxu1 }
 0x13f   :  { %v1753_v63 = vadd.f32 %v2789_v42, %v4126_v18  ;;  %v2853_v50 = vadd.f32 %v2852_v47, %v2851_v43 }
 0x140   :  { %v2791_v51 = vpop.f32.mrf.mxu0  ;;  %v2854_v12 = vpop.f32.mrf.mxu1 }
 0x141   :  { %v2792_v52 = vadd.f32 %v2791_v51, %v2790_v46  ;;  %v4207_v54 = vadd.f32 %v2853_v50, %v1753_v63 }
 0x142   :  { %v2793_v55 = vpop.f32.mrf.mxu0  ;;  %v2855_v56 = vpop.f32.mrf.mxu1 }
 0x143   :  { %v1756_v8 = vadd.f32 %v2792_v52, %v4132_v28  ;;  %v2856_v57 = vadd.f32 %v2855_v56, %v2854_v12 }
 0x144   :  { %v2794_v60 = vpop.f32.mrf.mxu0  ;;  %v2857_v62 = vpop.f32.mrf.mxu1 }
 0x145   :  { %v2795_v61 = vadd.f32 %v2794_v60, %v2793_v55  ;;  %v4210_v25 = vadd.f32 %v2856_v57, %v1756_v8 }
 0x146   :  { %v2796_v0 = vpop.f32.mrf.mxu0  ;;  %v2858_v1 = vpop.f32.mrf.mxu1 }
 0x147   :  { %v1761_v18 = vadd.f32 %v2795_v61, %v4138_v38  ;;  %v2859_v2 = vadd.f32 %v2858_v1, %v2857_v62 }
 0x148   :  { %v2797_v3 = vpop.f32.mrf.mxu0  ;;  %v2860_v7 = vpop.f32.mrf.mxu1 }
 0x149   :  { %v2798_v6 = vadd.f32 %v2797_v3, %v2796_v0  ;;  %v4213_v9 = vadd.f32 %v2859_v2, %v1761_v18 }
 0x14a   :  { %v2799_v10 = vpop.f32.mrf.mxu0  ;;  %v2861_v11 = vpop.f32.mrf.mxu1 }
 0x14b   :  { %v1764_v28 = vadd.f32 %v2798_v6, %v4144_v48  ;;  %v2862_v33 = vadd.f32 %v2861_v11, %v2860_v7 }
 0x14c   :  { %v2800_v13 = vpop.f32.mrf.mxu0  ;;  %v2863_v17 = vpop.f32.mrf.mxu1 }
 0x14d   :  { %v2801_v16 = vadd.f32 %v2800_v13, %v2799_v10  ;;  %v4216_v19 = vadd.f32 %v2862_v33, %v1764_v28 }
 0x14e   :  { %v2802_v20 = vpop.f32.mrf.mxu0  ;;  %v2864_v21 = vpop.f32.mrf.mxu1 }
 0x14f   :  { %4518 = vst [vmem:[#allocation2_spill] sm:$0xff] %v4216_v19  ;;  %v1769_v38 = vadd.f32 %v2801_v16, %v4150_v58  ;;  %v2865_v22 = vadd.f32 %v2864_v21, %v2863_v17 }
 0x150   :  { %v2803_v23 = vpop.f32.mrf.mxu0  ;;  %v2866_v44 = vpop.f32.mrf.mxu1 }
 0x151   :  { %v2804_v27 = vadd.f32 %v2803_v23, %v2802_v20  ;;  %v4219_v29 = vadd.f32 %v2865_v22, %v1769_v38 }
 0x152   :  { %v2805_v30 = vpop.f32.mrf.mxu0  ;;  %v2867_v31 = vpop.f32.mrf.mxu1 }
 0x153   :  { %4519 = vst [vmem:[#allocation3_spill] sm:$0xff] %v4219_v29  ;;  %v1772_v48 = vadd.f32 %v2804_v27, %v4156_v4  ;;  %v2868_v32 = vadd.f32 %v2867_v31, %v2866_v44 }
 0x154   :  { %v2806_v34 = vpop.f32.mrf.mxu0  ;;  %v2869_v53 = vpop.f32.mrf.mxu1 }
 0x155   :  { %v2807_v36 = vadd.f32 %v2806_v34, %v2805_v30  ;;  %v4222_v39 = vadd.f32 %v2868_v32, %v1772_v48 }
 0x156   :  { %v2808_v40 = vpop.f32.mrf.mxu0  ;;  %v2870_v41 = vpop.f32.mrf.mxu1 }
 0x157   :  { %4520 = vst [vmem:[#allocation4_spill] sm:$0xff] %v4222_v39  ;;  %v1777_v58 = vadd.f32 %v2807_v36, %v4162_v15  ;;  %v2871_v42 = vadd.f32 %v2870_v41, %v2869_v53 }
 0x158   :  { %v2809_v43 = vpop.f32.mrf.mxu0  ;;  %v2872_v63 = vpop.f32.mrf.mxu1 }
 0x159   :  { %v2810_v46 = vadd.f32 %v2809_v43, %v2808_v40  ;;  %v4225_v47 = vadd.f32 %v2871_v42, %v1777_v58 }
 0x15a   :  { %v2811_v50 = vpop.f32.mrf.mxu0  ;;  %v2873_v51 = vpop.f32.mrf.mxu1 }
 0x15b   :  { %4521 = vst [vmem:[#allocation5_spill] sm:$0xff] %v4225_v47  ;;  %v1780_v4 = vadd.f32 %v2810_v46, %v4168_v26  ;;  %v2874_v52 = vadd.f32 %v2873_v51, %v2872_v63 }
 0x15c   :  { %v2812_v12 = vpop.f32.mrf.mxu0  ;;  %v4228_v8 = vpop.f32.mrf.mxu1 }
 0x15d   :  { %v2813_v55 = vadd.f32 %v2812_v12, %v2811_v50  ;;  %4522 = vst [vmem:[#allocation6_spill] sm:$0xff] %v4228_v8  ;;  %v4230_v56 = vadd.f32 %v2874_v52, %v1780_v4 }
 0x15e   :  { %v2814_v57 = vpop.f32.mrf.mxu0  ;;  %v4235_v60 = vpop.f32.mrf.mxu1 }
 0x15f   :  { %4523 = vst [vmem:[#allocation7_spill] sm:$0xff] %v4230_v56  ;;  %v4233_v15 = vadd.f32 %v2813_v55, %v4174_v37  ;;  %4525 = vst [vmem:[#allocation9_spill] sm:$0xff] %v4235_v60 }
 0x160   :  { %v2815_v61 = vpop.f32.mrf.mxu0  ;;  %v4237_v0 = vpop.f32.mrf.mxu1 }
 0x161   :  { %4524 = vst [vmem:[#allocation8_spill] sm:$0xff] %v4233_v15  ;;  %v2816_v62 = vadd.f32 %v2815_v61, %v2814_v57  ;;  %4526 = vst [vmem:[#allocation10_spill] sm:$0xff] %v4237_v0 }
 0x162   :  { %v2897_v18 = vpop.f32.mrf.mxu0  ;;  %v4242_v1 = vpop.f32.mrf.mxu1 }
 0x163   :  { %v4240_v26 = vadd.f32 %v2816_v62, %v4180_v49  ;;  %4528 = vst [vmem:[#allocation12_spill] sm:$0xff] %v4242_v1 }
 0x164   :  { %v2898_v2 = vpop.f32.mrf.mxu0  ;;  %v2961_v3 = vpop.f32.mrf.mxu1 }
 0x165   :  { %4527 = vst [vmem:[#allocation11_spill] sm:$0xff] %v4240_v26 }
 0x166   :  { %v2900_v6 = vpop.f32.mrf.mxu0  ;;  %v2962_v7 = vpop.f32.mrf.mxu1 }
 0x168   :  { %v2901_v10 = vpop.f32.mrf.mxu0  ;;  %v4244_v28 = vpop.f32.mrf.mxu1 }
 0x16a   :  { %v2903_v37 = vpop.f32.mrf.mxu0  ;;  %v2965_v11 = vpop.f32.mrf.mxu1 }
 0x16c   :  { %v2904_v33 = vpop.f32.mrf.mxu0  ;;  %v2967_v13 = vpop.f32.mrf.mxu1 }
 0x16d   :  { %v2905_v19 = vadd.f32 %v2904_v33, %v2903_v37  ;;  %v2966_v37 = vadd.f32 %v2965_v11, %v4244_v28 }
 0x16e   :  { %v2906_v16 = vpop.f32.mrf.mxu0  ;;  %v2968_v17 = vpop.f32.mrf.mxu1 }
 0x170   :  { %v2907_v20 = vpop.f32.mrf.mxu0  ;;  %v2970_v38 = vpop.f32.mrf.mxu1 }
 0x172   :  { %v2909_v21 = vpop.f32.mrf.mxu0  ;;  %v2971_v49 = vpop.f32.mrf.mxu1 }
 0x174   :  { %v2910_v22 = vpop.f32.mrf.mxu0  ;;  %v2973_v23 = vpop.f32.mrf.mxu1 }
 0x176   :  { %v2912_v27 = vpop.f32.mrf.mxu0  ;;  %v2974_v44 = vpop.f32.mrf.mxu1 }
 0x178   :  { %v2913_v30 = vpop.f32.mrf.mxu0  ;;  %v4246_v48 = vpop.f32.mrf.mxu1 }
 0x17a   :  { %v2915_v31 = vpop.f32.mrf.mxu0  ;;  %v4248_v32 = vpop.f32.mrf.mxu1 }
 0x17c   :  { %v2916_v34 = vpop.f32.mrf.mxu0  ;;  %v4250_v36 = vpop.f32.mrf.mxu1 }
 0x17e   :  { %v2918_v53 = vpop.f32.mrf.mxu0  ;;  %v4252_v40 = vpop.f32.mrf.mxu1 }
 0x180   :  { %v2919_v58 = vpop.f32.mrf.mxu0  ;;  %v4254_v41 = vpop.f32.mrf.mxu1 }
 0x182   :  { %v2921_v42 = vpop.f32.mrf.mxu0  ;;  %v4256_v43 = vpop.f32.mrf.mxu1 }
 0x184   :  { %v2922_v46 = vpop.f32.mrf.mxu0  ;;  %v4258_v63 = vpop.f32.mrf.mxu1 }
 0x186   :  { %v4260_v50 = vpop.f32.mrf.mxu0  ;;  %v4262_v4 = vpop.f32.mrf.mxu1 }
 0x188   :  { %v4264_v51 = vpop.f32.mrf.mxu0  ;;  %v4266_v52 = vpop.f32.mrf.mxu1 }
 0x189   :  { %4529 = vst [vmem:[#allocation13_spill] sm:$0xff] %v4266_v52 }
 0x18a   :  { %v4268_v12 = vpop.f32.mrf.mxu0  ;;  %v4270_v55 = vpop.f32.mrf.mxu1 }
 0x18b   :  { %4530 = vst [vmem:[#allocation14_spill] sm:$0xff] %v4270_v55  ;;  %v2899_v55 = vadd.f32 %v2898_v2, %v2897_v18 }
 0x18c   :  { %v4272_v57 = vpop.f32.mrf.mxu0  ;;  %v4274_v61 = vpop.f32.mrf.mxu1 }
 0x18d   :  { %4531 = vst [vmem:[#allocation15_spill] sm:$0xff] %v4274_v61 }
 0x18e   :  { %v4276_v62 = vpop.f32.mrf.mxu0  ;;  %v4280_v26 = vpop.f32.mrf.mxu1 }
 0x18f   :  { %4533 = vst [vmem:[#allocation17_spill] sm:$0xff] %v4280_v26 }
 0x190   :  { %v4278_v56 = vpop.f32.mrf.mxu0  ;;  %v4286_v39 = vpop.f32.mrf.mxu1 }
 0x191   :  { %4532 = vst [vmem:[#allocation16_spill] sm:$0xff] %v4278_v56  ;;  %4536 = vst [vmem:[#allocation20_spill] sm:$0xff] %v4286_v39  ;;  %v2902_v39 = vadd.f32 %v2901_v10, %v2900_v6  ;;  %v2911_v56 = vadd.f32 %v2910_v22, %v2909_v21  ;;  %v2975_v10 = vadd.f32 %v2974_v44, %v2973_v23 }
 0x192   :  { %v4282_v15 = vpop.f32.mrf.mxu0  ;;  %v4292_v60 = vpop.f32.mrf.mxu1 }
 0x193   :  { %4534 = vst [vmem:[#allocation18_spill] sm:$0xff] %v4282_v15  ;;  %4539 = vst [vmem:[#allocation23_spill] sm:$0xff] %v4292_v60  ;;  %v2963_v15 = vadd.f32 %v2962_v7, %v2961_v3  ;;  %v2969_v60 = vadd.f32 %v2968_v17, %v2967_v13  ;;  %v1926_v2 = vadd.f32 %v2902_v39, %v4192_v5 }
 0x194   :  { %v4284_v47 = vpop.f32.mrf.mxu0  ;;  %v4298_v61 = vpop.f32.mrf.mxu1  ;;  %v2972_v3 = vadd.f32 %v2971_v49, %v2970_v38  ;;  %v1939_v7 = vadd.f32 %v2911_v56, %v4201_v35  ;;  %v2914_v17 = vadd.f32 %v2913_v30, %v2912_v27  ;;  %v2981_v56 = vadd.f32 %v4252_v40, %v4250_v36 }
 0x195   :  { %4535 = vst [vmem:[#allocation19_spill] sm:$0xff] %v4284_v47  ;;  %v1923_v47 = vadd.f32 %v2899_v55, %v4186_v59  ;;  %v2023_v39 = vadd.f32 %v2966_v37, %v1926_v2  ;;  %v2978_v38 = vadd.f32 %v4248_v32, %v4246_v48  ;;  %v2984_v27 = vadd.f32 %v4256_v43, %v4254_v41 }
 0x196   :  { %v4288_v1 = vpop.f32.mrf.mxu0  ;;  %v2036_v11 = vadd.f32 %v2975_v10, %v1939_v7  ;;  %v2987_v30 = vadd.f32 %v4262_v4, %v4258_v63  ;;  %v2929_v48 = vadd.f32 %v4272_v57, %v4268_v12  ;;  %v4543_v63 = vld [vmem:[#allocation3_spill] sm:$0xff]  ;;  %v4549_v7 = vld [vmem:[#allocation13_spill] sm:$0xff] }
 0x197   :  { %4537 = vst [vmem:[#allocation21_spill] sm:$0xff] %v4288_v1  ;;  %v2908_v1 = vadd.f32 %v2907_v20, %v2906_v16  ;;  %v2020_v33 = vadd.f32 %v2963_v15, %v1923_v47  ;;  %v1942_v20 = vadd.f32 %v2914_v17, %v4204_v45  ;;  %v4552_v17 = vld [vmem:[#allocation9_spill] sm:$0xff] }
 0x198   :  { %v4290_v0 = vpop.f32.mrf.mxu0  ;;  %v4542_v41 = vld [vmem:[#allocation16_spill] sm:$0xff]  ;;  %v1963_v4 = vadd.f32 %v2929_v48, %v4543_v63 }
 0x199   :  { %4538 = vst [vmem:[#allocation22_spill] sm:$0xff] %v4290_v0  ;;  %v1931_v0 = vadd.f32 %v2905_v19, %v4195_v14  ;;  %v1934_v59 = vadd.f32 %v2908_v1, %v4198_v24  ;;  %v2917_v14 = vadd.f32 %v2916_v34, %v2915_v31  ;;  %v2920_v24 = vadd.f32 %v2919_v58, %v2918_v53 }
 0x19a   :  { %v4294_v8 = vpop.f32.mrf.mxu0  ;;  %v4546_v55 = vld [vmem:[#allocation18_spill] sm:$0xff] }
 0x19b   :  { %4540 = vst [vmem:[#allocation24_spill] sm:$0xff] %v4294_v8  ;;  %v4306_v8 = vpop.f32.mrf.mxu1  ;;  %v2028_v13 = vadd.f32 %v2969_v60, %v1931_v0  ;;  %v2031_v1 = vadd.f32 %v2972_v3, %v1934_v59  ;;  %v1947_v35 = vadd.f32 %v2917_v14, %v4207_v54  ;;  %v2923_v60 = vadd.f32 %v2922_v46, %v2921_v42  ;;  %v4548_v59 = vld [vmem:[#allocation2_spill] sm:$0xff] }
 0x19c   :  { %v4296_v52 = vpop.f32.mrf.mxu0  ;;  %v1950_v23 = vadd.f32 %v2920_v24, %v4210_v25  ;;  %v2926_v25 = vadd.f32 %v4264_v51, %v4260_v50  ;;  %v2932_v42 = vadd.f32 %v4542_v41, %v4276_v62  ;;  %v4544_v50 = vld [vmem:[#allocation15_spill] sm:$0xff]  ;;  %v4545_v51 = vld [vmem:[#allocation17_spill] sm:$0xff]  ;;  %v4550_v62 = vld [vmem:[#allocation14_spill] sm:$0xff] }
 0x19d   :  { %v4314_v19 = vpop.f32.mrf.mxu1  ;;  %v1955_v45 = vadd.f32 %v2923_v60, %v4213_v9  ;;  %v2044_v32 = vadd.f32 %v2981_v56, %v1947_v35  ;;  %v2039_v9 = vadd.f32 %v2978_v38, %v1942_v20  ;;  %v2993_v12 = vadd.f32 %v4545_v51, %v4544_v50  ;;  %v4547_v57 = vld [vmem:[#allocation19_spill] sm:$0xff]  ;;  %v4553_v24 = vld [vmem:[#allocation10_spill] sm:$0xff]  ;;  %v4555_v56 = vld [vmem:[#allocation4_spill] sm:$0xff] }
 0x19e   :  { %v4300_v26 = vpop.f32.mrf.mxu0  ;;  %v2047_v43 = vadd.f32 %v2984_v27, %v1950_v23  ;;  %v1958_v3 = vadd.f32 %v2926_v25, %v4548_v59  ;;  %v2990_v10 = vadd.f32 %v4550_v62, %v4549_v7  ;;  %v1966_v60 = vadd.f32 %v2932_v42, %v4555_v56 }
 0x19f   :  { %4541 = vst [vmem:[#allocation25_spill] sm:$0xff] %v4300_v26  ;;  %v4325_v0 = vpop.f32.mrf.mxu1 }
 0x1a0   :  { %v4303_v29 = vpop.f32.mrf.mxu0 }
 0x1a1   :  { %v3003_v31 = vpop.f32.mrf.mxu1 }
 0x1a2   :  { %v3075_v18 = vpop.f32.mrf.mxu0  ;;  %v4559_v23 = vld [vmem:[#allocation24_spill] sm:$0xff] }
 0x1a3   :  { %v4318_v47 = vadd.f32 %v3075_v18, %v2028_v13  ;;  %v2935_v18 = vadd.f32 %v4547_v57, %v4546_v55  ;;  %v3004_v2 = vpop.f32.mrf.mxu1  ;;  %v2941_v27 = vadd.f32 %v4296_v52, %v4559_v23 }
 0x1a4   :  { %v2116_v26 = vpop.f32.mrf.mxu0 }
 0x1a5   :  { %v4311_v6 = vadd.f32 %v2116_v26, %v2020_v33  ;;  %v2181_v54 = vmul.f32 %v4318_v47, %v4318_v47  ;;  %v2052_v33 = vadd.f32 %v2987_v30, %v1955_v45  ;;  %v3006_v45 = vpop.f32.mrf.mxu1  ;;  %v2060_v30 = vadd.f32 %v2993_v12, %v1963_v4  ;;  %v4564_v4 = vld [vmem:[#allocation11_spill] sm:$0xff] }
 0x1a6   :  { %v3076_v16 = vpop.f32.mrf.mxu0  ;;  %v4563_v52 = vld [vmem:[#allocation25_spill] sm:$0xff]  ;;  %v3005_v12 = vadd.f32 %v3004_v2, %v3003_v31 }
 0x1a7   :  { %v2179_v5 = vmul.f32 %v4311_v6, %v4311_v6  ;;  %v4330_v21 = vadd.f32 %v3076_v16, %v2031_v1  ;;  %v4551_v16 = vld [vmem:[#allocation6_spill] sm:$0xff]  ;;  %v4554_v1 = vld [vmem:[#allocation12_spill] sm:$0xff]  ;;  %v2944_v42 = vadd.f32 %v4303_v29, %v4563_v52  ;;  %v3007_v55 = vpop.f32.mrf.mxu1 }
 0x1a8   :  { %v2119_v15 = vpop.f32.mrf.mxu0  ;;  %v2880_v35 = vadd.f32 %v4554_v1, %v4553_v24  ;;  %v3008_v31 = vadd.f32 %v3007_v55, %v3006_v45 }
 0x1a9   :  { %v4320_v26 = vadd.f32 %v2119_v15, %v2023_v39  ;;  %3121 = vmatprep.mubr.f32.mxu1 %v2179_v5  ;;  %v2182_v36 = vmul.f32 %v4330_v21, %v4330_v21  ;;  %v2877_v5 = vadd.f32 %v4552_v17, %v4551_v16 }
 0x1aa   :  { %v3079_v28 = vpop.f32.mrf.mxu0  ;;  %v1885_v50 = vadd.f32 %v2880_v35, %v4564_v4 }
 0x1ab   :  { %v2180_v49 = vmul.f32 %v4320_v26, %v4320_v26  ;;  %v4352_v40 = vadd.f32 %v3079_v28, %v2044_v32  ;;  %v4556_v28 = vld [vmem:[#allocation20_spill] sm:$0xff]  ;;  %v4560_v32 = vld [vmem:[#allocation21_spill] sm:$0xff] }
 0x1ac   :  { %v2132_v22 = vpop.f32.mrf.mxu0 }
 0x1ad   :  { %v4339_v44 = vadd.f32 %v2132_v22, %v2036_v11  ;;  %3122 = vmatmul.mubr.f32.vlgmr.msra.gmra.mxu1 %v2180_v49  ;;  %v2185_v39 = vmul.f32 %v4352_v40, %v4352_v40  ;;  %v4557_v11 = vld [vmem:[#allocation23_spill] sm:$0xff]  ;;  %v4558_v49 = vld [vmem:[#allocation5_spill] sm:$0xff]  ;;  %v2999_v22 = vadd.f32 %v4306_v8, %v4298_v61 }
 0x1ae   :  { %v3080_v34 = vpop.f32.mrf.mxu0  ;;  %3124 = vmatprep.mubr.f32.mxu1 %v2181_v54  ;;  %v2996_v20 = vadd.f32 %v4557_v11, %v4556_v28  ;;  %v1971_v54 = vadd.f32 %v2935_v18, %v4558_v49  ;;  %v4430_v28 = vld [vmem:[%s4516_s4] ss:$0 sm:$0xff] }
 0x1af   :  { %v2183_v53 = vmul.f32 %v4339_v44, %v4339_v44  ;;  %v4366_v14 = vadd.f32 %v3080_v34, %v2047_v43  ;;  %v4561_v34 = vld [vmem:[#allocation22_spill] sm:$0xff] }
 0x1b0   :  { %v2135_v58 = vpop.f32.mrf.mxu0  ;;  %v2938_v25 = vadd.f32 %v4561_v34, %v4560_v32  ;;  %v2063_v43 = vadd.f32 %v2996_v20, %v1966_v60  ;;  %v2068_v18 = vadd.f32 %v2999_v22, %v1971_v54 }
 0x1b1   :  { %v4356_v46 = vadd.f32 %v2135_v58, %v2039_v9  ;;  %3125 = vmatmul.mubr.f32.gmra.mxu1 %v2182_v36  ;;  %v2186_v36 = vmul.f32 %v4366_v14, %v4366_v14  ;;  %v2055_v9 = vadd.f32 %v2990_v10, %v1958_v3  ;;  %v4562_v58 = vld [vmem:[#allocation8_spill] sm:$0xff]  ;;  %v1982_v10 = vadd.f32 %v2944_v42, %v1885_v50 }
 0x1b2   :  { %v3083_v37 = vpop.f32.mrf.mxu0  ;;  %3127 = vmatprep.mubr.f32.mxu1 %v2183_v53  ;;  %v1882_v41 = vadd.f32 %v2877_v5, %v4562_v58 }
 0x1b3   :  { %v2184_v13 = vmul.f32 %v4356_v46, %v4356_v46  ;;  %v4393_v8 = vadd.f32 %v3083_v37, %v2060_v30  ;;  %v3002_v37 = vadd.f32 %v4325_v0, %v4314_v19 }
 0x1b4   :  { %v2148_v15 = vpop.f32.mrf.mxu0  ;;  %v1979_v51 = vadd.f32 %v2941_v27, %v1882_v41 }
 0x1b5   :  { %v4379_v38 = vadd.f32 %v2148_v15, %v2052_v33  ;;  %3128 = vmatmul.mubr.f32.gmra.mxu1 %v2184_v13  ;;  %v4565_v33 = vld [vmem:[#allocation7_spill] sm:$0xff]  ;;  %v2189_v7 = vmul.f32 %v4393_v8, %v4393_v8  ;;  %v2079_v15 = vadd.f32 %v3008_v31, %v1982_v10 }
 0x1b6   :  { %v3084_v48 = vpop.f32.mrf.mxu0  ;;  %3130 = vmatprep.mubr.f32.mxu1 %v2185_v39  ;;  %v1974_v59 = vadd.f32 %v2938_v25, %v4565_v33  ;;  %v2076_v13 = vadd.f32 %v3005_v12, %v1979_v51 }
 0x1b7   :  { %v2187_v53 = vmul.f32 %v4379_v38, %v4379_v38  ;;  %v4403_v3 = vadd.f32 %v3084_v48, %v2063_v43 }
 0x1b8   :  { %v2151_v61 = vpop.f32.mrf.mxu0  ;;  %v2071_v17 = vadd.f32 %v3002_v37, %v1974_v59 }
 0x1b9   :  { %v4397_v63 = vadd.f32 %v2151_v61, %v2055_v9  ;;  %3131 = vmatmul.mubr.f32.gmra.mxu1 %v2186_v36  ;;  %v2190_v19 = vmul.f32 %v4403_v3, %v4403_v3 }
 0x1ba   :  { %v3087_v57 = vpop.f32.mrf.mxu0  ;;  %3133 = vmatprep.mubr.f32.mxu1 %v2187_v53 }
 0x1bb   :  { %v2188_v29 = vmul.f32 %v4397_v63, %v4397_v63  ;;  %v4415_v5 = vadd.f32 %v3087_v57, %v2076_v13 }
 0x1bc   :  { %v2164_v62 = vpop.f32.mrf.mxu0 }
 0x1bd   :  { %v4409_v2 = vadd.f32 %v2164_v62, %v2068_v18  ;;  %3134 = vmatmul.mubr.f32.gmra.mxu1 %v2188_v29  ;;  %v2193_v56 = vmul.f32 %v4415_v5, %v4415_v5 }
 0x1be   :  { %v3088_v16 = vpop.f32.mrf.mxu0  ;;  %3136 = vmatprep.mubr.f32.mxu1 %v2189_v7 }
 0x1bf   :  { %v2191_v0 = vmul.f32 %v4409_v2, %v4409_v2  ;;  %v4419_v1 = vadd.f32 %v3088_v16, %v2079_v15 }
 0x1c0   :  { %v2167_v39 = vpop.f32.mrf.mxu0 }
 0x1c1   :  { %v4417_v24 = vadd.f32 %v2167_v39, %v2071_v17  ;;  %3137 = vmatmul.mubr.f32.gmra.mxu1 %v2190_v19  ;;  %v2194_v60 = vmul.f32 %v4419_v1, %v4419_v1 }
 0x1c2   :  { %3139 = vmatprep.mubr.f32.mxu1 %v2191_v0 }
 0x1c3   :  { %v2192_v35 = vmul.f32 %v4417_v24, %v4417_v24 }
 0x1c5   :  { %3140 = vmatmul.mubr.f32.gmra.mxu1 %v2192_v35 }
 0x1c6   :  { %3142 = vmatprep.mubr.f32.mxu1 %v2193_v56 }
 0x1c9   :  { %3143 = vmatmul.mubr.f32.gmra.mxu1 %v2194_v60 }
 0x26d   :  { %v3123_v11 = vpop.f32.mrf.mxu1 }
 0x26e   :  { %v2290_v20 = vadd.f32 %v3123_v11, %v4430_v28 }
 0x26f   :  { %v2284_v49 = vpop.f32.mrf.mxu1 }
 0x270   :  { %3401 = vrsqrt.f32 %v2290_v20  ;;  %v2285_v54 = vadd.f32 %v4430_v28, %v2284_v49 }
 0x271   :  { %v3126_v22 = vpop.f32.mrf.mxu1 }
 0x272   :  { %3403 = vrsqrt.f32 %v2285_v54  ;;  %v2300_v23 = vadd.f32 %v3126_v22, %v4430_v28 }
 0x273   :  { %v2294_v27 = vpop.f32.mrf.mxu1 }
 0x274   :  { %3405 = vrsqrt.f32 %v2300_v23  ;;  %v2295_v45 = vadd.f32 %v4430_v28, %v2294_v27 }
 0x275   :  { %v3129_v30 = vpop.f32.mrf.mxu1 }
 0x276   :  { %3407 = vrsqrt.f32 %v2295_v45  ;;  %v2310_v48 = vadd.f32 %v3129_v30, %v4430_v28 }
 0x277   :  { %v2304_v32 = vpop.f32.mrf.mxu1 }
 0x278   :  { %3409 = vrsqrt.f32 %v2310_v48  ;;  %v2305_v34 = vadd.f32 %v4430_v28, %v2304_v32 }
 0x279   :  { %v3132_v25 = vpop.f32.mrf.mxu1 }
 0x27a   :  { %3411 = vrsqrt.f32 %v2305_v34  ;;  %v2320_v36 = vadd.f32 %v3132_v25, %v4430_v28 }
 0x27b   :  { %v2314_v53 = vpop.f32.mrf.mxu1 }
 0x27c   :  { %3413 = vrsqrt.f32 %v2320_v36  ;;  %v2315_v9 = vadd.f32 %v4430_v28, %v2314_v53 }
 0x27d   :  { %v3402_v58 = vpop.eup %3401  ;;  %v3135_v41 = vpop.f32.mrf.mxu1 }
 0x27e   :  { %v2380_v61 = vmul.f32 %v3402_v58, %v4320_v26  ;;  %3415 = vrsqrt.f32 %v2315_v9  ;;  %v2330_v52 = vadd.f32 %v3135_v41, %v4430_v28 }
 0x27f   :  { %v3404_v42 = vpop.eup %3403  ;;  %v2324_v43 = vpop.f32.mrf.mxu1 }
 0x280   :  { %2396 = vst [vmem:[%s4517_s5 + $0x8] sm:$0xff] %v2380_v61  ;;  %v2379_v4 = vmul.f32 %v3404_v42, %v4311_v6  ;;  %3417 = vrsqrt.f32 %v2330_v52  ;;  %v2325_v50 = vadd.f32 %v4430_v28, %v2324_v43 }
 0x281   :  { %v3406_v51 = vpop.eup %3405  ;;  %v3138_v12 = vpop.f32.mrf.mxu1 }
 0x282   :  { %2395 = vst [vmem:[%s4517_s5] sm:$0xff] %v2379_v4  ;;  %v2382_v26 = vmul.f32 %v3406_v51, %v4330_v21  ;;  %3419 = vrsqrt.f32 %v2325_v50  ;;  %v2340_v55 = vadd.f32 %v3138_v12, %v4430_v28 }
 0x283   :  { %v3408_v57 = vpop.eup %3407  ;;  %v2334_v18 = vpop.f32.mrf.mxu1 }
 0x284   :  { %2398 = vst [vmem:[%s4517_s5 + $0x18] sm:$0xff] %v2382_v26  ;;  %v2381_v6 = vmul.f32 %v3408_v57, %v4318_v47  ;;  %3421 = vrsqrt.f32 %v2340_v55  ;;  %v2335_v33 = vadd.f32 %v4430_v28, %v2334_v18 }
 0x285   :  { %v3410_v59 = vpop.eup %3409  ;;  %v3141_v37 = vpop.f32.mrf.mxu1 }
 0x286   :  { %2397 = vst [vmem:[%s4517_s5 + $0x10] sm:$0xff] %v2381_v6  ;;  %v2384_v21 = vmul.f32 %v3410_v59, %v4356_v46  ;;  %3423 = vrsqrt.f32 %v2335_v33  ;;  %v2350_v29 = vadd.f32 %v3141_v37, %v4430_v28 }
 0x287   :  { %v3412_v7 = vpop.eup %3411  ;;  %v2344_v62 = vpop.f32.mrf.mxu1 }
 0x288   :  { %2400 = vst [vmem:[%s4517_s5 + $0x28] sm:$0xff] %v2384_v21  ;;  %v2383_v47 = vmul.f32 %v3412_v7, %v4339_v44  ;;  %3425 = vrsqrt.f32 %v2350_v29  ;;  %v2345_v10 = vadd.f32 %v4430_v28, %v2344_v62 }
 0x289   :  { %v3414_v31 = vpop.eup %3413  ;;  %v3144_v13 = vpop.f32.mrf.mxu1 }
 0x28a   :  { %2399 = vst [vmem:[%s4517_s5 + $0x20] sm:$0xff] %v2383_v47  ;;  %v2386_v46 = vmul.f32 %v3414_v31, %v4366_v14  ;;  %3427 = vrsqrt.f32 %v2345_v10  ;;  %v2360_v16 = vadd.f32 %v3144_v13, %v4430_v28 }
 0x28b   :  { %v3416_v19 = vpop.eup %3415  ;;  %v2354_v0 = vpop.f32.mrf.mxu1 }
 0x28c   :  { %2402 = vst [vmem:[%s4517_s5 + $0x38] sm:$0xff] %v2386_v46  ;;  %v2385_v44 = vmul.f32 %v3416_v19, %v4352_v40  ;;  %3429 = vrsqrt.f32 %v2360_v16  ;;  %v2355_v17 = vadd.f32 %v4430_v28, %v2354_v0 }
 0x28d   :  { %v3418_v39 = vpop.eup %3417 }
 0x28e   :  { %2401 = vst [vmem:[%s4517_s5 + $0x30] sm:$0xff] %v2385_v44  ;;  %v2388_v14 = vmul.f32 %v3418_v39, %v4397_v63  ;;  %3431 = vrsqrt.f32 %v2355_v17 }
 0x28f   :  { %v3420_v15 = vpop.eup %3419 }
 0x290   :  { %2404 = vst [vmem:[%s4517_s5 + $0x48] sm:$0xff] %v2388_v14  ;;  %v2387_v35 = vmul.f32 %v3420_v15, %v4379_v38 }
 0x291   :  { %v3422_v56 = vpop.eup %3421 }
 0x292   :  { %2403 = vst [vmem:[%s4517_s5 + $0x40] sm:$0xff] %v2387_v35  ;;  %v2390_v40 = vmul.f32 %v3422_v56, %v4403_v3 }
 0x293   :  { %v3424_v60 = vpop.eup %3423 }
 0x294   :  { %2406 = vst [vmem:[%s4517_s5 + $0x58] sm:$0xff] %v2390_v40  ;;  %v2389_v63 = vmul.f32 %v3424_v60, %v4393_v8 }
 0x295   :  { %v3426_v28 = vpop.eup %3425 }
 0x296   :  { %2405 = vst [vmem:[%s4517_s5 + $0x50] sm:$0xff] %v2389_v63  ;;  %v2392_v38 = vmul.f32 %v3426_v28, %v4417_v24 }
 0x297   :  { %v3428_v11 = vpop.eup %3427 }
 0x298   :  { %2408 = vst [vmem:[%s4517_s5 + $0x68] sm:$0xff] %v2392_v38  ;;  %v2391_v3 = vmul.f32 %v3428_v11, %v4409_v2 }
 0x299   :  { %v3430_v20 = vpop.eup %3429 }
 0x29a   :  { %2407 = vst [vmem:[%s4517_s5 + $0x60] sm:$0xff] %v2391_v3  ;;  %v2394_v8 = vmul.f32 %v3430_v20, %v4419_v1 }
 0x29b   :  { %v3432_v49 = vpop.eup %3431 }
 0x29c   :  { %2410 = vst [vmem:[%s4517_s5 + $0x78] sm:$0xff] %v2394_v8  ;;  %v2393_v24 = vmul.f32 %v3432_v49, %v4415_v5 }
 0x29e   :  { %2409 = vst [vmem:[%s4517_s5 + $0x70] sm:$0xff] %v2393_v24 }

// kernel: _lambda_.6
= control target key start
LH: loop header
LB: loop body
LE: loop exit
PB: predicated region body
PF: predicated region fallthrough
CT: control target
= control target key end

     0   :  { %s2515_s1 = inlined_call_operand.vmem [shape: bf16[1664,128], index: 1, kind: input, shape index: {}]   ;;  %s2516_s0 = inlined_call_operand.vmem [shape: bf16[32,1664], index: 0, kind: input, shape index: {}]   ;;  %s2517_s3 = inlined_call_operand.vmem [shape: f32[128,128], index: 3, kind: input, shape index: {}]   ;;  %s2518_s2 = inlined_call_operand.vmem [shape: f32[1,128], index: 2, kind: input, shape index: {}]   ;;  %s2519_s4 = inlined_call_operand.vmem [shape: f32[1,128], index: 4, kind: input, shape index: {}]   ;;  %s2520_s5 = inlined_call_operand.vmem [shape: f32[32,128], index: 5, kind: output, shape index: {}]  }
   0x1   :  { %v1879_v0 = vld [vmem:[%s2515_s1 + $0x78] sm:$0xff]   ;;  %v1883_v4 = vld [vmem:[%s2515_s1 + $0x70] sm:$0xff]   ;;  %v1887_v8 = vld [vmem:[%s2515_s1 + $0x68] sm:$0xff]  }
   0x2   :  { %v1880_v1 = vld [vmem:[%s2515_s1 + $0x38] sm:$0xff]   ;;  %1623 = vmatprep.subr.bf16.mxu0 %v1879_v0  ;;  %v1884_v5 = vld [vmem:[%s2515_s1 + $0x30] sm:$0xff]   ;;  %v1888_v9 = vld [vmem:[%s2515_s1 + $0x28] sm:$0xff]  }
   0x3   :  { %v1881_v2 = vld [vmem:[%s2515_s1 + $0xf8] sm:$0xff]   ;;  %1624 = vmatpush3.bf16.msra.mxu0 %v1880_v1  ;;  %v1885_v6 = vld [vmem:[%s2515_s1 + $0xf0] sm:$0xff]   ;;  %v1889_v10 = vld [vmem:[%s2515_s1 + $0xe8] sm:$0xff]  }
   0x4   :  { %v1882_v3 = vld [vmem:[%s2515_s1 + $0xb8] sm:$0xff]   ;;  %1651 = vmatprep.subr.bf16.mxu1 %v1881_v2  ;;  %1625 = vmatprep.subr.bf16.mxu0 %v1883_v4  ;;  %v1886_v7 = vld [vmem:[%s2515_s1 + $0xb0] sm:$0xff]   ;;  %v1890_v11 = vld [vmem:[%s2515_s1 + $0xa8] sm:$0xff]  }
   0x5   :  { %1652 = vmatpush3.bf16.msra.mxu1 %v1882_v3  ;;  %v1891_v12 = vld [vmem:[%s2515_s1 + $0x60] sm:$0xff]   ;;  %v1895_v16 = vld [vmem:[%s2515_s1 + $0x58] sm:$0xff]   ;;  %v1899_v20 = vld [vmem:[%s2515_s1 + $0x50] sm:$0xff]  }
   0x6   :  { %1653 = vmatprep.subr.bf16.mxu1 %v1885_v6  ;;  %v1892_v13 = vld [vmem:[%s2515_s1 + $0x20] sm:$0xff]   ;;  %v1896_v17 = vld [vmem:[%s2515_s1 + $0x18] sm:$0xff]   ;;  %v1900_v21 = vld [vmem:[%s2515_s1 + $0x10] sm:$0xff]  }
   0x7   :  { %1626 = vmatpush3.bf16.msra.mxu0 %v1884_v5  ;;  %v1893_v14 = vld [vmem:[%s2515_s1 + $0xe0] sm:$0xff]   ;;  %v1897_v18 = vld [vmem:[%s2515_s1 + $0xd8] sm:$0xff]   ;;  %v1901_v22 = vld [vmem:[%s2515_s1 + $0xd0] sm:$0xff]  }
   0x8   :  { %1627 = vmatprep.subr.bf16.mxu0 %v1887_v8  ;;  %v1894_v15 = vld [vmem:[%s2515_s1 + $0xa0] sm:$0xff]   ;;  %v1898_v19 = vld [vmem:[%s2515_s1 + $0x98] sm:$0xff]   ;;  %v1902_v23 = vld [vmem:[%s2515_s1 + $0x90] sm:$0xff]  }
   0x9   :  { %1654 = vmatpush3.bf16.msra.mxu1 %v1886_v7  ;;  %v1903_v24 = vld [vmem:[%s2515_s1 + $0x48] sm:$0xff]   ;;  %v1907_v28 = vld [vmem:[%s2515_s1 + $0x40] sm:$0xff]   ;;  %v1914_v34 = vld [vmem:[%s2515_s1 + $0x178] sm:$0xff]  }
   0xa   :  { %1655 = vmatprep.subr.bf16.mxu1 %v1889_v10  ;;  %v1904_v25 = vld [vmem:[%s2515_s1 + $0x8] sm:$0xff]   ;;  %v1908_v29 = vld [vmem:[%s2515_s1] sm:$0xff]   ;;  %v1918_v37 = vld [vmem:[%s2515_s1 + $0x138] sm:$0xff]  }
   0xb   :  { %1628 = vmatpush3.bf16.msra.mxu0 %v1888_v9  ;;  %v1905_v26 = vld [vmem:[%s2515_s1 + $0xc8] sm:$0xff]   ;;  %v1909_v30 = vld [vmem:[%s2515_s1 + $0xc0] sm:$0xff]   ;;  %v1919_v38 = vld [vmem:[%s2515_s1 + $0x1f8] sm:$0xff]  }
   0xc   :  { %1629 = vmatprep.subr.bf16.mxu0 %v1891_v12  ;;  %v1906_v27 = vld [vmem:[%s2515_s1 + $0x88] sm:$0xff]   ;;  %v1910_v31 = vld [vmem:[%s2516_s0] ss:$52 sps:$4 sm:$0xff]   ;;  %v1912_v32 = vld [vmem:[%s2516_s0 + $0x4] ss:$52 sps:$4 sm:$0xff]  }
   0xd   :  { %1656 = vmatpush3.bf16.msra.mxu1 %v1890_v11  ;;  %v1913_v33 = vld [vmem:[%s2515_s1 + $0x80] sm:$0xff]   ;;  %1052 = vmatprep.mubr.bf16.mxu0 %v1912_v32  ;;  %v1915_v35 = vld [vmem:[%s2516_s0 + $0x8] ss:$52 sps:$4 sm:$0xff]   ;;  %v1921_v40 = vld [vmem:[%s2515_s1 + $0x170] sm:$0xff]  }
   0xe   :  { %1657 = vmatprep.subr.bf16.mxu1 %v1893_v14  ;;  %v1917_v36 = vld [vmem:[%s2516_s0 + $0xc] ss:$52 sps:$4 sm:$0xff]   ;;  %v1920_v39 = vld [vmem:[%s2515_s1 + $0x1b8] sm:$0xff]   ;;  %v1922_v41 = vld [vmem:[%s2515_s1 + $0x130] sm:$0xff]  }
   0xf   :  { %1630 = vmatpush3.bf16.msra.mxu0 %v1892_v13  ;;  %1101 = vmatprep.mubr.bf16.mxu1 %v1917_v36  ;;  %v1923_v42 = vld [vmem:[%s2515_s1 + $0x1f0] sm:$0xff]   ;;  %v1925_v44 = vld [vmem:[%s2515_s1 + $0x168] sm:$0xff]   ;;  %v1929_v48 = vld [vmem:[%s2515_s1 + $0x160] sm:$0xff]  }
  0x10   :  { %1631 = vmatprep.subr.bf16.mxu0 %v1895_v16  ;;  %v1924_v43 = vld [vmem:[%s2515_s1 + $0x1b0] sm:$0xff]   ;;  %v1926_v45 = vld [vmem:[%s2515_s1 + $0x128] sm:$0xff]   ;;  %v1930_v49 = vld [vmem:[%s2515_s1 + $0x120] sm:$0xff]  }
  0x11   :  { %1658 = vmatpush3.bf16.msra.mxu1 %v1894_v15  ;;  %v1927_v46 = vld [vmem:[%s2515_s1 + $0x1e8] sm:$0xff]   ;;  %v1931_v50 = vld [vmem:[%s2515_s1 + $0x1e0] sm:$0xff]   ;;  %v1933_v52 = vld [vmem:[%s2515_s1 + $0x158] sm:$0xff]  }
  0x12   :  { %1659 = vmatprep.subr.bf16.mxu1 %v1897_v18  ;;  %v1928_v47 = vld [vmem:[%s2515_s1 + $0x1a8] sm:$0xff]   ;;  %v1932_v51 = vld [vmem:[%s2515_s1 + $0x1a0] sm:$0xff]   ;;  %v1934_v53 = vld [vmem:[%s2515_s1 + $0x118] sm:$0xff]  }
  0x13   :  { %1632 = vmatpush3.bf16.msra.mxu0 %v1896_v17  ;;  %v1935_v54 = vld [vmem:[%s2516_s0 + $0x6c] ss:$52 sps:$4 sm:$0xff]   ;;  %v1937_v55 = vld [vmem:[%s2515_s1 + $0x1d8] sm:$0xff]   ;;  %v1940_v58 = vld [vmem:[%s2516_s0 + $0x74] ss:$52 sps:$4 sm:$0xff]  }
  0x14   :  { %1633 = vmatprep.subr.bf16.mxu0 %v1899_v20  ;;  %v1938_v56 = vld [vmem:[%s2516_s0 + $0x68] ss:$52 sps:$4 sm:$0xff]   ;;  %v1942_v59 = vld [vmem:[%s2515_s1 + $0x150] sm:$0xff]   ;;  %v1951_v4 = vld [vmem:[%s2515_s1 + $0x140] sm:$0xff]  }
  0x15   :  { %1660 = vmatpush3.bf16.msra.mxu1 %v1898_v19  ;;  %v1939_v57 = vld [vmem:[%s2515_s1 + $0x198] sm:$0xff]   ;;  %v1943_v60 = vld [vmem:[%s2516_s0 + $0x70] ss:$52 sps:$4 sm:$0xff]   ;;  %v1947_v0 = vld [vmem:[%s2515_s1 + $0x148] sm:$0xff]  }
  0x16   :  { %1661 = vmatprep.subr.bf16.mxu1 %v1901_v22  ;;  %v1944_v61 = vld [vmem:[%s2515_s1 + $0x110] sm:$0xff]   ;;  %v1948_v1 = vld [vmem:[%s2515_s1 + $0x108] sm:$0xff]   ;;  %v1952_v5 = vld [vmem:[%s2515_s1 + $0x100] sm:$0xff]  }
  0x17   :  { %1634 = vmatpush3.bf16.msra.mxu0 %v1900_v21  ;;  %v1945_v62 = vld [vmem:[%s2515_s1 + $0x1d0] sm:$0xff]   ;;  %v1949_v2 = vld [vmem:[%s2515_s1 + $0x1c8] sm:$0xff]   ;;  %v1953_v6 = vld [vmem:[%s2515_s1 + $0x1c0] sm:$0xff]  }
  0x18   :  { %1635 = vmatprep.subr.bf16.mxu0 %v1903_v24  ;;  %v1946_v63 = vld [vmem:[%s2515_s1 + $0x190] sm:$0xff]   ;;  %v1950_v3 = vld [vmem:[%s2515_s1 + $0x188] sm:$0xff]   ;;  %v1957_v9 = vld [vmem:[%s2515_s1 + $0x180] sm:$0xff]  }
  0x19   :  { %1662 = vmatpush3.bf16.msra.mxu1 %v1902_v23  ;;  %v1954_v7 = vld [vmem:[%s2516_s0 + $0x10] ss:$52 sps:$4 sm:$0xff]   ;;  %v1956_v8 = vld [vmem:[%s2516_s0 + $0x14] ss:$52 sps:$4 sm:$0xff]   ;;  %v1958_v10 = vld [vmem:[%s2515_s1 + $0x278] sm:$0xff]  }
  0x1a   :  { %1663 = vmatprep.subr.bf16.mxu1 %v1905_v26  ;;  %v1959_v11 = vld [vmem:[%s2516_s0 + $0x18] ss:$52 sps:$4 sm:$0xff]   ;;  %v1961_v12 = vld [vmem:[%s2516_s0 + $0x1c] ss:$52 sps:$4 sm:$0xff]  }
  0x1b   :  { %1636 = vmatpush3.bf16.msra.mxu0 %v1904_v25  ;;  %v1962_v13 = vld [vmem:[%s2515_s1 + $0x238] sm:$0xff]   ;;  %v1965_v16 = vld [vmem:[%s2515_s1 + $0x270] sm:$0xff]   ;;  %v1972_v22 = vld [vmem:[%s2515_s1 + $0x268] sm:$0xff]  }
  0x1c   :  { %1637 = vmatprep.subr.bf16.mxu0 %v1907_v28  ;;  %v1963_v14 = vld [vmem:[%s2515_s1 + $0x2f8] sm:$0xff]   ;;  %v1966_v17 = vld [vmem:[%s2515_s1 + $0x230] sm:$0xff]   ;;  %v1975_v24 = vld [vmem:[%s2515_s1 + $0x228] sm:$0xff]  }
  0x1d   :  { %1664 = vmatpush3.bf16.msra.mxu1 %v1906_v27  ;;  %v1964_v15 = vld [vmem:[%s2515_s1 + $0x2b8] sm:$0xff]   ;;  %v1967_v18 = vld [vmem:[%s2515_s1 + $0x2f0] sm:$0xff]   ;;  %v1977_v26 = vld [vmem:[%s2515_s1 + $0x2e8] sm:$0xff]  }
  0x1e   :  { %1665 = vmatprep.subr.bf16.mxu1 %v1909_v30  ;;  %v1968_v19 = vld [vmem:[%s2516_s0 + $0x7c] ss:$52 sps:$4 sm:$0xff]   ;;  %v1971_v21 = vld [vmem:[%s2516_s0 + $0x78] ss:$52 sps:$4 sm:$0xff]   ;;  %v1976_v25 = vld [vmem:[%s2516_s0 + $0x80] ss:$52 sps:$4 sm:$0xff]  }
  0x1f   :  { %1638 = vmatpush3.bf16.msra.mxu0 %v1908_v29  ;;  %v1970_v20 = vld [vmem:[%s2515_s1 + $0x2b0] sm:$0xff]   ;;  %v1973_v23 = vld [vmem:[%s2516_s0 + $0x84] ss:$52 sps:$4 sm:$0xff]   ;;  %v1978_v27 = vld [vmem:[%s2515_s1 + $0x2a8] sm:$0xff]  }
  0x20   :  { %1679 = vmatprep.subr.bf16.mxu0 %v1914_v34  ;;  %v1979_v28 = vld [vmem:[%s2515_s1 + $0x260] sm:$0xff]   ;;  %v1983_v32 = vld [vmem:[%s2515_s1 + $0x258] sm:$0xff]   ;;  %v1987_v36 = vld [vmem:[%s2515_s1 + $0x250] sm:$0xff]  }
  0x21   :  { %1666 = vmatpush3.bf16.msra.mxu1 %v1913_v33  ;;  %v1980_v29 = vld [vmem:[%s2515_s1 + $0x220] sm:$0xff]   ;;  %v1984_v33 = vld [vmem:[%s2515_s1 + $0x218] sm:$0xff]  }
  0x22   :  { %1053 = vmatmul.mubr.bf16.vlgmr.msra.gmra.mxu0 %v1910_v31  ;;  %1707 = vmatprep.subr.bf16.mxu1 %v1919_v38  ;;  %v1981_v30 = vld [vmem:[%s2515_s1 + $0x2e0] sm:$0xff]   ;;  %v1985_v34 = vld [vmem:[%s2515_s1 + $0x2d8] sm:$0xff]   ;;  %v1989_v38 = vld [vmem:[%s2515_s1 + $0x2d0] sm:$0xff]  }
  0x23   :  { %1680 = vmatpush3.bf16.msra.mxu0 %v1918_v37  ;;  %1060 = vmatprep.mubr.bf16.mxu0 %v1935_v54  ;;  %v1982_v31 = vld [vmem:[%s2515_s1 + $0x2a0] sm:$0xff]   ;;  %v1988_v37 = vld [vmem:[%s2515_s1 + $0x210] sm:$0xff]  }
  0x24   :  { %1102 = vmatmul.mubr.bf16.vlgmr.msra.gmra.mxu1 %v1915_v35  ;;  %1681 = vmatprep.subr.bf16.mxu0 %v1921_v40  ;;  %v1986_v35 = vld [vmem:[%s2515_s1 + $0x298] sm:$0xff]   ;;  %v1991_v40 = vld [vmem:[%s2515_s1 + $0x248] sm:$0xff]  }
  0x25   :  { %1708 = vmatpush3.bf16.msra.mxu1 %v1920_v39  ;;  %1109 = vmatprep.mubr.bf16.mxu1 %v1940_v58  ;;  %v1990_v39 = vld [vmem:[%s2515_s1 + $0x290] sm:$0xff]   ;;  %v2007_v54 = vld [vmem:[%s2516_s0 + $0x8c] ss:$52 sps:$4 sm:$0xff]  }
  0x26   :  { %1709 = vmatprep.subr.bf16.mxu1 %v1923_v42  ;;  %v1993_v42 = vld [vmem:[%s2515_s1 + $0x2c8] sm:$0xff]   ;;  %v2014_v58 = vld [vmem:[%s2515_s1 + $0x320] sm:$0xff]  }
  0x27   :  { %1682 = vmatpush3.bf16.msra.mxu0 %v1922_v41  ;;  %v1992_v41 = vld [vmem:[%s2515_s1 + $0x208] sm:$0xff]  }
  0x28   :  { %1683 = vmatprep.subr.bf16.mxu0 %v1925_v44  ;;  %v1995_v44 = vld [vmem:[%s2515_s1 + $0x240] sm:$0xff]  }
  0x29   :  { %1710 = vmatpush3.bf16.msra.mxu1 %v1924_v43  ;;  %v1994_v43 = vld [vmem:[%s2515_s1 + $0x288] sm:$0xff]  }
  0x2a   :  { %1711 = vmatprep.subr.bf16.mxu1 %v1927_v46  ;;  %1061 = vmatmul.mubr.bf16.gmra.mxu0 %v1938_v56  ;;  %v1997_v46 = vld [vmem:[%s2515_s1 + $0x2c0] sm:$0xff]   ;;  %v2010_v56 = vld [vmem:[%s2515_s1 + $0x328] sm:$0xff]  }
  0x2b   :  { %1684 = vmatpush3.bf16.msra.mxu0 %v1926_v45  ;;  %1150 = vmatprep.mubr.bf16.mxu0 %v1956_v8  ;;  %v1996_v45 = vld [vmem:[%s2515_s1 + $0x200] sm:$0xff]   ;;  %v1376_v8 = vld [vmem:[%s2517_s3 + $0x48] sm:$0xff] }
  0x2c   :  { %1685 = vmatprep.subr.bf16.mxu0 %v1929_v48  ;;  %1110 = vmatmul.mubr.bf16.gmra.mxu1 %v1943_v60  ;;  %v2000_v48 = vld [vmem:[%s2516_s0 + $0x24] ss:$52 sps:$4 sm:$0xff]  }
  0x2d   :  { %1712 = vmatpush3.bf16.msra.mxu1 %v1928_v47  ;;  %1199 = vmatprep.mubr.bf16.mxu1 %v1961_v12  ;;  %v1998_v47 = vld [vmem:[%s2516_s0 + $0x20] ss:$52 sps:$4 sm:$0xff]   ;;  %v2015_v60 = vld [vmem:[%s2515_s1 + $0x318] sm:$0xff]   ;;  %v1372_v12 = vld [vmem:[%s2517_s3 + $0x28] sm:$0xff] }
  0x2e   :  { %1713 = vmatprep.subr.bf16.mxu1 %v1931_v50  ;;  %v2002_v50 = vld [vmem:[%s2515_s1 + $0x338] sm:$0xff]  }
  0x2f   :  { %1686 = vmatpush3.bf16.msra.mxu0 %v1930_v49  ;;  %v2001_v49 = vld [vmem:[%s2515_s1 + $0x280] sm:$0xff]  }
  0x30   :  { %1687 = vmatprep.subr.bf16.mxu0 %v1933_v52  ;;  %v2005_v52 = vld [vmem:[%s2516_s0 + $0x2c] ss:$52 sps:$4 sm:$0xff]  }
  0x31   :  { %1714 = vmatpush3.bf16.msra.mxu1 %v1932_v51  ;;  %v2003_v51 = vld [vmem:[%s2516_s0 + $0x28] ss:$52 sps:$4 sm:$0xff]  }
  0x32   :  { %1715 = vmatprep.subr.bf16.mxu1 %v1937_v55  ;;  %v2009_v55 = vld [vmem:[%s2516_s0 + $0x88] ss:$52 sps:$4 sm:$0xff]  }
  0x33   :  { %1688 = vmatpush3.bf16.msra.mxu0 %v1934_v53  ;;  %v2006_v53 = vld [vmem:[%s2515_s1 + $0x330] sm:$0xff]  }
  0x34   :  { %1689 = vmatprep.subr.bf16.mxu0 %v1942_v59  ;;  %v2013_v59 = vld [vmem:[%s2516_s0 + $0x90] ss:$52 sps:$4 sm:$0xff]  }
  0x35   :  { %1716 = vmatpush3.bf16.msra.mxu1 %v1939_v57  ;;  %v2011_v57 = vld [vmem:[%s2516_s0 + $0x94] ss:$52 sps:$4 sm:$0xff]  }
  0x36   :  { %1717 = vmatprep.subr.bf16.mxu1 %v1945_v62  ;;  %v2016_v62 = vld [vmem:[%s2515_s1 + $0x310] sm:$0xff]  }
  0x37   :  { %1690 = vmatpush3.bf16.msra.mxu0 %v1944_v61  ;;  %v2019_v61 = vld [vmem:[%s2516_s0 + $0x30] ss:$52 sps:$4 sm:$0xff]  }
  0x38   :  { %1691 = vmatprep.subr.bf16.mxu0 %v1947_v0  ;;  %v2018_v0 = vld [vmem:[%s2515_s1 + $0x300] sm:$0xff]  }
  0x39   :  { %1718 = vmatpush3.bf16.msra.mxu1 %v1946_v63  ;;  %v2017_v63 = vld [vmem:[%s2515_s1 + $0x308] sm:$0xff]  }
  0x3a   :  { %1719 = vmatprep.subr.bf16.mxu1 %v1949_v2  ;;  %v1382_v2 = vld [vmem:[%s2517_s3 + $0x78] sm:$0xff] }
  0x3b   :  { %1692 = vmatpush3.bf16.msra.mxu0 %v1948_v1  ;;  %v2020_v1 = vld [vmem:[%s2516_s0 + $0x98] ss:$52 sps:$4 sm:$0xff]  }
  0x3c   :  { %1693 = vmatprep.subr.bf16.mxu0 %v1951_v4  ;;  %v1380_v4 = vld [vmem:[%s2517_s3 + $0x68] sm:$0xff] }
  0x3d   :  { %1720 = vmatpush3.bf16.msra.mxu1 %v1950_v3  ;;  %v1381_v3 = vld [vmem:[%s2517_s3 + $0x70] sm:$0xff] }
  0x3e   :  { %1721 = vmatprep.subr.bf16.mxu1 %v1953_v6  ;;  %v1378_v6 = vld [vmem:[%s2517_s3 + $0x58] sm:$0xff] }
  0x3f   :  { %1694 = vmatpush3.bf16.msra.mxu0 %v1952_v5  ;;  %v1379_v5 = vld [vmem:[%s2517_s3 + $0x60] sm:$0xff] }
  0x40   :  { %1735 = vmatprep.subr.bf16.mxu0 %v1958_v10  ;;  %v1374_v10 = vld [vmem:[%s2517_s3 + $0x38] sm:$0xff] }
  0x41   :  { %1722 = vmatpush3.bf16.msra.mxu1 %v1957_v9  ;;  %v1375_v9 = vld [vmem:[%s2517_s3 + $0x40] sm:$0xff] }
  0x42   :  { %1151 = vmatmul.mubr.bf16.vlgmr.msra.gmra.mxu0 %v1954_v7  ;;  %1763 = vmatprep.subr.bf16.mxu1 %v1963_v14  ;;  %v1377_v7 = vld [vmem:[%s2517_s3 + $0x50] sm:$0xff]  ;;  %v1370_v14 = vld [vmem:[%s2517_s3 + $0x18] sm:$0xff] }
  0x43   :  { %1736 = vmatpush3.bf16.msra.mxu0 %v1962_v13  ;;  %1158 = vmatprep.mubr.bf16.mxu0 %v1968_v19  ;;  %v1371_v13 = vld [vmem:[%s2517_s3 + $0x20] sm:$0xff] }
  0x44   :  { %1200 = vmatmul.mubr.bf16.vlgmr.msra.gmra.mxu1 %v1959_v11  ;;  %1737 = vmatprep.subr.bf16.mxu0 %v1965_v16  ;;  %v1373_v11 = vld [vmem:[%s2517_s3 + $0x30] sm:$0xff]  ;;  %v1368_v16 = vld [vmem:[%s2517_s3 + $0x8] sm:$0xff] }
  0x45   :  { %1764 = vmatpush3.bf16.msra.mxu1 %v1964_v15  ;;  %1207 = vmatprep.mubr.bf16.mxu1 %v1973_v23  ;;  %v1369_v15 = vld [vmem:[%s2517_s3 + $0x10] sm:$0xff] }
  0x46   :  { %1765 = vmatprep.subr.bf16.mxu1 %v1967_v18 }
  0x47   :  { %1738 = vmatpush3.bf16.msra.mxu0 %v1966_v17  ;;  %v1367_v17 = vld [vmem:[%s2517_s3] sm:$0xff] }
  0x48   :  { %1739 = vmatprep.subr.bf16.mxu0 %v1972_v22 }
  0x49   :  { %1766 = vmatpush3.bf16.msra.mxu1 %v1970_v20 }
  0x4a   :  { %1159 = vmatmul.mubr.bf16.gmra.mxu0 %v1971_v21  ;;  %1767 = vmatprep.subr.bf16.mxu1 %v1977_v26 }
  0x4b   :  { %1740 = vmatpush3.bf16.msra.mxu0 %v1975_v24  ;;  %1248 = vmatprep.mubr.bf16.mxu0 %v2000_v48 }
  0x4c   :  { %1208 = vmatmul.mubr.bf16.gmra.mxu1 %v1976_v25  ;;  %1741 = vmatprep.subr.bf16.mxu0 %v1979_v28 }
  0x4d   :  { %1768 = vmatpush3.bf16.msra.mxu1 %v1978_v27  ;;  %1297 = vmatprep.mubr.bf16.mxu1 %v2005_v52 }
  0x4e   :  { %1769 = vmatprep.subr.bf16.mxu1 %v1981_v30 }
  0x4f   :  { %1742 = vmatpush3.bf16.msra.mxu0 %v1980_v29 }
  0x50   :  { %1743 = vmatprep.subr.bf16.mxu0 %v1983_v32 }
  0x51   :  { %1770 = vmatpush3.bf16.msra.mxu1 %v1982_v31 }
  0x52   :  { %1771 = vmatprep.subr.bf16.mxu1 %v1985_v34 }
  0x53   :  { %1744 = vmatpush3.bf16.msra.mxu0 %v1984_v33 }
  0x54   :  { %1745 = vmatprep.subr.bf16.mxu0 %v1987_v36 }
  0x55   :  { %1772 = vmatpush3.bf16.msra.mxu1 %v1986_v35 }
  0x56   :  { %1773 = vmatprep.subr.bf16.mxu1 %v1989_v38 }
  0x57   :  { %1746 = vmatpush3.bf16.msra.mxu0 %v1988_v37 }
  0x58   :  { %1747 = vmatprep.subr.bf16.mxu0 %v1991_v40 }
  0x59   :  { %1774 = vmatpush3.bf16.msra.mxu1 %v1990_v39 }
  0x5a   :  { %1775 = vmatprep.subr.bf16.mxu1 %v1993_v42 }
  0x5b   :  { %1748 = vmatpush3.bf16.msra.mxu0 %v1992_v41 }
  0x5c   :  { %1749 = vmatprep.subr.bf16.mxu0 %v1995_v44 }
  0x5d   :  { %1776 = vmatpush3.bf16.msra.mxu1 %v1994_v43 }
  0x5e   :  { %1777 = vmatprep.subr.bf16.mxu1 %v1997_v46 }
  0x5f   :  { %1750 = vmatpush3.bf16.msra.mxu0 %v1996_v45 }
  0x60   :  { %1821 = vmatprep.subr.bf16.mxu0 %v2002_v50 }
  0x61   :  { %1778 = vmatpush3.bf16.msra.mxu1 %v2001_v49 }
  0x62   :  { %1249 = vmatmul.mubr.bf16.vlgmr.msra.gmra.mxu0 %v1998_v47  ;;  %1841 = vmatprep.subr.mxu1 %v1382_v2 }
  0x63   :  { %1822 = vmatpush3.bf16.msra.mxu0 %v2002_v50  ;;  %1256 = vmatprep.mubr.bf16.mxu0 %v2007_v54 }
  0x64   :  { %1298 = vmatmul.mubr.bf16.vlgmr.msra.gmra.mxu1 %v2003_v51  ;;  %1823 = vmatprep.subr.bf16.mxu0 %v2006_v53 }
  0x65   :  { %1305 = vmatprep.mubr.bf16.mxu1 %v2011_v57  ;;  %1842 = vmatpush3.msra.mxu1 %v1382_v2 }
  0x66   :  { %1843 = vmatprep.subr.mxu1 %v1381_v3 }
  0x67   :  { %1824 = vmatpush3.bf16.msra.mxu0 %v2006_v53  ;;  %1844 = vmatpush3.msra.mxu1 %v1381_v3 }
  0x68   :  { %1825 = vmatprep.subr.bf16.mxu0 %v2010_v56  ;;  %1845 = vmatprep.subr.mxu1 %v1380_v4 }
  0x69   :  { %1846 = vmatpush3.msra.mxu1 %v1380_v4 }
  0x6a   :  { %1257 = vmatmul.mubr.bf16.gmra.mxu0 %v2009_v55  ;;  %1847 = vmatprep.subr.mxu1 %v1379_v5 }
  0x6b   :  { %1826 = vmatpush3.bf16.msra.mxu0 %v2010_v56  ;;  %1837 = vmatprep.mubr.bf16.mxu0 %v2019_v61 }
  0x6c   :  { %1827 = vmatprep.subr.bf16.mxu0 %v2014_v58  ;;  %1306 = vmatmul.mubr.bf16.gmra.mxu1 %v2013_v59 }
  0x6d   :  { %1848 = vmatpush3.msra.mxu1 %v1379_v5 }
  0x6e   :  { %1849 = vmatprep.subr.mxu1 %v1378_v6 }
  0x6f   :  { %1828 = vmatpush3.bf16.msra.mxu0 %v2014_v58  ;;  %1850 = vmatpush3.msra.mxu1 %v1378_v6  ;;  %v1491_v58 = vld [vmem:[%s2518_s2] ss:$0 sm:$0xff] }
  0x70   :  { %1829 = vmatprep.subr.bf16.mxu0 %v2015_v60  ;;  %1851 = vmatprep.subr.mxu1 %v1377_v7 }
  0x71   :  { %1852 = vmatpush3.msra.mxu1 %v1377_v7 }
  0x72   :  { %1853 = vmatprep.subr.mxu1 %v1376_v8 }
  0x73   :  { %1830 = vmatpush3.bf16.msra.mxu0 %v2015_v60  ;;  %1854 = vmatpush3.msra.mxu1 %v1376_v8 }
  0x74   :  { %1831 = vmatprep.subr.bf16.mxu0 %v2016_v62  ;;  %1855 = vmatprep.subr.mxu1 %v1375_v9 }
  0x75   :  { %1856 = vmatpush3.msra.mxu1 %v1375_v9 }
  0x76   :  { %1857 = vmatprep.subr.mxu1 %v1374_v10 }
  0x77   :  { %1832 = vmatpush3.bf16.msra.mxu0 %v2016_v62  ;;  %1858 = vmatpush3.msra.mxu1 %v1374_v10 }
  0x78   :  { %1833 = vmatprep.subr.bf16.mxu0 %v2017_v63  ;;  %1859 = vmatprep.subr.mxu1 %v1373_v11 }
  0x79   :  { %1860 = vmatpush3.msra.mxu1 %v1373_v11 }
  0x7a   :  { %1861 = vmatprep.subr.mxu1 %v1372_v12 }
  0x7b   :  { %1834 = vmatpush3.bf16.msra.mxu0 %v2017_v63  ;;  %1862 = vmatpush3.msra.mxu1 %v1372_v12 }
  0x7c   :  { %1835 = vmatprep.subr.bf16.mxu0 %v2018_v0  ;;  %1863 = vmatprep.subr.mxu1 %v1371_v13 }
  0x7d   :  { %1864 = vmatpush3.msra.mxu1 %v1371_v13 }
  0x7e   :  { %1865 = vmatprep.subr.mxu1 %v1370_v14 }
  0x7f   :  { %1836 = vmatpush3.bf16.msra.mxu0 %v2018_v0  ;;  %1866 = vmatpush3.msra.mxu1 %v1370_v14 }
  0x80   :  { %1867 = vmatprep.subr.mxu1 %v1369_v15 }
  0x81   :  { %1868 = vmatpush3.msra.mxu1 %v1369_v15 }
  0x82   :  { %1838 = vmatmul.mubr.bf16.vlgmr.msra.gmra.mxu0 %v2020_v1  ;;  %1869 = vmatprep.subr.mxu1 %v1368_v16 }
  0x83   :  { %1870 = vmatpush3.msra.mxu1 %v1368_v16 }
  0x84   :  { %1871 = vmatprep.subr.mxu1 %v1367_v17 }
  0x85   :  { %1872 = vmatpush3.msra.mxu1 %v1367_v17 }
  0xe2   :  { %v1639_v18 = vpop.f32.mrf.mxu0 }
  0xe4   :  { %v1640_v19 = vpop.f32.mrf.mxu0  ;;  %v1667_v20 = vpop.f32.mrf.mxu1 }
  0xe5   :  { %v1641_v57 = vadd.f32 %v1640_v19, %v1639_v18 }
  0xe6   :  { %v1642_v21 = vpop.f32.mrf.mxu0  ;;  %v1668_v22 = vpop.f32.mrf.mxu1 }
  0xe7   :  { %v1055_v62 = vadd.f32 %v1641_v57, %v1491_v58  ;;  %v1669_v63 = vadd.f32 %v1668_v22, %v1667_v20 }
  0xe8   :  { %v1643_v23 = vpop.f32.mrf.mxu0  ;;  %v1670_v24 = vpop.f32.mrf.mxu1 }
  0xe9   :  { %v1644_v0 = vadd.f32 %v1643_v23, %v1642_v21  ;;  %v1104_v7 = vadd.f32 %v1669_v63, %v1055_v62 }
  0xea   :  { %v1645_v25 = vpop.f32.mrf.mxu0  ;;  %v1671_v26 = vpop.f32.mrf.mxu1 }
  0xeb   :  { %v1058_v8 = vadd.f32 %v1644_v0, %v1491_v58  ;;  %v1672_v9 = vadd.f32 %v1671_v26, %v1670_v24 }
  0xec   :  { %v1646_v27 = vpop.f32.mrf.mxu0  ;;  %v1673_v28 = vpop.f32.mrf.mxu1 }
  0xed   :  { %v1647_v59 = vadd.f32 %v1646_v27, %v1645_v25  ;;  %v1107_v20 = vadd.f32 %v1672_v9, %v1058_v8 }
  0xee   :  { %v1648_v29 = vpop.f32.mrf.mxu0  ;;  %v1674_v30 = vpop.f32.mrf.mxu1 }
  0xef   :  { %v1063_v3 = vadd.f32 %v1647_v59, %v1491_v58  ;;  %v1675_v4 = vadd.f32 %v1674_v30, %v1673_v28 }
  0xf0   :  { %v1649_v31 = vpop.f32.mrf.mxu0  ;;  %v1676_v32 = vpop.f32.mrf.mxu1 }
  0xf1   :  { %v1650_v1 = vadd.f32 %v1649_v31, %v1648_v29  ;;  %v1112_v16 = vadd.f32 %v1675_v4, %v1063_v3 }
  0xf2   :  { %v1677_v34 = vpop.f32.mrf.mxu1 }
  0xf3   :  { %v1066_v10 = vadd.f32 %v1650_v1, %v1491_v58  ;;  %v1678_v11 = vadd.f32 %v1677_v34, %v1676_v32 }
  0xf5   :  { %v1115_v22 = vadd.f32 %v1678_v11, %v1066_v10 }
 0x102   :  { %v1695_v33 = vpop.f32.mrf.mxu0 }
 0x104   :  { %v1696_v35 = vpop.f32.mrf.mxu0  ;;  %v1723_v36 = vpop.f32.mrf.mxu1 }
 0x105   :  { %v1697_v2 = vadd.f32 %v1696_v35, %v1695_v33 }
 0x106   :  { %v1698_v37 = vpop.f32.mrf.mxu0  ;;  %v1724_v38 = vpop.f32.mrf.mxu1 }
 0x107   :  { %v1153_v13 = vadd.f32 %v1697_v2, %v1104_v7  ;;  %v1725_v14 = vadd.f32 %v1724_v38, %v1723_v36 }
 0x108   :  { %v1699_v39 = vpop.f32.mrf.mxu0  ;;  %v1726_v40 = vpop.f32.mrf.mxu1 }
 0x109   :  { %v1700_v15 = vadd.f32 %v1699_v39, %v1698_v37  ;;  %v1202_v27 = vadd.f32 %v1725_v14, %v1153_v13 }
 0x10a   :  { %v1701_v41 = vpop.f32.mrf.mxu0  ;;  %v1727_v42 = vpop.f32.mrf.mxu1 }
 0x10b   :  { %v1156_v28 = vadd.f32 %v1700_v15, %v1107_v20  ;;  %v1728_v29 = vadd.f32 %v1727_v42, %v1726_v40 }
 0x10c   :  { %v1702_v43 = vpop.f32.mrf.mxu0  ;;  %v1729_v44 = vpop.f32.mrf.mxu1 }
 0x10d   :  { %v1703_v12 = vadd.f32 %v1702_v43, %v1701_v41  ;;  %v1205_v37 = vadd.f32 %v1728_v29, %v1156_v28 }
 0x10e   :  { %v1704_v45 = vpop.f32.mrf.mxu0  ;;  %v1730_v46 = vpop.f32.mrf.mxu1 }
 0x10f   :  { %v1161_v23 = vadd.f32 %v1703_v12, %v1112_v16  ;;  %v1731_v25 = vadd.f32 %v1730_v46, %v1729_v44 }
 0x110   :  { %v1705_v47 = vpop.f32.mrf.mxu0  ;;  %v1732_v48 = vpop.f32.mrf.mxu1 }
 0x111   :  { %v1706_v17 = vadd.f32 %v1705_v47, %v1704_v45  ;;  %v1210_v36 = vadd.f32 %v1731_v25, %v1161_v23 }
 0x112   :  { %v1733_v50 = vpop.f32.mrf.mxu1 }
 0x113   :  { %v1164_v30 = vadd.f32 %v1706_v17, %v1115_v22  ;;  %v1734_v32 = vadd.f32 %v1733_v50, %v1732_v48 }
 0x115   :  { %v1213_v47 = vadd.f32 %v1734_v32, %v1164_v30 }
 0x122   :  { %v1751_v49 = vpop.f32.mrf.mxu0 }
 0x124   :  { %v1752_v51 = vpop.f32.mrf.mxu0  ;;  %v1779_v52 = vpop.f32.mrf.mxu1 }
 0x125   :  { %v1753_v21 = vadd.f32 %v1752_v51, %v1751_v49 }
 0x126   :  { %v1754_v53 = vpop.f32.mrf.mxu0  ;;  %v1780_v54 = vpop.f32.mrf.mxu1 }
 0x127   :  { %v1251_v33 = vadd.f32 %v1753_v21, %v1202_v27  ;;  %v1781_v34 = vadd.f32 %v1780_v54, %v1779_v52 }
 0x128   :  { %v1755_v55 = vpop.f32.mrf.mxu0  ;;  %v1782_v56 = vpop.f32.mrf.mxu1 }
 0x129   :  { %v1756_v35 = vadd.f32 %v1755_v55, %v1754_v53  ;;  %v1300_v49 = vadd.f32 %v1781_v34, %v1251_v33 }
 0x12a   :  { %v1757_v60 = vpop.f32.mrf.mxu0  ;;  %v1783_v61 = vpop.f32.mrf.mxu1 }
 0x12b   :  { %v1254_v44 = vadd.f32 %v1756_v35, %v1205_v37  ;;  %v1784_v46 = vadd.f32 %v1783_v61, %v1782_v56  ;;  %v1622_v61 = vld [vmem:[%s2519_s4] ss:$0 sm:$0xff] }
 0x12c   :  { %v1758_v5 = vpop.f32.mrf.mxu0  ;;  %v1785_v6 = vpop.f32.mrf.mxu1 }
 0x12d   :  { %v1759_v24 = vadd.f32 %v1758_v5, %v1757_v60  ;;  %v1303_v52 = vadd.f32 %v1784_v46, %v1254_v44 }
 0x12e   :  { %v1760_v18 = vpop.f32.mrf.mxu0  ;;  %v1786_v19 = vpop.f32.mrf.mxu1 }
 0x12f   :  { %v1259_v39 = vadd.f32 %v1759_v24, %v1210_v36  ;;  %v1787_v41 = vadd.f32 %v1786_v19, %v1785_v6 }
 0x130   :  { %v1761_v26 = vpop.f32.mrf.mxu0  ;;  %v1788_v31 = vpop.f32.mrf.mxu1 }
 0x131   :  { %v1762_v38 = vadd.f32 %v1761_v26, %v1760_v18  ;;  %v1308_v58 = vadd.f32 %v1787_v41, %v1259_v39 }
 0x132   :  { %v1789_v43 = vpop.f32.mrf.mxu1 }
 0x133   :  { %v1262_v42 = vadd.f32 %v1762_v38, %v1213_v47  ;;  %v1790_v51 = vadd.f32 %v1789_v43, %v1788_v31 }
 0x135   :  { %v1311_v55 = vadd.f32 %v1790_v51, %v1262_v42 }
 0x142   :  { %v1839_v45 = vpop.f32.mrf.mxu0 }
 0x143   :  { %v1357_v53 = vadd.f32 %v1839_v45, %v1308_v58 }
 0x144   :  { %v1348_v40 = vpop.f32.mrf.mxu0 }
 0x145   :  { %v1349_v57 = vadd.f32 %v1348_v40, %v1300_v49  ;;  %v1365_v63 = vmul.f32 %v1357_v53, %v1357_v53 }
 0x146   :  { %v1840_v48 = vpop.f32.mrf.mxu0 }
 0x147   :  { %v1363_v50 = vmul.f32 %v1349_v57, %v1349_v57  ;;  %v1360_v60 = vadd.f32 %v1840_v48, %v1311_v55 }
 0x148   :  { %v1351_v54 = vpop.f32.mrf.mxu0 }
 0x149   :  { %v1352_v59 = vadd.f32 %v1351_v54, %v1303_v52  ;;  %1873 = vmatprep.mubr.f32.mxu1 %v1363_v50  ;;  %v1366_v56 = vmul.f32 %v1360_v60, %v1360_v60 }
 0x14b   :  { %v1364_v62 = vmul.f32 %v1352_v59, %v1352_v59 }
 0x14d   :  { %1874 = vmatmul.mubr.f32.vlgmr.msra.gmra.mxu1 %v1364_v62 }
 0x14e   :  { %1876 = vmatprep.mubr.f32.mxu1 %v1365_v63 }
 0x151   :  { %1877 = vmatmul.mubr.f32.gmra.mxu1 %v1366_v56 }
 0x20d   :  { %v1875_v0 = vpop.f32.mrf.mxu1 }
 0x20e   :  { %v1462_v1 = vadd.f32 %v1875_v0, %v1622_v61 }
 0x20f   :  { %v1456_v2 = vpop.f32.mrf.mxu1 }
 0x210   :  { %2021 = vrsqrt.f32 %v1462_v1  ;;  %v1457_v3 = vadd.f32 %v1622_v61, %v1456_v2 }
 0x211   :  { %v1878_v4 = vpop.f32.mrf.mxu1 }
 0x212   :  { %2023 = vrsqrt.f32 %v1457_v3  ;;  %v1472_v5 = vadd.f32 %v1878_v4, %v1622_v61 }
 0x213   :  { %v1466_v6 = vpop.f32.mrf.mxu1 }
 0x214   :  { %2025 = vrsqrt.f32 %v1472_v5  ;;  %v1467_v7 = vadd.f32 %v1622_v61, %v1466_v6 }
 0x216   :  { %2027 = vrsqrt.f32 %v1467_v7 }
 0x21d   :  { %v2022_v8 = vpop.eup %2021 }
 0x21e   :  { %v1480_v9 = vmul.f32 %v2022_v8, %v1352_v59 }
 0x21f   :  { %v2024_v10 = vpop.eup %2023 }
 0x220   :  { %1484 = vst [vmem:[%s2520_s5 + $0x8] sm:$0xff] %v1480_v9  ;;  %v1479_v11 = vmul.f32 %v2024_v10, %v1349_v57 }
 0x221   :  { %v2026_v12 = vpop.eup %2025 }
 0x222   :  { %1483 = vst [vmem:[%s2520_s5] sm:$0xff] %v1479_v11  ;;  %v1482_v13 = vmul.f32 %v2026_v12, %v1360_v60 }
 0x223   :  { %v2028_v14 = vpop.eup %2027 }
 0x224   :  { %1486 = vst [vmem:[%s2520_s5 + $0x18] sm:$0xff] %v1482_v13  ;;  %v1481_v15 = vmul.f32 %v2028_v14, %v1357_v53 }
 0x226   :  { %1485 = vst [vmem:[%s2520_s5 + $0x10] sm:$0xff] %v1481_v15 }

// kernel: _lambda_.7
= control target key start
LH: loop header
LB: loop body
LE: loop exit
PB: predicated region body
PF: predicated region fallthrough
CT: control target
= control target key end

     0   :  { %vm1625_vm0 = vmmov 0   ;;  %s1986_s0 = inlined_call_operand.vmem [shape: bf16[8,1664], index: 0, kind: input, shape index: {}]   ;;  %s1987_s1 = inlined_call_operand.vmem [shape: bf16[1664,128], index: 1, kind: input, shape index: {}]   ;;  %s1988_s2 = inlined_call_operand.vmem [shape: f32[1,128], index: 2, kind: input, shape index: {}]   ;;  %s1989_s3 = inlined_call_operand.hbm [shape: f32[8,128], index: 3, kind: output, shape index: {}]  }
   0x1   :  { %v1485_v0 = vld [vmem:[%s1987_s1 + $0x78] sm:$0xff]   ;;  %v1489_v4 = vld [vmem:[%s1987_s1 + $0x70] sm:$0xff]   ;;  %v1493_v8 = vld [vmem:[%s1987_s1 + $0x68] sm:$0xff]  }
   0x2   :  { %v1486_v1 = vld [vmem:[%s1987_s1 + $0x38] sm:$0xff]   ;;  %1321 = vmatprep.subr.bf16.mxu0 %v1485_v0  ;;  %v1490_v5 = vld [vmem:[%s1987_s1 + $0x30] sm:$0xff]   ;;  %v1494_v9 = vld [vmem:[%s1987_s1 + $0x28] sm:$0xff]  }
   0x3   :  { %v1487_v2 = vld [vmem:[%s1987_s1 + $0xf8] sm:$0xff]   ;;  %1322 = vmatpush3.bf16.msra.mxu0 %v1486_v1  ;;  %v1491_v6 = vld [vmem:[%s1987_s1 + $0xf0] sm:$0xff]   ;;  %v1495_v10 = vld [vmem:[%s1987_s1 + $0xe8] sm:$0xff]  }
   0x4   :  { %v1488_v3 = vld [vmem:[%s1987_s1 + $0xb8] sm:$0xff]   ;;  %1343 = vmatprep.subr.bf16.mxu1 %v1487_v2  ;;  %1323 = vmatprep.subr.bf16.mxu0 %v1489_v4  ;;  %v1492_v7 = vld [vmem:[%s1987_s1 + $0xb0] sm:$0xff]   ;;  %v1496_v11 = vld [vmem:[%s1987_s1 + $0xa8] sm:$0xff]  }
   0x5   :  { %1344 = vmatpush3.bf16.msra.mxu1 %v1488_v3  ;;  %v1497_v12 = vld [vmem:[%s1987_s1 + $0x60] sm:$0xff]   ;;  %v1501_v16 = vld [vmem:[%s1987_s1 + $0x58] sm:$0xff]   ;;  %v1505_v20 = vld [vmem:[%s1987_s1 + $0x50] sm:$0xff]  }
   0x6   :  { %1345 = vmatprep.subr.bf16.mxu1 %v1491_v6  ;;  %v1498_v13 = vld [vmem:[%s1987_s1 + $0x20] sm:$0xff]   ;;  %v1502_v17 = vld [vmem:[%s1987_s1 + $0x18] sm:$0xff]   ;;  %v1506_v21 = vld [vmem:[%s1987_s1 + $0x10] sm:$0xff]  }
   0x7   :  { %1324 = vmatpush3.bf16.msra.mxu0 %v1490_v5  ;;  %v1499_v14 = vld [vmem:[%s1987_s1 + $0xe0] sm:$0xff]   ;;  %v1503_v18 = vld [vmem:[%s1987_s1 + $0xd8] sm:$0xff]   ;;  %v1507_v22 = vld [vmem:[%s1987_s1 + $0xd0] sm:$0xff]  }
   0x8   :  { %1325 = vmatprep.subr.bf16.mxu0 %v1493_v8  ;;  %v1500_v15 = vld [vmem:[%s1987_s1 + $0xa0] sm:$0xff]   ;;  %v1504_v19 = vld [vmem:[%s1987_s1 + $0x98] sm:$0xff]   ;;  %v1508_v23 = vld [vmem:[%s1987_s1 + $0x90] sm:$0xff]  }
   0x9   :  { %1346 = vmatpush3.bf16.msra.mxu1 %v1492_v7  ;;  %v1509_v24 = vld [vmem:[%s1987_s1 + $0x48] sm:$0xff]   ;;  %v1513_v28 = vld [vmem:[%s1987_s1 + $0x40] sm:$0xff]   ;;  %v1519_v35 = vld [vmem:[%s1987_s1 + $0x178] sm:$0xff]  }
   0xa   :  { %1347 = vmatprep.subr.bf16.mxu1 %v1495_v10  ;;  %v1510_v25 = vld [vmem:[%s1987_s1 + $0x8] sm:$0xff]   ;;  %v1514_v29 = vld [vmem:[%s1987_s1] sm:$0xff]   ;;  %v1522_v39 = vld [vmem:[%s1987_s1 + $0x138] sm:$0xff]  }
   0xb   :  { %1326 = vmatpush3.bf16.msra.mxu0 %v1494_v9  ;;  %v1511_v26 = vld [vmem:[%s1987_s1 + $0xc8] sm:$0xff]   ;;  %v1515_v30 = vld [vmem:[%s1987_s1 + $0xc0] sm:$0xff]   ;;  %v1523_v40 = vld [vmem:[%s1987_s1 + $0x1f8] sm:$0xff]  }
   0xc   :  { %1327 = vmatprep.subr.bf16.mxu0 %v1497_v12  ;;  %v1512_v27 = vld [vmem:[%s1987_s1 + $0x88] sm:$0xff]   ;;  %v16_v31 = vld [vmem:[%s1986_s0] sm:$0xff]  ;;  %v1524_v41 = vld [vmem:[%s1987_s1 + $0x1b8] sm:$0xff]  }
   0xd   :  { %1348 = vmatpush3.bf16.msra.mxu1 %v1496_v11  ;;  %v1204_v32 = vcombine.low %v16_v31, %v16_v31  ;;  %v1205_v33 = vcombine.high %v16_v31, %v16_v31  ;;  %v1518_v34 = vld [vmem:[%s1987_s1 + $0x80] sm:$0xff]   ;;  %v17_v36 = vld [vmem:[%s1986_s0 + $0x8] sm:$0xff]  ;;  %v1525_v42 = vld [vmem:[%s1987_s1 + $0x170] sm:$0xff]  }
   0xe   :  { %1349 = vmatprep.subr.bf16.mxu1 %v1499_v14  ;;  %v1206_v37 = vcombine.low %v17_v36, %v17_v36  ;;  %v1207_v38 = vcombine.high %v17_v36, %v17_v36  ;;  %v1526_v43 = vld [vmem:[%s1987_s1 + $0x130] sm:$0xff]   ;;  %v1529_v46 = vld [vmem:[%s1987_s1 + $0x168] sm:$0xff]   ;;  %v1533_v50 = vld [vmem:[%s1987_s1 + $0x160] sm:$0xff]  }
   0xf   :  { %1328 = vmatpush3.bf16.msra.mxu0 %v1498_v13  ;;  %940 = vmatprep.mubr.bf16.mxu0 %v1205_v33  ;;  %v1527_v44 = vld [vmem:[%s1987_s1 + $0x1f0] sm:$0xff]   ;;  %v1530_v47 = vld [vmem:[%s1987_s1 + $0x128] sm:$0xff]   ;;  %v1534_v51 = vld [vmem:[%s1987_s1 + $0x120] sm:$0xff]  }
  0x10   :  { %1329 = vmatprep.subr.bf16.mxu0 %v1501_v16  ;;  %980 = vmatprep.mubr.bf16.mxu1 %v1207_v38  ;;  %v1528_v45 = vld [vmem:[%s1987_s1 + $0x1b0] sm:$0xff]   ;;  %v1531_v48 = vld [vmem:[%s1987_s1 + $0x1e8] sm:$0xff]   ;;  %v1535_v52 = vld [vmem:[%s1987_s1 + $0x1e0] sm:$0xff]  }
  0x11   :  { %1350 = vmatpush3.bf16.msra.mxu1 %v1500_v15  ;;  %v1532_v49 = vld [vmem:[%s1987_s1 + $0x1a8] sm:$0xff]   ;;  %v1536_v53 = vld [vmem:[%s1987_s1 + $0x1a0] sm:$0xff]   ;;  %v1537_v54 = vld [vmem:[%s1987_s1 + $0x158] sm:$0xff]  }
  0x12   :  { %1351 = vmatprep.subr.bf16.mxu1 %v1503_v18  ;;  %v1538_v55 = vld [vmem:[%s1987_s1 + $0x118] sm:$0xff]   ;;  %v1541_v58 = vld [vmem:[%s1987_s1 + $0x150] sm:$0xff]   ;;  %v1545_v62 = vld [vmem:[%s1987_s1 + $0x148] sm:$0xff]  }
  0x13   :  { %1330 = vmatpush3.bf16.msra.mxu0 %v1502_v17  ;;  %v1539_v56 = vld [vmem:[%s1987_s1 + $0x1d8] sm:$0xff]   ;;  %v1542_v59 = vld [vmem:[%s1987_s1 + $0x110] sm:$0xff]   ;;  %v1546_v63 = vld [vmem:[%s1987_s1 + $0x108] sm:$0xff]  }
  0x14   :  { %1331 = vmatprep.subr.bf16.mxu0 %v1505_v20  ;;  %v1540_v57 = vld [vmem:[%s1987_s1 + $0x198] sm:$0xff]   ;;  %v1543_v60 = vld [vmem:[%s1987_s1 + $0x1d0] sm:$0xff]   ;;  %v1547_v0 = vld [vmem:[%s1987_s1 + $0x1c8] sm:$0xff]  }
  0x15   :  { %1352 = vmatpush3.bf16.msra.mxu1 %v1504_v19  ;;  %v1544_v61 = vld [vmem:[%s1987_s1 + $0x190] sm:$0xff]   ;;  %v1548_v1 = vld [vmem:[%s1987_s1 + $0x188] sm:$0xff]   ;;  %v1549_v2 = vld [vmem:[%s1987_s1 + $0x140] sm:$0xff]  }
  0x16   :  { %1353 = vmatprep.subr.bf16.mxu1 %v1507_v22  ;;  %v1550_v3 = vld [vmem:[%s1987_s1 + $0x100] sm:$0xff]   ;;  %v18_v5 = vld [vmem:[%s1986_s0 + $0x10] sm:$0xff]  ;;  %v1555_v9 = vld [vmem:[%s1987_s1 + $0x278] sm:$0xff]  }
  0x17   :  { %1332 = vmatpush3.bf16.msra.mxu0 %v1506_v21  ;;  %v1551_v4 = vld [vmem:[%s1987_s1 + $0x1c0] sm:$0xff]   ;;  %v1208_v6 = vcombine.low %v18_v5, %v18_v5  ;;  %v1209_v7 = vcombine.high %v18_v5, %v18_v5  ;;  %v19_v10 = vld [vmem:[%s1986_s0 + $0x18] sm:$0xff]  ;;  %v1561_v16 = vld [vmem:[%s1987_s1 + $0x270] sm:$0xff]  }
  0x18   :  { %1333 = vmatprep.subr.bf16.mxu0 %v1509_v24  ;;  %v1554_v8 = vld [vmem:[%s1987_s1 + $0x180] sm:$0xff]   ;;  %v1210_v11 = vcombine.low %v19_v10, %v19_v10  ;;  %v1211_v12 = vcombine.high %v19_v10, %v19_v10  ;;  %v1558_v13 = vld [vmem:[%s1987_s1 + $0x238] sm:$0xff]   ;;  %v1562_v17 = vld [vmem:[%s1987_s1 + $0x230] sm:$0xff]  }
  0x19   :  { %1354 = vmatpush3.bf16.msra.mxu1 %v1508_v23  ;;  %v1559_v14 = vld [vmem:[%s1987_s1 + $0x2f8] sm:$0xff]   ;;  %v1563_v18 = vld [vmem:[%s1987_s1 + $0x2f0] sm:$0xff]   ;;  %v1565_v20 = vld [vmem:[%s1987_s1 + $0x268] sm:$0xff]  }
  0x1a   :  { %1355 = vmatprep.subr.bf16.mxu1 %v1511_v26  ;;  %v1560_v15 = vld [vmem:[%s1987_s1 + $0x2b8] sm:$0xff]   ;;  %v1564_v19 = vld [vmem:[%s1987_s1 + $0x2b0] sm:$0xff]   ;;  %v1566_v21 = vld [vmem:[%s1987_s1 + $0x228] sm:$0xff]  }
  0x1b   :  { %1334 = vmatpush3.bf16.msra.mxu0 %v1510_v25  ;;  %v1567_v22 = vld [vmem:[%s1987_s1 + $0x2e8] sm:$0xff]   ;;  %v1569_v24 = vld [vmem:[%s1987_s1 + $0x260] sm:$0xff]   ;;  %v1576_v31 = vld [vmem:[%s1987_s1 + $0x298] sm:$0xff]  }
  0x1c   :  { %1335 = vmatprep.subr.bf16.mxu0 %v1513_v28  ;;  %v1568_v23 = vld [vmem:[%s1987_s1 + $0x2a8] sm:$0xff]   ;;  %v1570_v25 = vld [vmem:[%s1987_s1 + $0x220] sm:$0xff]   ;;  %v1573_v28 = vld [vmem:[%s1987_s1 + $0x258] sm:$0xff]  }
  0x1d   :  { %1356 = vmatpush3.bf16.msra.mxu1 %v1512_v27  ;;  %v1571_v26 = vld [vmem:[%s1987_s1 + $0x2e0] sm:$0xff]   ;;  %v1578_v33 = vld [vmem:[%s1987_s1 + $0x210] sm:$0xff]   ;;  %v1581_v36 = vld [vmem:[%s1987_s1 + $0x248] sm:$0xff]  }
  0x1e   :  { %1357 = vmatprep.subr.bf16.mxu1 %v1515_v30  ;;  %v1572_v27 = vld [vmem:[%s1987_s1 + $0x2a0] sm:$0xff]   ;;  %v1575_v30 = vld [vmem:[%s1987_s1 + $0x2d8] sm:$0xff]   ;;  %v1583_v38 = vld [vmem:[%s1987_s1 + $0x2c8] sm:$0xff]  }
  0x1f   :  { %1336 = vmatpush3.bf16.msra.mxu0 %v1514_v29  ;;  %v1574_v29 = vld [vmem:[%s1987_s1 + $0x218] sm:$0xff]  }
  0x20   :  { %1365 = vmatprep.subr.bf16.mxu0 %v1519_v35  ;;  %v1580_v35 = vld [vmem:[%s1987_s1 + $0x290] sm:$0xff]  }
  0x21   :  { %1358 = vmatpush3.bf16.msra.mxu1 %v1518_v34  ;;  %v1579_v34 = vld [vmem:[%s1987_s1 + $0x2d0] sm:$0xff]  }
  0x22   :  { %941 = vmatmul.mubr.bf16.vlgmr.msra.gmra.mxu0 %v1204_v32  ;;  %1387 = vmatprep.subr.bf16.mxu1 %v1523_v40  ;;  %v1577_v32 = vld [vmem:[%s1987_s1 + $0x250] sm:$0xff]   ;;  %v1585_v40 = vld [vmem:[%s1987_s1 + $0x240] sm:$0xff]  }
  0x23   :  { %1366 = vmatpush3.bf16.msra.mxu0 %v1522_v39  ;;  %1020 = vmatprep.mubr.bf16.mxu0 %v1209_v7  ;;  %v1584_v39 = vld [vmem:[%s1987_s1 + $0x288] sm:$0xff]  }
  0x24   :  { %981 = vmatmul.mubr.bf16.vlgmr.msra.gmra.mxu1 %v1206_v37  ;;  %1367 = vmatprep.subr.bf16.mxu0 %v1525_v42  ;;  %v1582_v37 = vld [vmem:[%s1987_s1 + $0x208] sm:$0xff]   ;;  %v1587_v42 = vld [vmem:[%s1987_s1 + $0x2c0] sm:$0xff]  }
  0x25   :  { %1388 = vmatpush3.bf16.msra.mxu1 %v1524_v41  ;;  %1060 = vmatprep.mubr.bf16.mxu1 %v1211_v12  ;;  %v1586_v41 = vld [vmem:[%s1987_s1 + $0x200] sm:$0xff]  }
  0x26   :  { %1389 = vmatprep.subr.bf16.mxu1 %v1527_v44 }
  0x27   :  { %1368 = vmatpush3.bf16.msra.mxu0 %v1526_v43  ;;  %v20_v43 = vld [vmem:[%s1986_s0 + $0x20] sm:$0xff] }
  0x28   :  { %1369 = vmatprep.subr.bf16.mxu0 %v1529_v46  ;;  %v1212_v44 = vcombine.low %v20_v43, %v20_v43  ;;  %v1590_v46 = vld [vmem:[%s1987_s1 + $0x280] sm:$0xff]  }
  0x29   :  { %1390 = vmatpush3.bf16.msra.mxu1 %v1528_v45  ;;  %v1213_v45 = vcombine.high %v20_v43, %v20_v43 }
  0x2a   :  { %1391 = vmatprep.subr.bf16.mxu1 %v1531_v48  ;;  %v1624_v48 = vmov 0.0  }
  0x2b   :  { %1370 = vmatpush3.bf16.msra.mxu0 %v1530_v47  ;;  %v21_v47 = vld [vmem:[%s1986_s0 + $0x28] sm:$0xff] }
  0x2c   :  { %1371 = vmatprep.subr.bf16.mxu0 %v1533_v50  ;;  %v1215_v50 = vcombine.high %v21_v47, %v21_v47 }
  0x2d   :  { %1392 = vmatpush3.bf16.msra.mxu1 %v1532_v49  ;;  %v1214_v49 = vcombine.low %v21_v47, %v21_v47 }
  0x2e   :  { %1393 = vmatprep.subr.bf16.mxu1 %v1535_v52  ;;  %v1594_v52 = vld [vmem:[%s1987_s1 + $0x330] sm:$0xff]  }
  0x2f   :  { %1372 = vmatpush3.bf16.msra.mxu0 %v1534_v51  ;;  %v1593_v51 = vld [vmem:[%s1987_s1 + $0x338] sm:$0xff]  }
  0x30   :  { %1373 = vmatprep.subr.bf16.mxu0 %v1537_v54 }
  0x31   :  { %1394 = vmatpush3.bf16.msra.mxu1 %v1536_v53  ;;  %v1595_v53 = vld [vmem:[%s1987_s1 + $0x328] sm:$0xff]  }
  0x32   :  { %1395 = vmatprep.subr.bf16.mxu1 %v1539_v56 }
  0x33   :  { %1374 = vmatpush3.bf16.msra.mxu0 %v1538_v55 }
  0x34   :  { %1375 = vmatprep.subr.bf16.mxu0 %v1541_v58 }
  0x35   :  { %1396 = vmatpush3.bf16.msra.mxu1 %v1540_v57 }
  0x36   :  { %1397 = vmatprep.subr.bf16.mxu1 %v1543_v60 }
  0x37   :  { %1376 = vmatpush3.bf16.msra.mxu0 %v1542_v59 }
  0x38   :  { %1377 = vmatprep.subr.bf16.mxu0 %v1545_v62 }
  0x39   :  { %1398 = vmatpush3.bf16.msra.mxu1 %v1544_v61 }
  0x3a   :  { %1399 = vmatprep.subr.bf16.mxu1 %v1547_v0 }
  0x3b   :  { %1378 = vmatpush3.bf16.msra.mxu0 %v1546_v63 }
  0x3c   :  { %1379 = vmatprep.subr.bf16.mxu0 %v1549_v2 }
  0x3d   :  { %1400 = vmatpush3.bf16.msra.mxu1 %v1548_v1 }
  0x3e   :  { %1401 = vmatprep.subr.bf16.mxu1 %v1551_v4 }
  0x3f   :  { %1380 = vmatpush3.bf16.msra.mxu0 %v1550_v3 }
  0x40   :  { %1409 = vmatprep.subr.bf16.mxu0 %v1555_v9 }
  0x41   :  { %1402 = vmatpush3.bf16.msra.mxu1 %v1554_v8 }
  0x42   :  { %1021 = vmatmul.mubr.bf16.vlgmr.msra.gmra.mxu0 %v1208_v6  ;;  %1431 = vmatprep.subr.bf16.mxu1 %v1559_v14 }
  0x43   :  { %1410 = vmatpush3.bf16.msra.mxu0 %v1558_v13  ;;  %1100 = vmatprep.mubr.bf16.mxu0 %v1213_v45 }
  0x44   :  { %1061 = vmatmul.mubr.bf16.vlgmr.msra.gmra.mxu1 %v1210_v11  ;;  %1411 = vmatprep.subr.bf16.mxu0 %v1561_v16 }
  0x45   :  { %1432 = vmatpush3.bf16.msra.mxu1 %v1560_v15  ;;  %1140 = vmatprep.mubr.bf16.mxu1 %v1215_v50 }
  0x46   :  { %1433 = vmatprep.subr.bf16.mxu1 %v1563_v18 }
  0x47   :  { %1412 = vmatpush3.bf16.msra.mxu0 %v1562_v17 }
  0x48   :  { %1413 = vmatprep.subr.bf16.mxu0 %v1565_v20 }
  0x49   :  { %1434 = vmatpush3.bf16.msra.mxu1 %v1564_v19 }
  0x4a   :  { %1435 = vmatprep.subr.bf16.mxu1 %v1567_v22 }
  0x4b   :  { %1414 = vmatpush3.bf16.msra.mxu0 %v1566_v21 }
  0x4c   :  { %1415 = vmatprep.subr.bf16.mxu0 %v1569_v24 }
  0x4d   :  { %1436 = vmatpush3.bf16.msra.mxu1 %v1568_v23 }
  0x4e   :  { %1437 = vmatprep.subr.bf16.mxu1 %v1571_v26 }
  0x4f   :  { %1416 = vmatpush3.bf16.msra.mxu0 %v1570_v25 }
  0x50   :  { %1417 = vmatprep.subr.bf16.mxu0 %v1573_v28 }
  0x51   :  { %1438 = vmatpush3.bf16.msra.mxu1 %v1572_v27 }
  0x52   :  { %1439 = vmatprep.subr.bf16.mxu1 %v1575_v30 }
  0x53   :  { %1418 = vmatpush3.bf16.msra.mxu0 %v1574_v29 }
  0x54   :  { %1419 = vmatprep.subr.bf16.mxu0 %v1577_v32 }
  0x55   :  { %1440 = vmatpush3.bf16.msra.mxu1 %v1576_v31 }
  0x56   :  { %1441 = vmatprep.subr.bf16.mxu1 %v1579_v34 }
  0x57   :  { %1420 = vmatpush3.bf16.msra.mxu0 %v1578_v33 }
  0x58   :  { %1421 = vmatprep.subr.bf16.mxu0 %v1581_v36 }
  0x59   :  { %1442 = vmatpush3.bf16.msra.mxu1 %v1580_v35 }
  0x5a   :  { %1443 = vmatprep.subr.bf16.mxu1 %v1583_v38 }
  0x5b   :  { %1422 = vmatpush3.bf16.msra.mxu0 %v1582_v37 }
  0x5c   :  { %1423 = vmatprep.subr.bf16.mxu0 %v1585_v40 }
  0x5d   :  { %1444 = vmatpush3.bf16.msra.mxu1 %v1584_v39 }
  0x5e   :  { %1445 = vmatprep.subr.bf16.mxu1 %v1587_v42 }
  0x5f   :  { %1424 = vmatpush3.bf16.msra.mxu0 %v1586_v41 }
  0x60   :  { %1462 = vmatprep.subr.bf16.mxu0 %v1624_v48 }
  0x61   :  { %1446 = vmatpush3.bf16.msra.mxu1 %v1590_v46 }
  0x62   :  { %1101 = vmatmul.mubr.bf16.vlgmr.msra.gmra.mxu0 %v1212_v44 }
  0x63   :  { %1463 = vmatpush3.bf16.msra.mxu0 %v1593_v51  ;;  %1478 = vmatprep.mubr.msk.bf16.mxu0 %vm1625_vm0, %v1624_v48 }
  0x64   :  { %1141 = vmatmul.mubr.bf16.vlgmr.msra.gmra.mxu1 %v1214_v49  ;;  %1464 = vmatprep.subr.bf16.mxu0 %v1624_v48 }
  0x67   :  { %1465 = vmatpush3.bf16.msra.mxu0 %v1594_v52 }
  0x68   :  { %1466 = vmatprep.subr.bf16.mxu0 %v1624_v48 }
  0x69   :  { %8 = vsyncpa [#allocation3], 0  ;;  %v1596_v54 = vld [vmem:[%s1987_s1 + $0x320] sm:$0xff]   ;;  %v1597_v55 = vld [vmem:[%s1987_s1 + $0x318] sm:$0xff]  }
  0x6a   :  { %v1598_v56 = vld [vmem:[%s1987_s1 + $0x310] sm:$0xff]   ;;  %v1599_v57 = vld [vmem:[%s1987_s1 + $0x308] sm:$0xff]   ;;  %v1600_v58 = vld [vmem:[%s1987_s1 + $0x300] sm:$0xff]  }
  0x6b   :  { %1467 = vmatpush3.bf16.msra.mxu0 %v1595_v53  ;;  %v1601_v59 = vld [vmem:[%s1986_s0 + $0x30] ss:$0 sps:$4 sm:$0xff]   ;;  %v1203_v61 = vld [vmem:[%s1988_s2] ss:$0 sm:$0xff]  ;;  %s1626_s0 = smov [#allocation2]  }
  0x6c   :  { %1468 = vmatprep.subr.bf16.mxu0 %v1624_v48  ;;  %s1195_s1 = sshll.u32 %s1626_s0, 4  ;;  %s1196_s1 = int_to_ptr.vmem [resolvable:$true] %s1195_s1 }
  0x6d   :  { %s1602_s2 = scalar_lea.vmem %s1196_s1, 128  ;;  %p1607_p1 = scmp.lt.s32.totalorder %s1196_s1, %s1196_s1 }
  0x6e   :  { %p1603_p0 = scmp.ne.s32.totalorder %s1196_s1, %s1602_s2  ;;  %p1608_p2 = scmp.lt.s32.totalorder %s1602_s2, %s1602_s2 }
  0x6f   :  { %1469 = vmatpush3.bf16.msra.mxu0 %v1596_v54 }
  0x70   :  { %1470 = vmatprep.subr.bf16.mxu0 %v1624_v48  ;;  %p1609_p3 = por %p1608_p2, %p1607_p1 }
  0x72   :  { %p1610_p4 = pnand %p1609_p3, %p1603_p0 }
  0x73   :  { %1471 = vmatpush3.bf16.msra.mxu0 %v1597_v55 }
  0x74   :  { %1472 = vmatprep.subr.bf16.mxu0 %v1624_v48 }
  0x77   :  { %1473 = vmatpush3.bf16.msra.mxu0 %v1598_v56 }
  0x78   :  { %1474 = vmatprep.subr.bf16.mxu0 %v1624_v48 }
  0x7b   :  { %1475 = vmatpush3.bf16.msra.mxu0 %v1599_v57 }
  0x7c   :  { %1476 = vmatprep.subr.bf16.mxu0 %v1624_v48 }
  0x7f   :  { %1477 = vmatpush3.bf16.msra.mxu0 %v1600_v58 }
  0x82   :  { %1479 = vmatmul.mubr.bf16.vlgmr.msra.gmra.mxu0 %v1601_v59 }
  0xe2   :  { %v1337_v60 = vpop.f32.mrf.mxu0 }
  0xe4   :  { %v1338_v62 = vpop.f32.mrf.mxu0  ;;  %v1359_v63 = vpop.f32.mrf.mxu1 }
  0xe5   :  { %v1339_v0 = vadd.f32 %v1338_v62, %v1337_v60 }
  0xe6   :  { %v1340_v1 = vpop.f32.mrf.mxu0  ;;  %v1360_v2 = vpop.f32.mrf.mxu1 }
  0xe7   :  { %v943_v3 = vadd.f32 %v1339_v0, %v1203_v61  ;;  %v1361_v4 = vadd.f32 %v1360_v2, %v1359_v63 }
  0xe8   :  { %v1341_v5 = vpop.f32.mrf.mxu0  ;;  %v1362_v6 = vpop.f32.mrf.mxu1 }
  0xe9   :  { %v983_v7 = vadd.f32 %v1361_v4, %v943_v3 }
  0xea   :  { %v1363_v8 = vpop.f32.mrf.mxu1 }
 0x102   :  { %v1381_v9 = vpop.f32.mrf.mxu0 }
 0x104   :  { %v1382_v10 = vpop.f32.mrf.mxu0  ;;  %v1403_v11 = vpop.f32.mrf.mxu1 }
 0x105   :  { %v1383_v25 = vadd.f32 %v1382_v10, %v1381_v9 }
 0x106   :  { %v1384_v12 = vpop.f32.mrf.mxu0  ;;  %v1404_v13 = vpop.f32.mrf.mxu1 }
 0x107   :  { %v1023_v26 = vadd.f32 %v1383_v25, %v983_v7  ;;  %v1405_v27 = vadd.f32 %v1404_v13, %v1403_v11 }
 0x108   :  { %v1385_v14 = vpop.f32.mrf.mxu0  ;;  %v1406_v15 = vpop.f32.mrf.mxu1 }
 0x109   :  { %v1063_v29 = vadd.f32 %v1405_v27, %v1023_v26 }
 0x10a   :  { %v1407_v16 = vpop.f32.mrf.mxu1 }
 0x122   :  { %v1425_v17 = vpop.f32.mrf.mxu0 }
 0x124   :  { %v1426_v18 = vpop.f32.mrf.mxu0  ;;  %v1447_v19 = vpop.f32.mrf.mxu1 }
 0x125   :  { %v1427_v28 = vadd.f32 %v1426_v18, %v1425_v17 }
 0x126   :  { %v1428_v20 = vpop.f32.mrf.mxu0  ;;  %v1448_v21 = vpop.f32.mrf.mxu1 }
 0x127   :  { %v1103_v30 = vadd.f32 %v1427_v28, %v1063_v29  ;;  %v1449_v31 = vadd.f32 %v1448_v21, %v1447_v19 }
 0x128   :  { %v1429_v22 = vpop.f32.mrf.mxu0  ;;  %v1450_v23 = vpop.f32.mrf.mxu1 }
 0x129   :  { %v1143_v32 = vadd.f32 %v1449_v31, %v1103_v30 }
 0x12a   :  { %v1451_v24 = vpop.f32.mrf.mxu1 }
 0x142   :  { %v1182_v33 = vpop.f32.mrf.mxu0 }
 0x143   :  { %v1183_v34 = vadd.f32 %v1182_v33, %v1143_v32 }
 0x144   :  { %v1480_v35 = vpop.f32.mrf.mxu0 }
 0x145   :  { %1188 = vst [vmem:[#allocation2] sm:$0xff] %v1183_v34 }
 0x146   :  { %v1185_v36 = vpop.f32.mrf.mxu0 }
 0x147   :  { %1613 = shalt.err (!%p1610_p4)
}
 0x148   :  { %1198 = dma.vmem_to_hbm [thread:$0]  %s1196_s1, 128, %s1989_s3, [#allocation3]   ;;  %v1481_v37 = vpop.f32.mrf.mxu0 }
 0x149   :  { %1622 = dma.done.wait [#allocation3], 128  }
 0x14a   :  { %1623 = vsyncadd [#allocation3], 4294967168 }
 0x14b   :  { %1202 = vsyncpa [#allocation3], 1 }

</bundles_post_ra>
